<compile_context>
chip_gen: v7x
topology: tpu7x:2x2x1
jax: 0.10.0
libtpu: 0.0.40
codegen_flags: <defaults>
</compile_context>

<pallas_src>
import jax
import jax.numpy as jnp
from jax.experimental import pallas as pl
from jax.experimental.pallas import tpu as pltpu


# ---------------------------------------------------------------------------
# Kernel bodies
# ---------------------------------------------------------------------------

def _attention_body(h_ref, w1_ref, b1_ref, w2_ref, sent_ref, alpha_ref):
    """One grid step: HAN attention over a (block_b, T, D) slab of hidden states."""
    bt, t, d = h_ref.shape
    h = h_ref[...]                                    # (BT, T, D)
    # Fold batch into the MXU M dim.  With T % 8 == 0 this reshape is a layout
    # no-op (no VMEM relayout copy).
    h2 = h.reshape(bt * t, d)

    wdt = w1_ref.dtype                                # bf16 (MXU-native) by default

    # Layer 1: Linear(D, D) + bias, tanh.  bf16 MXU operands, f32 accumulation.
    u = jnp.tanh(
        jnp.dot(h2.astype(wdt), w1_ref[...], preferred_element_type=jnp.float32)
        + b1_ref[...].astype(jnp.float32)             # (1, D) broadcasts over rows
    )                                                 # (BT*T, D) f32

    # Layer 2: Linear(D, D), no bias.
    scores = jnp.dot(u.astype(wdt), w2_ref[...], preferred_element_type=jnp.float32)
    scores = scores.reshape(bt, t, d)                 # (BT, T, D)

    # Softmax over the time axis (PyTorch dim=1), independently per feature column.
    m = jnp.max(scores, axis=1, keepdims=True)        # (BT, 1, D)
    e = jnp.exp(scores - m)
    denom = jnp.sum(e, axis=1, keepdims=True)
    inv = pl.reciprocal(denom, approx=True)           # EUP vrcp (otherwise-idle slot)
    alphas = e * inv                                  # (BT, T, D) f32

    if alpha_ref is not None:
        alpha_ref[...] = alphas.astype(alpha_ref.dtype)
    # Weighted sum over time -> sentence (context) vector, accumulated in f32.
    sent_ref[...] = jnp.sum(alphas * h.astype(jnp.float32), axis=1).astype(sent_ref.dtype)


def _attention_kernel(h_ref, w1_ref, b1_ref, w2_ref, sent_ref, alpha_ref):
    _attention_body(h_ref, w1_ref, b1_ref, w2_ref, sent_ref, alpha_ref)


def _attention_kernel_no_alphas(h_ref, w1_ref, b1_ref, w2_ref, sent_ref):
    _attention_body(h_ref, w1_ref, b1_ref, w2_ref, sent_ref, None)


# ---------------------------------------------------------------------------
# Hardware / tiling heuristics
# ---------------------------------------------------------------------------

# Bytes of in-kernel temporaries per hidden-state element of the block
# (u, scores, e, alphas, weighted product ~ 6 f32 slabs + 2 bf16 casts).
_TEMP_BYTES_PER_ELEM = 6 * 4 + 2 * 2  # = 28


def _physical_vmem_bytes():
    try:
        return int(pltpu.get_tpu_info().vmem_capacity_bytes)
    except Exception:
        return 64 << 20               # conservative: v7x per-TensorCore VMEM


def _vmem_budget_bytes():
    # Leave the compiler ~25% headroom: ~96 MiB on 128 MiB parts (v5e/v6e),
    # ~48 MiB on v7x's 64 MiB.
    return (_physical_vmem_bytes() // 4) * 3


def _num_tensorcores():
    # v7x exposes 2 TensorCores per chip; v5e/v6e have 1.  Fall back to 1 if the
    # attribute is unavailable.
    try:
        return max(1, int(getattr(jax.devices()[0], "num_cores", 1)))
    except Exception:
        return 1


def _block_vmem_bytes(block_b, seq, d, in_isz, alpha_isz, out_isz, w_isz, return_alphas):
    elems = block_b * seq * d
    need = 2 * elems * in_isz                      # hidden_states (double-buffered in)
    if return_alphas:
        need += 2 * elems * alpha_isz              # alphas (double-buffered out)
    need += 2 * block_b * d * out_isz              # sentence (double-buffered out)
    need += (2 * d * d + d) * w_isz                # weights (single-buffered, constant index)
    need += elems * _TEMP_BYTES_PER_ELEM           # in-kernel f32/bf16 temporaries
    return need


def _choose_block_b(batch, seq, d, in_isz, alpha_isz, out_isz, w_isz,
                    return_alphas, vmem_budget, num_cores,
                    target_tile_bytes=4 << 20):
    """Pick the batch-block size.

    Priorities:
      1. fit under the VMEM budget (including in-kernel temporaries),
      2. keep the (block_b, D) sentence out-block tileable (block_b % 8 == 0 or
         block_b == batch),
      3. on multi-TensorCore parts, make grid_b a multiple of num_cores so the
         cores get equal step counts,
      4. reach MiB-scale per-step hidden-state slabs (amortizes the ~0.35 us/step
         overhead); otherwise take the largest block that fits — grid_b == 1 is
         fine on single-TC chips.
    """
    divisors = [b for b in range(1, batch + 1) if batch % b == 0]
    divisors = [b for b in divisors if b == batch or b % 8 == 0] or [batch]
    fits = [b for b in divisors
            if _block_vmem_bytes(b, seq, d, in_isz, alpha_isz, out_isz, w_isz,
                                 return_alphas) <= vmem_budget]
    if not fits:
        # TODO(synk): T-tiled online-softmax path needed for shapes where even the
        # smallest tileable block does not fit in VMEM.
        fits = [divisors[0]]
    if num_cores > 1:
        even = [b for b in fits if (batch // b) % num_cores == 0]
        if even:
            fits = even
    big_enough = [b for b in fits if b * seq * d * in_isz >= target_tile_bytes]
    if big_enough:
        return min(big_enough)        # smallest block that reaches the byte target
    return max(fits)                  # else: largest block that fits


# ---------------------------------------------------------------------------
# Public wrapper
# ---------------------------------------------------------------------------

def attention_forward(hidden_states, w1_t, b1, w2_t, *, block_b=None,
                      return_alphas=True, alphas_dtype=None,
                      mxu_dtype=jnp.bfloat16):
    """HAN attention forward.

    hidden_states: (B, T, D) with D = 2*hidden_size
    w1_t, w2_t:    (D, D) pre-transposed Linear weights (PyTorch ``weight.T``)
    b1:            (D,)   bias of the first Linear

    Returns (sentence, alphas) if ``return_alphas`` else just sentence.
    """
    B, T, D = hidden_states.shape
    out_dtype = hidden_states.dtype
    if alphas_dtype is None:
        alphas_dtype = out_dtype

    # MXU is bf16-native on every generation; f32 x f32 is emulated (slower).
    w_dtype = jnp.dtype(mxu_dtype) if mxu_dtype is not None else jnp.dtype(w1_t.dtype)
    w1c = w1_t.astype(w_dtype)
    w2c = w2_t.astype(w_dtype)
    b1_2d = b1.reshape(1, D).astype(jnp.float32)

    in_isz = jnp.dtype(out_dtype).itemsize
    alpha_isz = jnp.dtype(alphas_dtype).itemsize
    w_isz = w_dtype.itemsize

    vmem_budget = _vmem_budget_bytes()
    num_cores = _num_tensorcores()
    if block_b is None:
        block_b = _choose_block_b(B, T, D, in_isz, alpha_isz, in_isz, w_isz,
                                  return_alphas, vmem_budget, num_cores)
    assert B % block_b == 0, "block_b must divide the batch size"
    grid_b = B // block_b

    need = _block_vmem_bytes(block_b, T, D, in_isz, alpha_isz, in_isz, w_isz,
                             return_alphas)
    vmem_limit = int(min(vmem_budget, max(need + need // 4, 16 << 20)))

    sent_spec = pl.BlockSpec((block_b, D), lambda b: (b, 0))
    if return_alphas:
        kernel = _attention_kernel
        out_shape = (jax.ShapeDtypeStruct((B, D), out_dtype),
                     jax.ShapeDtypeStruct((B, T, D), alphas_dtype))
        out_specs = [sent_spec, pl.BlockSpec((block_b, T, D), lambda b: (b, 0, 0))]
    else:
        kernel = _attention_kernel_no_alphas
        out_shape = jax.ShapeDtypeStruct((B, D), out_dtype)
        out_specs = sent_spec

    def _build(weight_mode):
        # Weights are grid-invariant; single-buffering them reclaims VMEM
        # (matters most for large D on v7x's 64 MiB).
        in_specs = [
            pl.BlockSpec((block_b, T, D), lambda b: (b, 0, 0)),                 # hidden
            pl.BlockSpec((D, D), lambda b: (0, 0), pipeline_mode=weight_mode),  # W1^T
            pl.BlockSpec((1, D), lambda b: (0, 0), pipeline_mode=weight_mode),  # b1
            pl.BlockSpec((D, D), lambda b: (0, 0), pipeline_mode=weight_mode),  # W2^T
        ]
        return pl.pallas_call(
            kernel,
            out_shape=out_shape,
            grid_spec=pltpu.PrefetchScalarGridSpec(
                num_scalar_prefetch=0,
                grid=(grid_b,),
                in_specs=in_specs,
                out_specs=out_specs,
            ),
            compiler_params=pltpu.CompilerParams(
                dimension_semantics=("parallel",),
                vmem_limit_bytes=vmem_limit,
            ),
        )

    args = (hidden_states, w1c, b1_2d, w2c)
    try:
        outs = _build(pl.Buffered(1))(*args)
    except Exception:
        # Fallback for toolchains that require >= 2 pipeline buffers.
        outs = _build(None)(*args)

    if return_alphas:
        return outs[0], outs[1]
    return outs


def attention_reference(hidden_states, w1_t, b1, w2_t):
    """Pure-JAX (f32) reference mirroring the PyTorch forward."""
    u = jnp.tanh(jnp.einsum("btd,de->bte", hidden_states, w1_t) + b1)
    scores = jnp.einsum("btd,de->bte", u, w2_t)
    alphas = jax.nn.softmax(scores, axis=1)
    sentence = jnp.sum(alphas * hidden_states, axis=1)
    return sentence, alphas


if __name__ == "__main__":
    # hidden_size=64 -> D = 2*64 = 128 keeps the feature axis lane-dense;
    # B=32, T=8 folds to >= 256 MXU rows per grid step.
    B, T, hidden_size = 32, 8, 64
    D = 2 * hidden_size

    key = jax.random.PRNGKey(0)
    k_h, k_w1, k_b1, k_w2 = jax.random.split(key, 4)

    hidden_states = jax.random.normal(k_h, (B, T, D), dtype=jnp.float32)

    # PyTorch Linear weight is (out, in); we store the transpose (in, out) so the
    # kernel computes x @ W^T directly.
    bound = 1.0 / jnp.sqrt(jnp.float32(D))
    w1 = jax.random.uniform(k_w1, (D, D), jnp.float32, -bound, bound)
    b1 = jax.random.uniform(k_b1, (D,), jnp.float32, -bound, bound)
    w2 = jax.random.uniform(k_w2, (D, D), jnp.float32, -bound, bound)
    w1_t, w2_t = w1.T, w2.T

    sent, alphas = attention_forward(hidden_states, w1_t, b1, w2_t)
    sent_fast = attention_forward(hidden_states, w1_t, b1, w2_t, return_alphas=False)
    jax.block_until_ready((sent, alphas, sent_fast))

    ref_sent, ref_alphas = attention_reference(hidden_states, w1_t, b1, w2_t)

    assert sent.shape == (B, D) and alphas.shape == (B, T, D)
    # Tolerances reflect bf16 MXU operands + the approximate (EUP) softmax
    # reciprocal vs a pure-f32 reference.
    assert jnp.allclose(alphas, ref_alphas, atol=1e-2, rtol=1e-2), float(
        jnp.max(jnp.abs(alphas - ref_alphas)))
    assert jnp.allclose(sent, ref_sent, atol=5e-2, rtol=5e-2), float(
        jnp.max(jnp.abs(sent - ref_sent)))
    # The no-alphas fast path computes the same sentence values.
    assert jnp.allclose(sent_fast, sent, atol=1e-5, rtol=1e-5)

    print("KERNEL_OK")
</pallas_src>

<mosaic_0001>
module attributes {stable_mosaic.version = 11 : i64} {
  func.func @_attention_kernel(%arg0: i32, %arg1: memref<32x8x128xf32, #tpu.memory_space<vmem>>, %arg2: memref<128x128xbf16, #tpu.memory_space<vmem>>, %arg3: memref<1x128xf32, #tpu.memory_space<vmem>>, %arg4: memref<128x128xbf16, #tpu.memory_space<vmem>>, %arg5: memref<32x128xf32, #tpu.memory_space<vmem>>, %arg6: memref<32x8x128xf32, #tpu.memory_space<vmem>>) attributes {dimension_semantics = [#tpu.dimension_semantics<parallel>], iteration_bounds = array<i64: 1>, scalar_prefetch = 0 : i64, scratch_operands = 0 : i64, tpu.core_type = #tpu.core_type<tc>, window_params = [{transform_indices = @transform_0, window_bounds = array<i64: 32, 8, 128>}, {pipeline_mode = #tpu.pipeline_mode<synchronous>, transform_indices = @transform_1, window_bounds = array<i64: 128, 128>}, {pipeline_mode = #tpu.pipeline_mode<synchronous>, transform_indices = @transform_2, window_bounds = array<i64: 1, 128>}, {pipeline_mode = #tpu.pipeline_mode<synchronous>, transform_indices = @transform_3, window_bounds = array<i64: 128, 128>}, {transform_indices = @transform_4, window_bounds = array<i64: 32, 128>}, {transform_indices = @transform_5, window_bounds = array<i64: 32, 8, 128>}]} {
    %c0 = arith.constant 0 : index
    %c0_0 = arith.constant 0 : index
    %c0_1 = arith.constant 0 : index
    %0 = vector.load %arg1[%c0, %c0_0, %c0_1] : memref<32x8x128xf32, #tpu.memory_space<vmem>>, vector<32x8x128xf32>
    %1 = vector.shape_cast %0 : vector<32x8x128xf32> to vector<256x128xf32>
    %2 = arith.truncf %1 : vector<256x128xf32> to vector<256x128xbf16>
    %c0_2 = arith.constant 0 : index
    %c0_3 = arith.constant 0 : index
    %3 = vector.load %arg2[%c0_2, %c0_3] : memref<128x128xbf16, #tpu.memory_space<vmem>>, vector<128x128xbf16>
    %cst = arith.constant dense<0.000000e+00> : vector<256x128xf32>
    %4 = tpu.matmul %2, %3, %cst {dimension_numbers = #tpu.dot_dimension_numbers<[1], [0], [0], [1], [0, 0, 1, 1], [], []>} : vector<256x128xbf16>, vector<128x128xbf16>, vector<256x128xf32> -> vector<256x128xf32>
    %c0_4 = arith.constant 0 : index
    %c0_5 = arith.constant 0 : index
    %5 = vector.load %arg3[%c0_4, %c0_5] : memref<1x128xf32, #tpu.memory_space<vmem>>, vector<1x128xf32>
    %6 = vector.broadcast %5 : vector<1x128xf32> to vector<256x128xf32>
    %7 = arith.addf %4, %6 : vector<256x128xf32>
    %8 = math.tanh %7 : vector<256x128xf32>
    %9 = arith.truncf %8 : vector<256x128xf32> to vector<256x128xbf16>
    %c0_6 = arith.constant 0 : index
    %c0_7 = arith.constant 0 : index
    %10 = vector.load %arg4[%c0_6, %c0_7] : memref<128x128xbf16, #tpu.memory_space<vmem>>, vector<128x128xbf16>
    %cst_8 = arith.constant dense<0.000000e+00> : vector<256x128xf32>
    %11 = tpu.matmul %9, %10, %cst_8 {dimension_numbers = #tpu.dot_dimension_numbers<[1], [0], [0], [1], [0, 0, 1, 1], [], []>} : vector<256x128xbf16>, vector<128x128xbf16>, vector<256x128xf32> -> vector<256x128xf32>
    %12 = vector.shape_cast %11 : vector<256x128xf32> to vector<32x8x128xf32>
    %cst_9 = arith.constant dense<0xFF800000> : vector<32x128xf32>
    %13 = vector.multi_reduction <maximumf>, %12, %cst_9 [1] : vector<32x8x128xf32> to vector<32x128xf32>
    %14 = vector.shape_cast %13 : vector<32x128xf32> to vector<32x1x128xf32>
    %15 = vector.broadcast %14 : vector<32x1x128xf32> to vector<32x8x128xf32>
    %16 = arith.subf %12, %15 : vector<32x8x128xf32>
    %17 = math.exp %16 : vector<32x8x128xf32>
    %cst_10 = arith.constant dense<0.000000e+00> : vector<32x128xf32>
    %18 = vector.multi_reduction <add>, %17, %cst_10 [1] : vector<32x8x128xf32> to vector<32x128xf32>
    %19 = vector.shape_cast %18 : vector<32x128xf32> to vector<32x1x128xf32>
    %20 = tpu.reciprocal %19 {approx = true} : vector<32x1x128xf32> -> vector<32x1x128xf32>
    %21 = vector.broadcast %20 : vector<32x1x128xf32> to vector<32x8x128xf32>
    %22 = arith.mulf %17, %21 : vector<32x8x128xf32>
    %c0_11 = arith.constant 0 : index
    %c0_12 = arith.constant 0 : index
    %c0_13 = arith.constant 0 : index
    %23 = vector.load %arg6[%c0_11, %c0_12, %c0_13] : memref<32x8x128xf32, #tpu.memory_space<vmem>>, vector<32x8x128xf32>
    tpu.vector_store %arg6[%c0_11, %c0_12, %c0_13], %22 {strides = array<i32>} : memref<32x8x128xf32, #tpu.memory_space<vmem>>, vector<32x8x128xf32>,
    %24 = arith.mulf %22, %0 : vector<32x8x128xf32>
    %cst_14 = arith.constant dense<0.000000e+00> : vector<32x128xf32>
    %25 = vector.multi_reduction <add>, %24, %cst_14 [1] : vector<32x8x128xf32> to vector<32x128xf32>
    %c0_15 = arith.constant 0 : index
    %c0_16 = arith.constant 0 : index
    %26 = vector.load %arg5[%c0_15, %c0_16] : memref<32x128xf32, #tpu.memory_space<vmem>>, vector<32x128xf32>
    tpu.vector_store %arg5[%c0_15, %c0_16], %25 {strides = array<i32>} : memref<32x128xf32, #tpu.memory_space<vmem>>, vector<32x128xf32>,
    return
  }
  func.func @transform_0(%arg0: i32) -> (i32, i32, i32) {
    %c0_i32 = arith.constant 0 : i32
    %c0_i32_0 = arith.constant 0 : i32
    %c0_i32_1 = arith.constant 0 : i32
    return %arg0, %c0_i32, %c0_i32_0 : i32, i32, i32
  }
  func.func @transform_1(%arg0: i32) -> (i32, i32) {
    %c0_i32 = arith.constant 0 : i32
    %c0_i32_0 = arith.constant 0 : i32
    %c0_i32_1 = arith.constant 0 : i32
    return %c0_i32, %c0_i32_0 : i32, i32
  }
  func.func @transform_2(%arg0: i32) -> (i32, i32) {
    %c0_i32 = arith.constant 0 : i32
    %c0_i32_0 = arith.constant 0 : i32
    %c0_i32_1 = arith.constant 0 : i32
    return %c0_i32, %c0_i32_0 : i32, i32
  }
  func.func @transform_3(%arg0: i32) -> (i32, i32) {
    %c0_i32 = arith.constant 0 : i32
    %c0_i32_0 = arith.constant 0 : i32
    %c0_i32_1 = arith.constant 0 : i32
    return %c0_i32, %c0_i32_0 : i32, i32
  }
  func.func @transform_4(%arg0: i32) -> (i32, i32) {
    %c0_i32 = arith.constant 0 : i32
    %c0_i32_0 = arith.constant 0 : i32
    return %arg0, %c0_i32 : i32, i32
  }
  func.func @transform_5(%arg0: i32) -> (i32, i32, i32) {
    %c0_i32 = arith.constant 0 : i32
    %c0_i32_0 = arith.constant 0 : i32
    %c0_i32_1 = arith.constant 0 : i32
    return %arg0, %c0_i32, %c0_i32_0 : i32, i32, i32
  }
}

module attributes {stable_mosaic.version = 11 : i64} {
  func.func @_attention_kernel(%arg0: i32, %arg1: memref<32x8x128xf32, #tpu.memory_space<vmem>>, %arg2: memref<128x128xbf16, #tpu.memory_space<vmem>>, %arg3: memref<1x128xf32, #tpu.memory_space<vmem>>, %arg4: memref<128x128xbf16, #tpu.memory_space<vmem>>, %arg5: memref<32x128xf32, #tpu.memory_space<vmem>>, %arg6: memref<32x8x128xf32, #tpu.memory_space<vmem>>) attributes {dimension_semantics = [#tpu.dimension_semantics<parallel>], iteration_bounds = array<i64: 1>, scalar_prefetch = 0 : i64, scratch_operands = 0 : i64, tpu.core_type = #tpu.core_type<tc>, window_params = [{transform_indices = @transform_0, window_bounds = array<i64: 32, 8, 128>}, {pipeline_mode = #tpu.pipeline_mode<synchronous>, transform_indices = @transform_1, window_bounds = array<i64: 128, 128>}, {pipeline_mode = #tpu.pipeline_mode<synchronous>, transform_indices = @transform_2, window_bounds = array<i64: 1, 128>}, {pipeline_mode = #tpu.pipeline_mode<synchronous>, transform_indices = @transform_3, window_bounds = array<i64: 128, 128>}, {transform_indices = @transform_4, window_bounds = array<i64: 32, 128>}, {transform_indices = @transform_5, window_bounds = array<i64: 32, 8, 128>}]} {
    %c0 = arith.constant 0 : index
    %c0_0 = arith.constant 0 : index
    %c0_1 = arith.constant 0 : index
    %0 = vector.load %arg1[%c0, %c0_0, %c0_1] : memref<32x8x128xf32, #tpu.memory_space<vmem>>, vector<32x8x128xf32>
    %1 = vector.shape_cast %0 : vector<32x8x128xf32> to vector<256x128xf32>
    %2 = arith.truncf %1 : vector<256x128xf32> to vector<256x128xbf16>
    %c0_2 = arith.constant 0 : index
    %c0_3 = arith.constant 0 : index
    %3 = vector.load %arg2[%c0_2, %c0_3] : memref<128x128xbf16, #tpu.memory_space<vmem>>, vector<128x128xbf16>
    %cst = arith.constant dense<0.000000e+00> : vector<256x128xf32>
    %4 = tpu.matmul %2, %3, %cst {dimension_numbers = #tpu.dot_dimension_numbers<[1], [0], [0], [1], [0, 0, 1, 1], [], []>} : vector<256x128xbf16>, vector<128x128xbf16>, vector<256x128xf32> -> vector<256x128xf32>
    %c0_4 = arith.constant 0 : index
    %c0_5 = arith.constant 0 : index
    %5 = vector.load %arg3[%c0_4, %c0_5] : memref<1x128xf32, #tpu.memory_space<vmem>>, vector<1x128xf32>
    %6 = vector.broadcast %5 : vector<1x128xf32> to vector<256x128xf32>
    %7 = arith.addf %4, %6 : vector<256x128xf32>
    %8 = math.tanh %7 : vector<256x128xf32>
    %9 = arith.truncf %8 : vector<256x128xf32> to vector<256x128xbf16>
    %c0_6 = arith.constant 0 : index
    %c0_7 = arith.constant 0 : index
    %10 = vector.load %arg4[%c0_6, %c0_7] : memref<128x128xbf16, #tpu.memory_space<vmem>>, vector<128x128xbf16>
    %cst_8 = arith.constant dense<0.000000e+00> : vector<256x128xf32>
    %11 = tpu.matmul %9, %10, %cst_8 {dimension_numbers = #tpu.dot_dimension_numbers<[1], [0], [0], [1], [0, 0, 1, 1], [], []>} : vector<256x128xbf16>, vector<128x128xbf16>, vector<256x128xf32> -> vector<256x128xf32>
    %12 = vector.shape_cast %11 : vector<256x128xf32> to vector<32x8x128xf32>
    %cst_9 = arith.constant dense<0xFF800000> : vector<32x128xf32>
    %13 = vector.multi_reduction <maximumf>, %12, %cst_9 [1] : vector<32x8x128xf32> to vector<32x128xf32>
    %14 = vector.shape_cast %13 : vector<32x128xf32> to vector<32x1x128xf32>
    %15 = vector.broadcast %14 : vector<32x1x128xf32> to vector<32x8x128xf32>
    %16 = arith.subf %12, %15 : vector<32x8x128xf32>
    %17 = math.exp %16 : vector<32x8x128xf32>
    %cst_10 = arith.constant dense<0.000000e+00> : vector<32x128xf32>
    %18 = vector.multi_reduction <add>, %17, %cst_10 [1] : vector<32x8x128xf32> to vector<32x128xf32>
    %19 = vector.shape_cast %18 : vector<32x128xf32> to vector<32x1x128xf32>
    %20 = tpu.reciprocal %19 {approx = true} : vector<32x1x128xf32> -> vector<32x1x128xf32>
    %21 = vector.broadcast %20 : vector<32x1x128xf32> to vector<32x8x128xf32>
    %22 = arith.mulf %17, %21 : vector<32x8x128xf32>
    %c0_11 = arith.constant 0 : index
    %c0_12 = arith.constant 0 : index
    %c0_13 = arith.constant 0 : index
    %23 = vector.load %arg6[%c0_11, %c0_12, %c0_13] : memref<32x8x128xf32, #tpu.memory_space<vmem>>, vector<32x8x128xf32>
    tpu.vector_store %arg6[%c0_11, %c0_12, %c0_13], %22 {strides = array<i32>} : memref<32x8x128xf32, #tpu.memory_space<vmem>>, vector<32x8x128xf32>,
    %24 = arith.mulf %22, %0 : vector<32x8x128xf32>
    %cst_14 = arith.constant dense<0.000000e+00> : vector<32x128xf32>
    %25 = vector.multi_reduction <add>, %24, %cst_14 [1] : vector<32x8x128xf32> to vector<32x128xf32>
    %c0_15 = arith.constant 0 : index
    %c0_16 = arith.constant 0 : index
    %26 = vector.load %arg5[%c0_15, %c0_16] : memref<32x128xf32, #tpu.memory_space<vmem>>, vector<32x128xf32>
    tpu.vector_store %arg5[%c0_15, %c0_16], %25 {strides = array<i32>} : memref<32x128xf32, #tpu.memory_space<vmem>>, vector<32x128xf32>,
    return
  }
  func.func @transform_0(%arg0: i32) -> (i32, i32, i32) {
    %c0_i32 = arith.constant 0 : i32
    %c0_i32_0 = arith.constant 0 : i32
    %c0_i32_1 = arith.constant 0 : i32
    return %arg0, %c0_i32, %c0_i32_0 : i32, i32, i32
  }
  func.func @transform_1(%arg0: i32) -> (i32, i32) {
    %c0_i32 = arith.constant 0 : i32
    %c0_i32_0 = arith.constant 0 : i32
    %c0_i32_1 = arith.constant 0 : i32
    return %c0_i32, %c0_i32_0 : i32, i32
  }
  func.func @transform_2(%arg0: i32) -> (i32, i32) {
    %c0_i32 = arith.constant 0 : i32
    %c0_i32_0 = arith.constant 0 : i32
    %c0_i32_1 = arith.constant 0 : i32
    return %c0_i32, %c0_i32_0 : i32, i32
  }
  func.func @transform_3(%arg0: i32) -> (i32, i32) {
    %c0_i32 = arith.constant 0 : i32
    %c0_i32_0 = arith.constant 0 : i32
    %c0_i32_1 = arith.constant 0 : i32
    return %c0_i32, %c0_i32_0 : i32, i32
  }
  func.func @transform_4(%arg0: i32) -> (i32, i32) {
    %c0_i32 = arith.constant 0 : i32
    %c0_i32_0 = arith.constant 0 : i32
    return %arg0, %c0_i32 : i32, i32
  }
  func.func @transform_5(%arg0: i32) -> (i32, i32, i32) {
    %c0_i32 = arith.constant 0 : i32
    %c0_i32_0 = arith.constant 0 : i32
    %c0_i32_1 = arith.constant 0 : i32
    return %arg0, %c0_i32, %c0_i32_0 : i32, i32, i32
  }
}

</mosaic_0001>

<bundles_post_ra>
// kernel: tpu_custom_call.1
= control target key start
LH: loop header
LB: loop body
LE: loop exit
PB: predicated region body
PF: predicated region fallthrough
CT: control target
= control target key end

     0   :  { %11 = vsyncpa [#allocation3], 0  ;;  %s2841_s0 = inlined_call_operand.hbm [shape: f32[32,8,128], index: 0, kind: input, shape index: {}]   ;;  %s2842_s1 = inlined_call_operand.hbm [shape: bf16[128,128], index: 1, kind: input, shape index: {}]   ;;  %s2843_s2 = inlined_call_operand.vmem [shape: f32[1,128], index: 2, kind: input, shape index: {}]   ;;  %s2844_s3 = inlined_call_operand.hbm [shape: bf16[128,128], index: 3, kind: input, shape index: {}]   ;;  %s2845_s4 = inlined_call_operand.hbm [shape: f32[32,128], index: 4, kind: output, shape index: {0}]   ;;  %s2846_s5 = inlined_call_operand.hbm [shape: f32[32,8,128], index: 5, kind: output, shape index: {1}]  }
   0x1   :  { %12 = vsyncpa [#allocation6], 0 }
   0x2   :  { %13 = vsyncpa [#allocation4], 0 }
   0x3   :  { %14 = vsyncpa [#allocation10], 0  ;;  %s2053_s18 = smov [#allocation5]   ;;  %s1935_s22 = scalar_lea.hbm %s2842_s1, 1024 }
   0x4   :  { %s32_s19 = sshll.u32 %s2053_s18, 4  ;;  %p1936_p0 = scmp.ne.s32.totalorder %s2842_s1, %s1935_s22  ;;  %s33_s19 = int_to_ptr.vmem [resolvable:$true] %s32_s19 }
   0x5   :  { %p1939_p1 = scmp.lt.u32.totalorder %s1935_s22, %s2842_s1 }
   0x7   :  { %p1941_p2 = pnand %p1939_p1, %p1936_p0 }
   0x9   :  { %1944 = shalt.err (!%p1941_p2)
}
   0xa   :  { %s1945_s27 = scalar_lea.vmem %s33_s19, 1024  ;;  %p1950_p4 = scmp.lt.s32.totalorder %s33_s19, %s33_s19 }
   0xb   :  { %p1946_p3 = scmp.ne.s32.totalorder %s33_s19, %s1945_s27  ;;  %p1951_p5 = scmp.lt.s32.totalorder %s1945_s27, %s1945_s27 }
   0xd   :  { %p1952_p6 = por %p1951_p5, %p1950_p4 }
   0xf   :  { %p1953_p7 = pnand %p1952_p6, %p1946_p3 }
  0x11   :  { %1956 = shalt.err (!%p1953_p7)
}
  0x12   :  { %s2054_s28 = smov 64   ;;  %s2055_s29 = smov 4  }
  0x13   :  { %38 = dma.hbm_to_vmem [thread:$0]  %s2842_s1, 1024, %s33_s19, [#allocation6], %s2054_s28, %s2054_s28, %s2055_s29  }
  0x14   :  { %s2056_s7 = smov [#allocation2]   ;;  %s1957_s11 = scalar_lea.hbm %s2841_s0, 4096 }
  0x15   :  { %s20_s8 = sshll.u32 %s2056_s7, 4  ;;  %p1958_p8 = scmp.ne.s32.totalorder %s2841_s0, %s1957_s11  ;;  %s21_s8 = int_to_ptr.vmem [resolvable:$true] %s20_s8 }
  0x16   :  { %p1961_p9 = scmp.lt.u32.totalorder %s1957_s11, %s2841_s0 }
  0x18   :  { %p1963_p10 = pnand %p1961_p9, %p1958_p8 }
  0x1a   :  { %1966 = shalt.err (!%p1963_p10)
}
  0x1b   :  { %s1967_s16 = scalar_lea.vmem %s21_s8, 4096  ;;  %p1972_p12 = scmp.lt.s32.totalorder %s21_s8, %s21_s8 }
  0x1c   :  { %p1968_p11 = scmp.ne.s32.totalorder %s21_s8, %s1967_s16  ;;  %p1973_p13 = scmp.lt.s32.totalorder %s1967_s16, %s1967_s16 }
  0x1e   :  { %p1974_p0 = por %p1973_p13, %p1972_p12 }
  0x20   :  { %p1975_p1 = pnand %p1974_p0, %p1968_p11 }
  0x22   :  { %1978 = shalt.err (!%p1975_p1)
}
  0x23   :  { %s2057_s1 = smov 128   ;;  %s2058_s17 = smov 8  }
  0x24   :  { %26 = dma.hbm_to_vmem [thread:$0]  %s2841_s0, 4096, %s21_s8, [#allocation3], %s2057_s1, %s2057_s1, %s2058_s17  }
  0x25   :  { %s2059_s20 = smov [#allocation7]   ;;  %s1979_s24 = scalar_lea.hbm %s2844_s3, 1024 }
  0x26   :  { %s46_s21 = sshll.u32 %s2059_s20, 4  ;;  %p1980_p2 = scmp.ne.s32.totalorder %s2844_s3, %s1979_s24  ;;  %s47_s21 = int_to_ptr.vmem [resolvable:$true] %s46_s21 }
  0x27   :  { %p1983_p3 = scmp.lt.u32.totalorder %s1979_s24, %s2844_s3 }
  0x29   :  { %p1985_p4 = pnand %p1983_p3, %p1980_p2 }
  0x2b   :  { %1988 = shalt.err (!%p1985_p4)
}
  0x2c   :  { %s1989_s6 = scalar_lea.vmem %s47_s21, 1024  ;;  %p1994_p6 = scmp.lt.s32.totalorder %s47_s21, %s47_s21 }
  0x2d   :  { %p1990_p5 = scmp.ne.s32.totalorder %s47_s21, %s1989_s6  ;;  %p1995_p7 = scmp.lt.s32.totalorder %s1989_s6, %s1989_s6 }
  0x2f   :  { %p1996_p8 = por %p1995_p7, %p1994_p6 }
  0x31   :  { %p1997_p9 = pnand %p1996_p8, %p1990_p5 }
  0x33   :  { %2000 = shalt.err (!%p1997_p9)
}
  0x34   :  { %52 = dma.hbm_to_vmem [thread:$0]  %s2844_s3, 1024, %s47_s21, [#allocation6], %s2054_s28, %s2054_s28, %s2055_s29  }
  0x35   :  { %2045 = dma.done.wait [#allocation3], 4096  }
  0x36   :  { %2046 = vsyncadd [#allocation3], 4294963200 }
  0x37   :  { %2047 = dma.done.wait [#allocation6], 2048  }
  0x38   :  { %2048 = vsyncadd [#allocation6], 4294965248  ;;  %v1695_v0 = vld [vmem:[#allocation5] sm:$0xff]   ;;  %v1696_v1 = vld [vmem:[#allocation5 + $0x8] sm:$0xff]  }
  0x39   :  { %1590 = vmatprep.subr.bf16.mxu0 %v1695_v0  ;;  %v1697_v2 = vld [vmem:[#allocation5 + $0x10] sm:$0xff]   ;;  %v1698_v3 = vld [vmem:[#allocation5 + $0x18] sm:$0xff]   ;;  %v63_v4 = vld [vmem:[#allocation2] sm:$0xff] }
  0x3a   :  { %1591 = vmatpush3.bf16.msra.mxu0 %v1695_v0  ;;  %v64_v5 = vld [vmem:[#allocation2 + $0x8] sm:$0xff]  ;;  %v1699_v7 = vld [vmem:[#allocation5 + $0x20] sm:$0xff]   ;;  %v1701_v9 = vld [vmem:[#allocation5 + $0x30] sm:$0xff]  }
  0x3b   :  { %1592 = vmatprep.subr.bf16.mxu0 %v1696_v1  ;;  %v95_v6 = vpack.c.bf16 %v64_v5, %v63_v4  ;;  %v1700_v8 = vld [vmem:[#allocation5 + $0x28] sm:$0xff]   ;;  %v1703_v10 = vld [vmem:[#allocation7] sm:$0xff]   ;;  %v1705_v12 = vld [vmem:[#allocation7 + $0x10] sm:$0xff]  }
  0x3c   :  { %v1704_v11 = vld [vmem:[#allocation7 + $0x8] sm:$0xff]   ;;  %1638 = vmatprep.subr.bf16.mxu1 %v1703_v10  ;;  %v1702_v13 = vld [vmem:[#allocation5 + $0x38] sm:$0xff]   ;;  %v65_v14 = vld [vmem:[#allocation2 + $0x10] sm:$0xff] }
  0x3d   :  { %1606 = vmatprep.mubr.bf16.mxu0 %v95_v6  ;;  %1639 = vmatpush3.bf16.msra.mxu1 %v1703_v10  ;;  %v66_v15 = vld [vmem:[#allocation2 + $0x18] sm:$0xff]  ;;  %v67_v16 = vld [vmem:[#allocation2 + $0x20] sm:$0xff]  ;;  %v68_v17 = vld [vmem:[#allocation2 + $0x28] sm:$0xff] }
  0x3e   :  { %1593 = vmatpush3.bf16.msra.mxu0 %v1696_v1  ;;  %1640 = vmatprep.subr.bf16.mxu1 %v1704_v11  ;;  %v96_v18 = vpack.c.bf16 %v66_v15, %v65_v14  ;;  %v97_v19 = vpack.c.bf16 %v68_v17, %v67_v16  ;;  %v69_v20 = vld [vmem:[#allocation2 + $0x30] sm:$0xff]  ;;  %v70_v21 = vld [vmem:[#allocation2 + $0x38] sm:$0xff]  ;;  %v71_v22 = vld [vmem:[#allocation2 + $0x40] sm:$0xff] }
  0x3f   :  { %1594 = vmatprep.subr.bf16.mxu0 %v1697_v2  ;;  %v72_v23 = vld [vmem:[#allocation2 + $0x48] sm:$0xff]  ;;  %v98_v24 = vpack.c.bf16 %v70_v21, %v69_v20  ;;  %v73_v26 = vld [vmem:[#allocation2 + $0x50] sm:$0xff]  ;;  %v74_v27 = vld [vmem:[#allocation2 + $0x58] sm:$0xff] }
  0x40   :  { %v99_v25 = vpack.c.bf16 %v72_v23, %v71_v22  ;;  %v75_v28 = vld [vmem:[#allocation2 + $0x60] sm:$0xff]  ;;  %v76_v29 = vld [vmem:[#allocation2 + $0x68] sm:$0xff]  ;;  %v100_v30 = vpack.c.bf16 %v74_v27, %v73_v26  ;;  %v77_v32 = vld [vmem:[#allocation2 + $0x70] sm:$0xff] }
  0x41   :  { %1641 = vmatpush3.bf16.msra.mxu1 %v1704_v11  ;;  %v101_v31 = vpack.c.bf16 %v76_v29, %v75_v28  ;;  %v78_v33 = vld [vmem:[#allocation2 + $0x78] sm:$0xff]  ;;  %v79_v34 = vld [vmem:[#allocation2 + $0x80] sm:$0xff]  ;;  %v80_v35 = vld [vmem:[#allocation2 + $0x88] sm:$0xff] }
  0x42   :  { %1595 = vmatpush3.bf16.msra.mxu0 %v1697_v2  ;;  %1642 = vmatprep.subr.bf16.mxu1 %v1705_v12  ;;  %v102_v36 = vpack.c.bf16 %v78_v33, %v77_v32  ;;  %v103_v37 = vpack.c.bf16 %v80_v35, %v79_v34  ;;  %v81_v38 = vld [vmem:[#allocation2 + $0x90] sm:$0xff]  ;;  %v82_v39 = vld [vmem:[#allocation2 + $0x98] sm:$0xff]  ;;  %v83_v40 = vld [vmem:[#allocation2 + $0xa0] sm:$0xff] }
  0x43   :  { %1596 = vmatprep.subr.bf16.mxu0 %v1698_v3  ;;  %v84_v41 = vld [vmem:[#allocation2 + $0xa8] sm:$0xff]  ;;  %v104_v42 = vpack.c.bf16 %v82_v39, %v81_v38  ;;  %v85_v44 = vld [vmem:[#allocation2 + $0xb0] sm:$0xff]  ;;  %v86_v45 = vld [vmem:[#allocation2 + $0xb8] sm:$0xff] }
  0x44   :  { %v105_v43 = vpack.c.bf16 %v84_v41, %v83_v40  ;;  %v87_v46 = vld [vmem:[#allocation2 + $0xc0] sm:$0xff]  ;;  %v88_v47 = vld [vmem:[#allocation2 + $0xc8] sm:$0xff]  ;;  %v106_v48 = vpack.c.bf16 %v86_v45, %v85_v44  ;;  %v89_v50 = vld [vmem:[#allocation2 + $0xd0] sm:$0xff] }
  0x45   :  { %1643 = vmatpush3.bf16.msra.mxu1 %v1705_v12  ;;  %v107_v49 = vpack.c.bf16 %v88_v47, %v87_v46  ;;  %v90_v51 = vld [vmem:[#allocation2 + $0xd8] sm:$0xff]  ;;  %v91_v52 = vld [vmem:[#allocation2 + $0xe0] sm:$0xff]  ;;  %v92_v53 = vld [vmem:[#allocation2 + $0xe8] sm:$0xff] }
  0x46   :  { %1597 = vmatpush3.bf16.msra.mxu0 %v1698_v3  ;;  %v108_v54 = vpack.c.bf16 %v90_v51, %v89_v50  ;;  %v109_v55 = vpack.c.bf16 %v92_v53, %v91_v52  ;;  %v93_v56 = vld [vmem:[#allocation2 + $0xf0] sm:$0xff]  ;;  %v94_v57 = vld [vmem:[#allocation2 + $0xf8] sm:$0xff]  ;;  %v1707_v60 = vld [vmem:[#allocation7 + $0x20] sm:$0xff]  }
  0x47   :  { %1598 = vmatprep.subr.bf16.mxu0 %v1699_v7  ;;  %v110_v58 = vpack.c.bf16 %v94_v57, %v93_v56  ;;  %v1706_v59 = vld [vmem:[#allocation7 + $0x18] sm:$0xff]   ;;  %v1708_v61 = vld [vmem:[#allocation7 + $0x28] sm:$0xff]   ;;  %v1709_v62 = vld [vmem:[#allocation7 + $0x30] sm:$0xff]  }
  0x48   :  { %1644 = vmatprep.subr.bf16.mxu1 %v1706_v59  ;;  %v1710_v63 = vld [vmem:[#allocation7 + $0x38] sm:$0xff]   ;;  %v2140_v0 = vld [vmem:[%s2843_s2] ss:$0 sm:$0xff]  ;;  %s2060_s2 = smov [#allocation9]  }
  0x49   :  { %1645 = vmatpush3.bf16.msra.mxu1 %v1706_v59  ;;  %s1508_s29 = sshll.u32 %s2060_s2, 4  ;;  %s2682_s29 = int_to_ptr.vmem [resolvable:$true] %s1508_s29 }
  0x4a   :  { %1599 = vmatpush3.bf16.msra.mxu0 %v1699_v7  ;;  %1646 = vmatprep.subr.bf16.mxu1 %v1707_v60  ;;  %s2001_s8 = scalar_lea.vmem %s2682_s29, 4096  ;;  %p2006_p11 = scmp.lt.s32.totalorder %s2682_s29, %s2682_s29 }
  0x4b   :  { %1600 = vmatprep.subr.bf16.mxu0 %v1700_v8  ;;  %p2002_p10 = scmp.ne.s32.totalorder %s2682_s29, %s2001_s8  ;;  %p2007_p12 = scmp.lt.s32.totalorder %s2001_s8, %s2001_s8 }
  0x4d   :  { %1647 = vmatpush3.bf16.msra.mxu1 %v1707_v60  ;;  %p2008_p13 = por %p2007_p12, %p2006_p11 }
  0x4e   :  { %1601 = vmatpush3.bf16.msra.mxu0 %v1700_v8  ;;  %1648 = vmatprep.subr.bf16.mxu1 %v1708_v61 }
  0x4f   :  { %1602 = vmatprep.subr.bf16.mxu0 %v1701_v9  ;;  %p2009_p0 = pnand %p2008_p13, %p2002_p10 }
  0x51   :  { %1649 = vmatpush3.bf16.msra.mxu1 %v1708_v61 }
  0x52   :  { %1603 = vmatpush3.bf16.msra.mxu0 %v1701_v9  ;;  %1650 = vmatprep.subr.bf16.mxu1 %v1709_v62 }
  0x53   :  { %1604 = vmatprep.subr.bf16.mxu0 %v1702_v13 }
  0x55   :  { %1651 = vmatpush3.bf16.msra.mxu1 %v1709_v62 }
  0x56   :  { %1605 = vmatpush3.bf16.msra.mxu0 %v1702_v13  ;;  %1652 = vmatprep.subr.bf16.mxu1 %v1710_v63 }
  0x59   :  { %1607 = vmatmul.mubr.bf16.vlgmr.msra.gmra.mrb[0].mxu0 %v96_v18  ;;  %1653 = vmatpush3.bf16.msra.mxu1 %v1710_v63 }
  0x5a   :  { %1610 = vmatprep.mubr.bf16.mxu0 %v97_v19 }
  0x61   :  { %1611 = vmatmul.mubr.bf16.gmra.mrb[4].mxu0 %v98_v24 }
  0x62   :  { %1614 = vmatprep.mubr.bf16.mxu0 %v99_v25 }
  0x69   :  { %1615 = vmatmul.mubr.bf16.gmra.mrb[8].mxu0 %v100_v30 }
  0x6a   :  { %1618 = vmatprep.mubr.bf16.mxu0 %v101_v31 }
  0x71   :  { %1619 = vmatmul.mubr.bf16.gmra.mrb[12].mxu0 %v102_v36 }
  0x72   :  { %1622 = vmatprep.mubr.bf16.mxu0 %v103_v37 }
  0x79   :  { %1623 = vmatmul.mubr.bf16.gmra.mrb[16].mxu0 %v104_v42 }
  0x7a   :  { %1626 = vmatprep.mubr.bf16.mxu0 %v105_v43 }
  0x81   :  { %1627 = vmatmul.mubr.bf16.gmra.mrb[20].mxu0 %v106_v48 }
  0x82   :  { %1630 = vmatprep.mubr.bf16.mxu0 %v107_v49 }
  0x89   :  { %1631 = vmatmul.mubr.bf16.gmra.mrb[24].mxu0 %v108_v54 }
  0x8a   :  { %1634 = vmatprep.mubr.bf16.mxu0 %v109_v55 }
  0x91   :  { %1635 = vmatmul.mubr.bf16.gmra.mrb[28].mxu0 %v110_v58 }
 0x12c   :  { %v1608_v1 = vpop.f32.mrb[0].mxu0 }
 0x12d   :  { %v225_v2 = vadd.f32 %v1608_v1, %v2140_v0  ;;  %v216_v3 = vpop.f32.mrb[1].mxu0 }
 0x12e   :  { %v217_v4 = vadd.f32 %v2140_v0, %v216_v3  ;;  %v1609_v5 = vpop.f32.mrb[2].mxu0 }
 0x12f   :  { %1711 = vtanh.f32 %v225_v2  ;;  %v228_v6 = vadd.f32 %v1609_v5, %v2140_v0  ;;  %v219_v7 = vpop.f32.mrb[3].mxu0 }
 0x130   :  { %1713 = vtanh.f32 %v217_v4  ;;  %v220_v8 = vadd.f32 %v2140_v0, %v219_v7 }
 0x131   :  { %1715 = vtanh.f32 %v228_v6 }
 0x132   :  { %1717 = vtanh.f32 %v220_v8 }
 0x134   :  { %v1612_v9 = vpop.f32.mrb[4].mxu0 }
 0x135   :  { %v241_v10 = vadd.f32 %v1612_v9, %v2140_v0  ;;  %v232_v11 = vpop.f32.mrb[5].mxu0 }
 0x136   :  { %v233_v12 = vadd.f32 %v2140_v0, %v232_v11  ;;  %v1613_v13 = vpop.f32.mrb[6].mxu0 }
 0x137   :  { %1719 = vtanh.f32 %v241_v10  ;;  %v244_v14 = vadd.f32 %v1613_v13, %v2140_v0  ;;  %v235_v15 = vpop.f32.mrb[7].mxu0 }
 0x138   :  { %1721 = vtanh.f32 %v233_v12  ;;  %v236_v16 = vadd.f32 %v2140_v0, %v235_v15 }
 0x139   :  { %v1712_v17 = vpop.eup %1711  ;;  %1723 = vtanh.f32 %v244_v14 }
 0x13a   :  { %v1714_v18 = vpop.eup %1713  ;;  %1725 = vtanh.f32 %v236_v16 }
 0x13b   :  { %v1716_v19 = vpop.eup %1715 }
 0x13c   :  { %v1718_v20 = vpop.eup %1717  ;;  %v1616_v21 = vpop.f32.mrb[8].mxu0  ;;  %v376_v22 = vpack.c.bf16 %v1716_v19, %v1712_v17 }
 0x13d   :  { %v257_v23 = vadd.f32 %v1616_v21, %v2140_v0  ;;  %v248_v24 = vpop.f32.mrb[9].mxu0  ;;  %v375_v25 = vpack.c.bf16 %v1718_v20, %v1714_v18 }
 0x13e   :  { %v249_v26 = vadd.f32 %v2140_v0, %v248_v24  ;;  %v1617_v27 = vpop.f32.mrb[10].mxu0 }
 0x13f   :  { %1727 = vtanh.f32 %v257_v23  ;;  %v260_v28 = vadd.f32 %v1617_v27, %v2140_v0  ;;  %v251_v29 = vpop.f32.mrb[11].mxu0  ;;  %1654 = vmatprep.mubr.bf16.mxu1 %v375_v25 }
 0x140   :  { %1729 = vtanh.f32 %v249_v26  ;;  %v252_v30 = vadd.f32 %v2140_v0, %v251_v29  ;;  %1655 = vmatmul.mubr.bf16.vlgmr.msra.gmra.mrb[0].mxu1 %v376_v22 }
 0x141   :  { %v1720_v31 = vpop.eup %1719  ;;  %1731 = vtanh.f32 %v260_v28 }
 0x142   :  { %v1722_v32 = vpop.eup %1721  ;;  %1733 = vtanh.f32 %v252_v30 }
 0x143   :  { %v1724_v33 = vpop.eup %1723 }
 0x144   :  { %v1726_v34 = vpop.eup %1725  ;;  %v1620_v35 = vpop.f32.mrb[12].mxu0  ;;  %v378_v36 = vpack.c.bf16 %v1724_v33, %v1720_v31 }
 0x145   :  { %v273_v37 = vadd.f32 %v1620_v35, %v2140_v0  ;;  %v264_v38 = vpop.f32.mrb[13].mxu0  ;;  %v377_v39 = vpack.c.bf16 %v1726_v34, %v1722_v32 }
 0x146   :  { %v265_v40 = vadd.f32 %v2140_v0, %v264_v38  ;;  %v1621_v41 = vpop.f32.mrb[14].mxu0 }
 0x147   :  { %1735 = vtanh.f32 %v273_v37  ;;  %v276_v42 = vadd.f32 %v1621_v41, %v2140_v0  ;;  %v267_v43 = vpop.f32.mrb[15].mxu0  ;;  %1658 = vmatprep.mubr.bf16.mxu1 %v377_v39 }
 0x148   :  { %1737 = vtanh.f32 %v265_v40  ;;  %v268_v44 = vadd.f32 %v2140_v0, %v267_v43  ;;  %1659 = vmatmul.mubr.bf16.gmra.mrb[4].mxu1 %v378_v36 }
 0x149   :  { %v1728_v45 = vpop.eup %1727  ;;  %1739 = vtanh.f32 %v276_v42 }
 0x14a   :  { %v1730_v46 = vpop.eup %1729  ;;  %1741 = vtanh.f32 %v268_v44 }
 0x14b   :  { %v1732_v47 = vpop.eup %1731 }
 0x14c   :  { %v1734_v48 = vpop.eup %1733  ;;  %v1624_v49 = vpop.f32.mrb[16].mxu0  ;;  %v380_v50 = vpack.c.bf16 %v1732_v47, %v1728_v45 }
 0x14d   :  { %v289_v51 = vadd.f32 %v1624_v49, %v2140_v0  ;;  %v280_v52 = vpop.f32.mrb[17].mxu0  ;;  %v379_v53 = vpack.c.bf16 %v1734_v48, %v1730_v46 }
 0x14e   :  { %v281_v54 = vadd.f32 %v2140_v0, %v280_v52  ;;  %v1625_v55 = vpop.f32.mrb[18].mxu0 }
 0x14f   :  { %1743 = vtanh.f32 %v289_v51  ;;  %v292_v56 = vadd.f32 %v1625_v55, %v2140_v0  ;;  %v283_v57 = vpop.f32.mrb[19].mxu0  ;;  %1662 = vmatprep.mubr.bf16.mxu1 %v379_v53 }
 0x150   :  { %1745 = vtanh.f32 %v281_v54  ;;  %v284_v58 = vadd.f32 %v2140_v0, %v283_v57  ;;  %1663 = vmatmul.mubr.bf16.gmra.mrb[8].mxu1 %v380_v50 }
 0x151   :  { %v1736_v59 = vpop.eup %1735  ;;  %1747 = vtanh.f32 %v292_v56 }
 0x152   :  { %v1738_v60 = vpop.eup %1737  ;;  %1749 = vtanh.f32 %v284_v58 }
 0x153   :  { %v1740_v61 = vpop.eup %1739 }
 0x154   :  { %v1742_v62 = vpop.eup %1741  ;;  %v1628_v63 = vpop.f32.mrb[20].mxu0  ;;  %v382_v1 = vpack.c.bf16 %v1740_v61, %v1736_v59 }
 0x155   :  { %v305_v2 = vadd.f32 %v1628_v63, %v2140_v0  ;;  %v296_v3 = vpop.f32.mrb[21].mxu0  ;;  %v381_v4 = vpack.c.bf16 %v1742_v62, %v1738_v60 }
 0x156   :  { %v297_v5 = vadd.f32 %v2140_v0, %v296_v3  ;;  %v1629_v6 = vpop.f32.mrb[22].mxu0 }
 0x157   :  { %1751 = vtanh.f32 %v305_v2  ;;  %v308_v7 = vadd.f32 %v1629_v6, %v2140_v0  ;;  %v299_v8 = vpop.f32.mrb[23].mxu0  ;;  %1666 = vmatprep.mubr.bf16.mxu1 %v381_v4 }
 0x158   :  { %1753 = vtanh.f32 %v297_v5  ;;  %v300_v9 = vadd.f32 %v2140_v0, %v299_v8  ;;  %1667 = vmatmul.mubr.bf16.gmra.mrb[12].mxu1 %v382_v1 }
 0x159   :  { %v1744_v10 = vpop.eup %1743  ;;  %1755 = vtanh.f32 %v308_v7 }
 0x15a   :  { %v1746_v11 = vpop.eup %1745  ;;  %1757 = vtanh.f32 %v300_v9 }
 0x15b   :  { %v1748_v12 = vpop.eup %1747 }
 0x15c   :  { %v1750_v13 = vpop.eup %1749  ;;  %v1632_v14 = vpop.f32.mrb[24].mxu0  ;;  %v384_v15 = vpack.c.bf16 %v1748_v12, %v1744_v10 }
 0x15d   :  { %v321_v16 = vadd.f32 %v1632_v14, %v2140_v0  ;;  %v312_v17 = vpop.f32.mrb[25].mxu0  ;;  %v383_v18 = vpack.c.bf16 %v1750_v13, %v1746_v11 }
 0x15e   :  { %v313_v19 = vadd.f32 %v2140_v0, %v312_v17  ;;  %v1633_v20 = vpop.f32.mrb[26].mxu0 }
 0x15f   :  { %1759 = vtanh.f32 %v321_v16  ;;  %v324_v21 = vadd.f32 %v1633_v20, %v2140_v0  ;;  %v315_v22 = vpop.f32.mrb[27].mxu0  ;;  %1670 = vmatprep.mubr.bf16.mxu1 %v383_v18 }
 0x160   :  { %1761 = vtanh.f32 %v313_v19  ;;  %v316_v23 = vadd.f32 %v2140_v0, %v315_v22  ;;  %1671 = vmatmul.mubr.bf16.gmra.mrb[16].mxu1 %v384_v15 }
 0x161   :  { %v1752_v24 = vpop.eup %1751  ;;  %1763 = vtanh.f32 %v324_v21 }
 0x162   :  { %v1754_v25 = vpop.eup %1753  ;;  %1765 = vtanh.f32 %v316_v23 }
 0x163   :  { %v1756_v26 = vpop.eup %1755 }
 0x164   :  { %v1758_v27 = vpop.eup %1757  ;;  %v1636_v28 = vpop.f32.mrb[28].mxu0  ;;  %v386_v29 = vpack.c.bf16 %v1756_v26, %v1752_v24 }
 0x165   :  { %v337_v30 = vadd.f32 %v1636_v28, %v2140_v0  ;;  %v328_v31 = vpop.f32.mrb[29].mxu0  ;;  %v385_v32 = vpack.c.bf16 %v1758_v27, %v1754_v25 }
 0x166   :  { %v329_v33 = vadd.f32 %v2140_v0, %v328_v31  ;;  %v1637_v34 = vpop.f32.mrb[30].mxu0 }
 0x167   :  { %1767 = vtanh.f32 %v337_v30  ;;  %v340_v35 = vadd.f32 %v1637_v34, %v2140_v0  ;;  %v331_v36 = vpop.f32.mrb[31].mxu0  ;;  %1674 = vmatprep.mubr.bf16.mxu1 %v385_v32 }
 0x168   :  { %1769 = vtanh.f32 %v329_v33  ;;  %v332_v37 = vadd.f32 %v2140_v0, %v331_v36  ;;  %1675 = vmatmul.mubr.bf16.gmra.mrb[20].mxu1 %v386_v29 }
 0x169   :  { %v1760_v38 = vpop.eup %1759  ;;  %1771 = vtanh.f32 %v340_v35 }
 0x16a   :  { %v1762_v39 = vpop.eup %1761  ;;  %1773 = vtanh.f32 %v332_v37 }
 0x16b   :  { %v1764_v40 = vpop.eup %1763 }
 0x16c   :  { %v1766_v41 = vpop.eup %1765  ;;  %v388_v42 = vpack.c.bf16 %v1764_v40, %v1760_v38 }
 0x16d   :  { %v387_v43 = vpack.c.bf16 %v1766_v41, %v1762_v39 }
 0x16f   :  { %1678 = vmatprep.mubr.bf16.mxu1 %v387_v43 }
 0x170   :  { %1679 = vmatmul.mubr.bf16.gmra.mrb[24].mxu1 %v388_v42 }
 0x171   :  { %v1768_v44 = vpop.eup %1767 }
 0x172   :  { %v1770_v45 = vpop.eup %1769 }
 0x173   :  { %v1772_v46 = vpop.eup %1771 }
 0x174   :  { %v1774_v47 = vpop.eup %1773  ;;  %v390_v48 = vpack.c.bf16 %v1772_v46, %v1768_v44 }
 0x175   :  { %v389_v49 = vpack.c.bf16 %v1774_v47, %v1770_v45 }
 0x177   :  { %1682 = vmatprep.mubr.bf16.mxu1 %v389_v49 }
 0x178   :  { %1683 = vmatmul.mubr.bf16.gmra.mrb[28].mxu1 %v390_v48 }
 0x213   :  { %v1656_v0 = vpop.f32.mrb[0].mxu1 }
 0x214   :  { %v628_v50 = vrot.slane %v1656_v0, 4  ;;  %v489_v51 = vpop.f32.mrb[1].mxu1 }
 0x215   :  { %v616_v52 = vrot.slane %v489_v51, 4  ;;  %v1657_v53 = vpop.f32.mrb[2].mxu1 }
 0x216   :  { %v629_v54 = vmax.f32 %v1656_v0, %v628_v50  ;;  %v634_v55 = vrot.slane %v1657_v53, 4  ;;  %v492_v56 = vpop.f32.mrb[3].mxu1 }
 0x217   :  { %v617_v57 = vmax.f32 %v489_v51, %v616_v52  ;;  %v622_v58 = vrot.slane %v492_v56, 4 }
 0x218   :  { %v630_v59 = vrot.slane %v629_v54, 2  ;;  %v635_v60 = vmax.f32 %v1657_v53, %v634_v55 }
 0x219   :  { %v618_v61 = vrot.slane %v617_v57, 2  ;;  %v623_v62 = vmax.f32 %v492_v56, %v622_v58 }
 0x21a   :  { %v631_v63 = vmax.f32 %v629_v54, %v630_v59  ;;  %v636_v1 = vrot.slane %v635_v60, 2 }
 0x21b   :  { %v619_v2 = vmax.f32 %v617_v57, %v618_v61  ;;  %v624_v3 = vrot.slane %v623_v62, 2  ;;  %v1660_v4 = vpop.f32.mrb[4].mxu1 }
 0x21c   :  { %v632_v5 = vrot.slane %v631_v63, 1  ;;  %v637_v6 = vmax.f32 %v635_v60, %v636_v1  ;;  %v652_v7 = vrot.slane %v1660_v4, 4  ;;  %v505_v8 = vpop.f32.mrb[5].mxu1 }
 0x21d   :  { %v620_v9 = vrot.slane %v619_v2, 1  ;;  %v625_v10 = vmax.f32 %v623_v62, %v624_v3  ;;  %v640_v11 = vrot.slane %v505_v8, 4  ;;  %v2174_v12 = vpop.f32.mrb[6].mxu1 }
 0x21e   :  { %v633_v13 = vmax.f32 %v631_v63, %v632_v5  ;;  %v638_v14 = vrot.slane %v637_v6, 1  ;;  %v653_v15 = vmax.f32 %v1660_v4, %v652_v7  ;;  %v658_v16 = vrot.slane %v2174_v12, 4  ;;  %v2177_v17 = vpop.f32.mrb[7].mxu1 }
 0x21f   :  { %v621_v18 = vmax.f32 %v619_v2, %v620_v9  ;;  %v626_v19 = vrot.slane %v625_v10, 1  ;;  %v641_v20 = vmax.f32 %v505_v8, %v640_v11  ;;  %v646_v21 = vrot.slane %v2177_v17, 4 }
 0x220   :  { %v810_v22 = vsub.f32 %v1656_v0, %v633_v13  ;;  %v639_v23 = vmax.f32 %v637_v6, %v638_v14  ;;  %v654_v24 = vrot.slane %v653_v15, 2  ;;  %v659_v25 = vmax.f32 %v2174_v12, %v658_v16 }
 0x221   :  { %v808_v26 = vsub.f32 %v489_v51, %v621_v18  ;;  %v627_v27 = vmax.f32 %v625_v10, %v626_v19  ;;  %v642_v28 = vrot.slane %v641_v20, 2  ;;  %v647_v29 = vmax.f32 %v2177_v17, %v646_v21 }
 0x222   :  { %v844_v30 = vmul.f32 1.442695, %v810_v22  ;;  %v811_v31 = vsub.f32 %v1657_v53, %v639_v23  ;;  %v655_v32 = vmax.f32 %v653_v15, %v654_v24  ;;  %v660_v33 = vrot.slane %v659_v25, 2 }
 0x223   :  { %v840_v34 = vmul.f32 1.442695, %v808_v26  ;;  %v809_v35 = vsub.f32 %v492_v56, %v627_v27  ;;  %v643_v36 = vmax.f32 %v641_v20, %v642_v28  ;;  %v648_v37 = vrot.slane %v647_v29, 2  ;;  %v2182_v38 = vpop.f32.mrb[8].mxu1 }
 0x224   :  { %1775 = vpow2.f32 %v844_v30  ;;  %v846_v39 = vmul.f32 1.442695, %v811_v31  ;;  %v656_v40 = vrot.slane %v655_v32, 1  ;;  %v661_v41 = vmax.f32 %v659_v25, %v660_v33  ;;  %v2184_v42 = vpop.f32.mrb[9].mxu1 }
 0x225   :  { %1777 = vpow2.f32 %v840_v34  ;;  %v842_v43 = vmul.f32 1.442695, %v809_v35  ;;  %v644_v44 = vrot.slane %v643_v36, 1  ;;  %v649_v45 = vmax.f32 %v647_v29, %v648_v37  ;;  %v2186_v46 = vpop.f32.mrb[10].mxu1 }
 0x226   :  { %1779 = vpow2.f32 %v846_v39  ;;  %v657_v47 = vmax.f32 %v655_v32, %v656_v40  ;;  %v662_v48 = vrot.slane %v661_v41, 1  ;;  %v676_v49 = vrot.slane %v2182_v38, 4  ;;  %v2189_v0 = vpop.f32.mrb[11].mxu1 }
 0x227   :  { %1781 = vpow2.f32 %v842_v43  ;;  %v645_v50 = vmax.f32 %v643_v36, %v644_v44  ;;  %v650_v51 = vrot.slane %v649_v45, 1  ;;  %v664_v52 = vrot.slane %v2184_v42, 4 }
 0x228   :  { %v814_v53 = vsub.f32 %v1660_v4, %v657_v47  ;;  %v663_v54 = vmax.f32 %v661_v41, %v662_v48  ;;  %v677_v55 = vmax.f32 %v2182_v38, %v676_v49  ;;  %v682_v56 = vrot.slane %v2186_v46, 4 }
 0x229   :  { %v812_v57 = vsub.f32 %v505_v8, %v645_v50  ;;  %v651_v58 = vmax.f32 %v649_v45, %v650_v51  ;;  %v665_v59 = vmax.f32 %v2184_v42, %v664_v52  ;;  %v670_v60 = vrot.slane %v2189_v0, 4 }
 0x22a   :  { %v852_v61 = vmul.f32 1.442695, %v814_v53  ;;  %v815_v62 = vsub.f32 %v2174_v12, %v663_v54  ;;  %v678_v63 = vrot.slane %v677_v55, 2  ;;  %v683_v1 = vmax.f32 %v2186_v46, %v682_v56 }
 0x22b   :  { %v848_v2 = vmul.f32 1.442695, %v812_v57  ;;  %v813_v3 = vsub.f32 %v2177_v17, %v651_v58  ;;  %v666_v4 = vrot.slane %v665_v59, 2  ;;  %v671_v5 = vmax.f32 %v2189_v0, %v670_v60  ;;  %v2200_v6 = vpop.f32.mrb[12].mxu1 }
 0x22c   :  { %1783 = vpow2.f32 %v852_v61  ;;  %v854_v7 = vmul.f32 1.442695, %v815_v62  ;;  %v679_v8 = vmax.f32 %v677_v55, %v678_v63  ;;  %v684_v9 = vrot.slane %v683_v1, 2  ;;  %v2202_v10 = vpop.f32.mrb[13].mxu1 }
 0x22d   :  { %1785 = vpow2.f32 %v848_v2  ;;  %v850_v11 = vmul.f32 1.442695, %v813_v3  ;;  %v667_v12 = vmax.f32 %v665_v59, %v666_v4  ;;  %v672_v13 = vrot.slane %v671_v5, 2  ;;  %v2204_v14 = vpop.f32.mrb[14].mxu1 }
 0x22e   :  { %v2206_v15 = vpop.eup %1775  ;;  %1787 = vpow2.f32 %v854_v7  ;;  %v680_v16 = vrot.slane %v679_v8, 1  ;;  %v685_v17 = vmax.f32 %v683_v1, %v684_v9  ;;  %v700_v18 = vrot.slane %v2200_v6, 4  ;;  %v2209_v19 = vpop.f32.mrb[15].mxu1 }
 0x22f   :  { %v2211_v20 = vpop.eup %1777  ;;  %v916_v21 = vrot.slane %v2206_v15, 4  ;;  %1789 = vpow2.f32 %v850_v11  ;;  %v668_v22 = vrot.slane %v667_v12, 1  ;;  %v673_v23 = vmax.f32 %v671_v5, %v672_v13 }
 0x230   :  { %v2214_v24 = vpop.eup %1779  ;;  %v904_v25 = vrot.slane %v2211_v20, 4  ;;  %v681_v26 = vmax.f32 %v679_v8, %v680_v16  ;;  %v686_v27 = vrot.slane %v685_v17, 1  ;;  %v2218_v28 = vmax.f32 %v2200_v6, %v700_v18 }
 0x231   :  { %v2220_v29 = vpop.eup %1781  ;;  %v917_v30 = vadd.f32 %v2206_v15, %v916_v21  ;;  %v922_v31 = vrot.slane %v2214_v24, 4  ;;  %v669_v32 = vmax.f32 %v667_v12, %v668_v22  ;;  %v674_v33 = vrot.slane %v673_v23, 1 }
 0x232   :  { %v905_v34 = vadd.f32 %v2211_v20, %v904_v25  ;;  %v910_v35 = vrot.slane %v2220_v29, 4  ;;  %v818_v36 = vsub.f32 %v2182_v38, %v681_v26  ;;  %v687_v37 = vmax.f32 %v685_v17, %v686_v27 }
 0x233   :  { %v918_v39 = vrot.slane %v917_v30, 2  ;;  %v923_v40 = vadd.f32 %v2214_v24, %v922_v31  ;;  %v816_v41 = vsub.f32 %v2184_v42, %v669_v32  ;;  %v675_v43 = vmax.f32 %v673_v23, %v674_v33  ;;  %v2229_v44 = vpop.f32.mrb[16].mxu1 }
 0x234   :  { %v906_v45 = vrot.slane %v905_v34, 2  ;;  %v911_v47 = vadd.f32 %v2220_v29, %v910_v35  ;;  %v860_v48 = vmul.f32 1.442695, %v818_v36  ;;  %v819_v49 = vsub.f32 %v2186_v46, %v687_v37  ;;  %v2233_v50 = vpop.f32.mrb[17].mxu1 }
 0x235   :  { %v919_v51 = vadd.f32 %v918_v39, %v917_v30  ;;  %v924_v52 = vrot.slane %v923_v40, 2  ;;  %v856_v38 = vmul.f32 1.442695, %v816_v41  ;;  %v817_v53 = vsub.f32 %v2189_v0, %v675_v43  ;;  %v2236_v54 = vpop.f32.mrb[18].mxu1 }
 0x236   :  { %v2238_v55 = vpop.eup %1783  ;;  %v907_v42 = vadd.f32 %v906_v45, %v905_v34  ;;  %v912_v56 = vrot.slane %v911_v47, 2  ;;  %1791 = vpow2.f32 %v860_v48  ;;  %v862_v57 = vmul.f32 1.442695, %v819_v49  ;;  %v2240_v58 = vpop.f32.mrb[19].mxu1 }
 0x237   :  { %v2242_v59 = vpop.eup %1785  ;;  %v920_v46 = vrot.slane %v919_v51, 1  ;;  %v925_v60 = vadd.f32 %v924_v52, %v923_v40  ;;  %v940_v61 = vrot.slane %v2238_v55, 4  ;;  %1793 = vpow2.f32 %v856_v38 }
 0x238   :  { %v2245_v62 = vpop.eup %1787  ;;  %v908_v0 = vrot.slane %v907_v42, 1  ;;  %v913_v63 = vadd.f32 %v912_v56, %v911_v47  ;;  %v928_v1 = vrot.slane %v2242_v59, 4  ;;  %1795 = vpow2.f32 %v862_v57 }
 0x239   :  { %v2248_v2 = vpop.eup %1789  ;;  %v921_v3 = vadd.f32 %v920_v46, %v919_v51  ;;  %v926_v4 = vrot.slane %v925_v60, 1  ;;  %v941_v5 = vadd.f32 %v2238_v55, %v940_v61  ;;  %v946_v7 = vrot.slane %v2245_v62, 4 }
 0x23a   :  { %v909_v8 = vadd.f32 %v908_v0, %v907_v42  ;;  %v914_v9 = vrot.slane %v913_v63, 1  ;;  %v929_v11 = vadd.f32 %v2242_v59, %v928_v1  ;;  %v934_v12 = vrot.slane %v2248_v2, 4 }
 0x23b   :  { %1797 = vrcp.f32 %v921_v3  ;;  %v927_v13 = vadd.f32 %v926_v4, %v925_v60  ;;  %v942_v16 = vrot.slane %v941_v5, 2  ;;  %v947_v17 = vadd.f32 %v2245_v62, %v946_v7  ;;  %v2255_v18 = vpop.f32.mrb[20].mxu1 }
 0x23c   :  { %1799 = vrcp.f32 %v909_v8  ;;  %v915_v21 = vadd.f32 %v914_v9, %v913_v63  ;;  %v930_v22 = vrot.slane %v929_v11, 2  ;;  %v935_v23 = vadd.f32 %v2248_v2, %v934_v12  ;;  %v2258_v25 = vpop.f32.mrb[21].mxu1 }
 0x23d   :  { %1801 = vrcp.f32 %v927_v13  ;;  %v943_v26 = vadd.f32 %v942_v16, %v941_v5  ;;  %v948_v27 = vrot.slane %v947_v17, 2  ;;  %v858_v30 = vmul.f32 1.442695, %v817_v53  ;;  %v2260_v31 = vpop.f32.mrb[22].mxu1 }
 0x23e   :  { %1803 = vrcp.f32 %v915_v21  ;;  %v931_v32 = vadd.f32 %v930_v22, %v929_v11  ;;  %v936_v33 = vrot.slane %v935_v23, 2  ;;  %v702_v34 = vrot.slane %v2218_v28, 2  ;;  %v2263_v35 = vpop.f32.mrb[23].mxu1 }
 0x23f   :  { %v944_v36 = vrot.slane %v943_v26, 1  ;;  %v949_v37 = vadd.f32 %v948_v27, %v947_v17  ;;  %1805 = vpow2.f32 %v858_v30  ;;  %v688_v39 = vrot.slane %v2202_v10, 4 }
 0x240   :  { %v2266_v40 = vpop.eup %1791  ;;  %v932_v41 = vrot.slane %v931_v32, 1  ;;  %v937_v43 = vadd.f32 %v936_v33, %v935_v23  ;;  %v703_v45 = vmax.f32 %v2218_v28, %v702_v34  ;;  %v706_v52 = vrot.slane %v2204_v14, 4 }
 0x241   :  { %v2269_v47 = vpop.eup %1793  ;;  %v945_v48 = vadd.f32 %v944_v36, %v943_v26  ;;  %v964_v49 = vrot.slane %v2266_v40, 4  ;;  %v689_v51 = vmax.f32 %v2202_v10, %v688_v39  ;;  %v950_v53 = vrot.slane %v949_v37, 1 }
 0x242   :  { %v2274_v38 = vpop.eup %1795  ;;  %v952_v42 = vrot.slane %v2269_v47, 4  ;;  %v704_v56 = vrot.slane %v703_v45, 1  ;;  %v933_v57 = vadd.f32 %v932_v41, %v931_v32  ;;  %v938_v61 = vrot.slane %v937_v43, 1 }
 0x243   :  { %v965_v46 = vadd.f32 %v2266_v40, %v964_v49  ;;  %v970_v28 = vrot.slane %v2274_v38, 4  ;;  %v2279_v60 = vpop.f32.mrb[24].mxu1  ;;  %1807 = vrcp.f32 %v945_v48  ;;  %v690_v7 = vrot.slane %v689_v51, 2 }
 0x244   :  { %v953_v0 = vadd.f32 %v2269_v47, %v952_v42  ;;  %v705_v63 = vmax.f32 %v703_v45, %v704_v56  ;;  %v2282_v1 = vpop.f32.mrb[25].mxu1  ;;  %v707_v8 = vmax.f32 %v2204_v14, %v706_v52  ;;  %v2291_v13 = vadd.f32 %v950_v53, %v949_v37 }
 0x245   :  { %v1798_v3 = vpop.eup %1797  ;;  %v966_v4 = vrot.slane %v965_v46, 2  ;;  %v971_v5 = vadd.f32 %v2274_v38, %v970_v28  ;;  %v2286_v9 = vpop.f32.mrb[26].mxu1  ;;  %v691_v30 = vmax.f32 %v689_v51, %v690_v7  ;;  %1809 = vrcp.f32 %v933_v57 }
 0x246   :  { %v1800_v11 = vpop.eup %1799  ;;  %v2289_v12 = vmul.f32 %v1798_v3, %v2206_v15  ;;  %v954_v16 = vrot.slane %v953_v0, 2  ;;  %v822_v17 = vsub.f32 %v2200_v6, %v705_v63  ;;  %v2294_v21 = vpop.f32.mrb[27].mxu1  ;;  %v708_v36 = vrot.slane %v707_v8, 2 }
 0x247   :  { %v1802_v22 = vpop.eup %1801  ;;  %v1128_v23 = vmul.f32 %v1800_v11, %v2211_v20  ;;  %v967_v26 = vadd.f32 %v966_v4, %v965_v46  ;;  %v972_v27 = vrot.slane %v971_v5, 2  ;;  %v692_v48 = vrot.slane %v691_v30, 1 }
 0x248   :  { %v1804_v32 = vpop.eup %1803  ;;  %1162 = vst [vmem:[#allocation9 + $0x10] sm:$0xff] %v2289_v12  ;;  %v2299_v33 = vmul.f32 %v1802_v22, %v2214_v24  ;;  %v955_v15 = vadd.f32 %v954_v16, %v953_v0  ;;  %v868_v34 = vmul.f32 1.442695, %v822_v17  ;;  %v1903_v24 = vld [vmem:[#allocation2] sm:$0xff]  ;;  %v2308_v51 = vadd.f32 %v938_v61, %v937_v43  ;;  %v1904_v0 = vld [vmem:[#allocation2 + $0x8] sm:$0xff] }
 0x249   :  { %v2301_v37 = vpop.eup %1805  ;;  %1160 = vst [vmem:[#allocation9] sm:$0xff] %v1128_v23  ;;  %v1129_v6 = vmul.f32 %v1804_v32, %v2220_v29  ;;  %v968_v39 = vrot.slane %v967_v26, 1  ;;  %v973_v20 = vadd.f32 %v972_v27, %v971_v5  ;;  %v2306_v49 = vmul.f32 %v1903_v24, %v1128_v23 }
 0x24a   :  { %1163 = vst [vmem:[#allocation9 + $0x18] sm:$0xff] %v2299_v33  ;;  %v956_v41 = vrot.slane %v955_v15, 1  ;;  %v958_v45 = vrot.slane %v2301_v37, 4  ;;  %1811 = vpow2.f32 %v868_v34  ;;  %v693_v57 = vmax.f32 %v691_v30, %v692_v48 }
 0x24b   :  { %1161 = vst [vmem:[#allocation9 + $0x8] sm:$0xff] %v1129_v6  ;;  %v969_v52 = vadd.f32 %v968_v39, %v967_v26  ;;  %v974_v53 = vrot.slane %v973_v20, 1  ;;  %v2310_v42 = vpop.f32.mrb[28].mxu1  ;;  %v709_v46 = vmax.f32 %v707_v8, %v708_v36  ;;  %v2315_v63 = vmul.f32 %v1904_v0, %v1129_v6 }
 0x24c   :  { %v957_v29 = vadd.f32 %v956_v41, %v955_v15  ;;  %v959_v56 = vadd.f32 %v2301_v37, %v958_v45  ;;  %v2313_v28 = vpop.f32.mrb[29].mxu1  ;;  %v694_v4 = vrot.slane %v2209_v19, 4  ;;  %v820_v7 = vsub.f32 %v2202_v10, %v693_v57 }
 0x24d   :  { %1813 = vrcp.f32 %v969_v52  ;;  %v975_v3 = vadd.f32 %v974_v53, %v973_v20  ;;  %v2318_v43 = vpop.f32.mrb[30].mxu1  ;;  %v2320_v61 = vpop.eup %1807  ;;  %v710_v11 = vrot.slane %v709_v46, 1  ;;  %v724_v17 = vrot.slane %v2229_v44, 4 }
 0x24e   :  { %1815 = vrcp.f32 %v957_v29  ;;  %v960_v5 = vrot.slane %v959_v56, 2  ;;  %v2323_v16 = vpop.f32.mrb[31].mxu1  ;;  %v695_v8 = vmax.f32 %v2209_v19, %v694_v4  ;;  %v712_v22 = vrot.slane %v2233_v50, 4 }
 0x24f   :  { %1817 = vrcp.f32 %v975_v3  ;;  %v864_v26 = vmul.f32 1.442695, %v820_v7  ;;  %v711_v27 = vmax.f32 %v709_v46, %v710_v11  ;;  %v730_v30 = vrot.slane %v2236_v54, 4  ;;  %v2334_v20 = vpop.eup %1809 }
 0x250   :  { %v961_v23 = vadd.f32 %v960_v5, %v959_v56  ;;  %v696_v32 = vrot.slane %v695_v8, 2  ;;  %v725_v15 = vmax.f32 %v2229_v44, %v724_v17  ;;  %v713_v10 = vmax.f32 %v2233_v50, %v712_v22 }
 0x251   :  { %v718_v34 = vrot.slane %v2240_v58, 4  ;;  %1819 = vpow2.f32 %v864_v26  ;;  %v823_v6 = vsub.f32 %v2204_v14, %v711_v27  ;;  %v731_v39 = vmax.f32 %v2236_v54, %v730_v30 }
 0x252   :  { %v962_v36 = vrot.slane %v961_v23, 1  ;;  %v697_v41 = vmax.f32 %v695_v8, %v696_v32  ;;  %v726_v45 = vrot.slane %v725_v15, 2  ;;  %v714_v48 = vrot.slane %v713_v10, 2 }
 0x253   :  { %v719_v24 = vmax.f32 %v2240_v58, %v718_v34  ;;  %v870_v29 = vmul.f32 1.442695, %v823_v6  ;;  %v732_v56 = vrot.slane %v731_v39, 2  ;;  %v748_v57 = vrot.slane %v2255_v18, 4 }
 0x254   :  { %v2337_v52 = vpop.eup %1811  ;;  %v963_v53 = vadd.f32 %v962_v36, %v961_v23  ;;  %v698_v0 = vrot.slane %v697_v41, 1  ;;  %v727_v14 = vmax.f32 %v725_v15, %v726_v45  ;;  %v715_v3 = vmax.f32 %v713_v10, %v714_v48 }
 0x255   :  { %v988_v46 = vrot.slane %v2337_v52, 4  ;;  %v733_v4 = vmax.f32 %v731_v39, %v732_v56  ;;  %v720_v5 = vrot.slane %v719_v24, 2  ;;  %v749_v7 = vmax.f32 %v2255_v18, %v748_v57 }
 0x256   :  { %1821 = vrcp.f32 %v963_v53  ;;  %v699_v17 = vmax.f32 %v697_v41, %v698_v0  ;;  %v728_v22 = vrot.slane %v727_v14, 1  ;;  %v716_v27 = vrot.slane %v715_v3, 1 }
 0x257   :  { %v1814_v11 = vpop.eup %1813  ;;  %v989_v8 = vadd.f32 %v2337_v52, %v988_v46  ;;  %1823 = vpow2.f32 %v870_v29  ;;  %v734_v30 = vrot.slane %v733_v4, 1  ;;  %v721_v32 = vmax.f32 %v719_v24, %v720_v5 }
 0x258   :  { %v1816_v23 = vpop.eup %1815  ;;  %v2344_v26 = vmul.f32 %v1814_v11, %v2266_v40  ;;  %v821_v36 = vsub.f32 %v2209_v19, %v699_v17  ;;  %v729_v6 = vmax.f32 %v727_v14, %v728_v22  ;;  %v717_v41 = vmax.f32 %v715_v3, %v716_v27 }
 0x259   :  { %v1818_v15 = vpop.eup %1817  ;;  %v1136_v10 = vmul.f32 %v1816_v23, %v2269_v47  ;;  %v990_v34 = vrot.slane %v989_v8, 2  ;;  %v735_v45 = vmax.f32 %v733_v4, %v734_v30  ;;  %v722_v48 = vrot.slane %v721_v32, 1 }
 0x25a   :  { %1170 = vst [vmem:[#allocation9 + $0x50] sm:$0xff] %v2344_v26  ;;  %v2350_v39 = vmul.f32 %v1818_v15, %v2274_v38  ;;  %1825 = vrcp.f32 %v2308_v51  ;;  %v866_v24 = vmul.f32 1.442695, %v821_v36  ;;  %v826_v53 = vsub.f32 %v2229_v44, %v729_v6 }
 0x25b   :  { %1168 = vst [vmem:[#allocation9 + $0x40] sm:$0xff] %v1136_v10  ;;  %v991_v40 = vadd.f32 %v990_v34, %v989_v8  ;;  %v2354_v47 = vpop.eup %1819  ;;  %v824_v19 = vsub.f32 %v2233_v50, %v717_v41  ;;  %v827_v29 = vsub.f32 %v2236_v54, %v735_v45  ;;  %v723_v38 = vmax.f32 %v721_v32, %v722_v48  ;;  %v1905_v8 = vld [vmem:[#allocation2 + $0x40] sm:$0xff] }
 0x25c   :  { %1171 = vst [vmem:[#allocation9 + $0x58] sm:$0xff] %v2350_v39  ;;  %v750_v56 = vrot.slane %v749_v7, 2  ;;  %v1224_v57 = vrot.slane %v2306_v49, 4  ;;  %v976_v51 = vrot.slane %v2354_v47, 4  ;;  %1827 = vpow2.f32 %v866_v24 }
 0x25d   :  { %v992_v0 = vrot.slane %v991_v40, 1  ;;  %v876_v14 = vmul.f32 1.442695, %v826_v53  ;;  %v872_v44 = vmul.f32 1.442695, %v824_v19  ;;  %v825_v3 = vsub.f32 %v2240_v58, %v723_v38 }
 0x25e   :  { %v977_v4 = vadd.f32 %v2354_v47, %v976_v51  ;;  %v878_v5 = vmul.f32 1.442695, %v827_v29  ;;  %v751_v50 = vmax.f32 %v749_v7, %v750_v56  ;;  %v736_v54 = vrot.slane %v2258_v25, 4 }
 0x25f   :  { %v2365_v17 = vmul.f32 %v1905_v8, %v1136_v10  ;;  %1829 = vpow2.f32 %v876_v14  ;;  %v874_v22 = vmul.f32 1.442695, %v825_v3  ;;  %v754_v23 = vrot.slane %v2260_v31, 4 }
 0x260   :  { %v1822_v11 = vpop.eup %1821  ;;  %v978_v32 = vrot.slane %v977_v4, 2  ;;  %v752_v58 = vrot.slane %v751_v50, 1  ;;  %v742_v15 = vrot.slane %v2263_v35, 4  ;;  %1831 = vpow2.f32 %v872_v44 }
 0x261   :  { %v2368_v27 = vpop.eup %1823  ;;  %v1137_v30 = vmul.f32 %v1822_v11, %v2301_v37  ;;  %v737_v34 = vmax.f32 %v2258_v25, %v736_v54  ;;  %v755_v10 = vmax.f32 %v2260_v31, %v754_v23  ;;  %v993_v36 = vadd.f32 %v992_v0, %v991_v40 }
 0x262   :  { %v994_v7 = vrot.slane %v2368_v27, 4  ;;  %v979_v6 = vadd.f32 %v978_v32, %v977_v4  ;;  %1833 = vpow2.f32 %v878_v5  ;;  %v753_v41 = vmax.f32 %v751_v50, %v752_v58 }
 0x263   :  { %1169 = vst [vmem:[#allocation9 + $0x48] sm:$0xff] %v1137_v30  ;;  %1835 = vpow2.f32 %v874_v22  ;;  %v738_v37 = vrot.slane %v737_v34, 2  ;;  %v756_v48 = vrot.slane %v755_v10, 2  ;;  %v743_v38 = vmax.f32 %v2263_v35, %v742_v15 }
 0x264   :  { %v995_v45 = vadd.f32 %v2368_v27, %v994_v7  ;;  %v2376_v24 = vpop.eup %1825  ;;  %v980_v19 = vrot.slane %v979_v6, 1  ;;  %v830_v29 = vsub.f32 %v2255_v18, %v753_v41  ;;  %v772_v0 = vrot.slane %v2279_v60, 4  ;;  %v1906_v18 = vld [vmem:[#allocation2 + $0x48] sm:$0xff] }
 0x265   :  { %v739_v51 = vmax.f32 %v737_v34, %v738_v37  ;;  %v757_v40 = vmax.f32 %v755_v10, %v756_v48  ;;  %1837 = vrcp.f32 %v993_v36  ;;  %v744_v3 = vrot.slane %v743_v38, 2 }
 0x266   :  { %v996_v56 = vrot.slane %v995_v45, 2  ;;  %v2382_v14 = vpop.eup %1827  ;;  %v884_v44 = vmul.f32 1.442695, %v830_v29  ;;  %v760_v4 = vrot.slane %v2282_v1, 4  ;;  %v981_v5 = vadd.f32 %v980_v19, %v979_v6 }
 0x267   :  { %v982_v50 = vrot.slane %v2382_v14, 4  ;;  %v740_v54 = vrot.slane %v739_v51, 1  ;;  %v758_v11 = vrot.slane %v757_v40, 1  ;;  %v2386_v8 = vmul.f32 %v1906_v18, %v1137_v30 }
 0x268   :  { %v745_v22 = vmax.f32 %v743_v38, %v744_v3  ;;  %v773_v23 = vmax.f32 %v2279_v60, %v772_v0  ;;  %v761_v32 = vmax.f32 %v2282_v1, %v760_v4  ;;  %v2392_v15 = vadd.f32 %v996_v56, %v995_v45 }
 0x269   :  { %v2390_v58 = vpop.eup %1829  ;;  %v983_v7 = vadd.f32 %v2382_v14, %v982_v50  ;;  %1839 = vpow2.f32 %v884_v44  ;;  %v741_v34 = vmax.f32 %v739_v51, %v740_v54  ;;  %v759_v36 = vmax.f32 %v757_v40, %v758_v11 }
 0x26a   :  { %v1012_v10 = vrot.slane %v2390_v58, 4  ;;  %v746_v6 = vrot.slane %v745_v22, 1  ;;  %v774_v41 = vrot.slane %v773_v23, 2  ;;  %v2396_v30 = vpop.eup %1831  ;;  %1841 = vrcp.f32 %v981_v5 }
 0x26b   :  { %v984_v37 = vrot.slane %v983_v7, 2  ;;  %v828_v48 = vsub.f32 %v2258_v25, %v741_v34  ;;  %v762_v19 = vrot.slane %v761_v32, 2  ;;  %v1000_v38 = vrot.slane %v2396_v30, 4 }
 0x26c   :  { %v2399_v29 = vpop.eup %1833  ;;  %v1013_v45 = vadd.f32 %v2390_v58, %v1012_v10  ;;  %v831_v56 = vsub.f32 %v2260_v31, %v759_v36  ;;  %v747_v51 = vmax.f32 %v745_v22, %v746_v6  ;;  %v775_v4 = vmax.f32 %v773_v23, %v774_v41 }
 0x26d   :  { %v2404_v0 = vpop.eup %1835  ;;  %v985_v40 = vadd.f32 %v984_v37, %v983_v7  ;;  %v1018_v44 = vrot.slane %v2399_v29, 4  ;;  %v880_v3 = vmul.f32 1.442695, %v828_v48  ;;  %v1001_v25 = vadd.f32 %v2396_v30, %v1000_v38 }
 0x26e   :  { %v1014_v5 = vrot.slane %v1013_v45, 2  ;;  %v1006_v50 = vrot.slane %v2404_v0, 4  ;;  %v886_v54 = vmul.f32 1.442695, %v831_v56  ;;  %v829_v31 = vsub.f32 %v2263_v35, %v747_v51 }
 0x26f   :  { %v986_v11 = vrot.slane %v985_v40, 1  ;;  %v1019_v18 = vadd.f32 %v2399_v29, %v1018_v44  ;;  %1843 = vpow2.f32 %v880_v3  ;;  %v2411_v22 = vpop.eup %1837  ;;  %v1002_v7 = vrot.slane %v1001_v25, 2 }
 0x270   :  { %v1015_v34 = vadd.f32 %v1014_v5, %v1013_v45  ;;  %v1007_v10 = vadd.f32 %v2404_v0, %v1006_v50  ;;  %1845 = vpow2.f32 %v886_v54  ;;  %v998_v23 = vrot.slane %v2392_v15, 1 }
 0x271   :  { %v1020_v36 = vrot.slane %v1019_v18, 2  ;;  %v882_v6 = vmul.f32 1.442695, %v829_v31  ;;  %v776_v41 = vrot.slane %v775_v4, 1  ;;  %v1003_v48 = vadd.f32 %v1002_v7, %v1001_v25 }
 0x272   :  { %v1016_v37 = vrot.slane %v1015_v34, 1  ;;  %v1008_v38 = vrot.slane %v1007_v10, 2  ;;  %v763_v56 = vmax.f32 %v761_v32, %v762_v19  ;;  %v987_v3 = vadd.f32 %v986_v11, %v985_v40 }
 0x273   :  { %v2415_v44 = vpop.eup %1839  ;;  %v1021_v35 = vadd.f32 %v1020_v36, %v1019_v18  ;;  %v777_v51 = vmax.f32 %v775_v4, %v776_v41  ;;  %v778_v45 = vrot.slane %v2286_v9, 4  ;;  %v1004_v53 = vrot.slane %v1003_v48, 1 }
 0x274   :  { %v1017_v5 = vadd.f32 %v1016_v37, %v1015_v34  ;;  %v1009_v50 = vadd.f32 %v1008_v38, %v1007_v10  ;;  %v1036_v54 = vrot.slane %v2415_v44, 4  ;;  %v2419_v46 = vpop.eup %1841  ;;  %1847 = vpow2.f32 %v882_v6 }
 0x275   :  { %v1022_v31 = vrot.slane %v1021_v35, 1  ;;  %v834_v25 = vsub.f32 %v2279_v60, %v777_v51  ;;  %v764_v7 = vrot.slane %v763_v56, 1  ;;  %v1005_v32 = vadd.f32 %v1004_v53, %v1003_v48 }
 0x276   :  { %1849 = vrcp.f32 %v1017_v5  ;;  %v1010_v19 = vrot.slane %v1009_v50, 1  ;;  %v1037_v40 = vadd.f32 %v2415_v44, %v1036_v54  ;;  %v779_v34 = vmax.f32 %v2286_v9, %v778_v45 }
 0x277   :  { %v1023_v4 = vadd.f32 %v1022_v31, %v1021_v35  ;;  %v892_v11 = vmul.f32 1.442695, %v834_v25  ;;  %v765_v18 = vmax.f32 %v763_v56, %v764_v7  ;;  %1851 = vrcp.f32 %v1005_v32 }
 0x278   :  { %v1011_v10 = vadd.f32 %v1010_v19, %v1009_v50  ;;  %v1038_v36 = vrot.slane %v1037_v40, 2  ;;  %v766_v41 = vrot.slane %v2294_v21, 4  ;;  %v780_v6 = vrot.slane %v779_v34, 2 }
 0x279   :  { %v2425_v37 = vpop.eup %1843  ;;  %1853 = vrcp.f32 %v1023_v4  ;;  %v832_v60 = vsub.f32 %v2282_v1, %v765_v18  ;;  %v796_v53 = vrot.slane %v2310_v42, 4  ;;  %v784_v32 = vrot.slane %v2313_v28, 4 }
 0x27a   :  { %v2429_v48 = vpop.eup %1845  ;;  %1855 = vrcp.f32 %v1011_v10  ;;  %v1039_v38 = vadd.f32 %v1038_v36, %v1037_v40  ;;  %v1024_v56 = vrot.slane %v2425_v37, 4  ;;  %v767_v35 = vmax.f32 %v2294_v21, %v766_v41 }
 0x27b   :  { %v1042_v51 = vrot.slane %v2429_v48, 4  ;;  %1857 = vpow2.f32 %v892_v11  ;;  %v888_v45 = vmul.f32 1.442695, %v832_v60  ;;  %v781_v5 = vmax.f32 %v779_v34, %v780_v6 }
 0x27c   :  { %v1040_v50 = vrot.slane %v1039_v38, 1  ;;  %v1025_v54 = vadd.f32 %v2425_v37, %v1024_v56  ;;  %v768_v1 = vrot.slane %v767_v35, 2  ;;  %v797_v31 = vmax.f32 %v2310_v42, %v796_v53 }
 0x27d   :  { %v1043_v25 = vadd.f32 %v2429_v48, %v1042_v51  ;;  %1859 = vpow2.f32 %v888_v45  ;;  %v782_v7 = vrot.slane %v781_v5, 1  ;;  %v785_v36 = vmax.f32 %v2313_v28, %v784_v32 }
 0x27e   :  { %v1041_v19 = vadd.f32 %v1040_v50, %v1039_v38  ;;  %v1026_v40 = vrot.slane %v1025_v54, 2  ;;  %v769_v4 = vmax.f32 %v767_v35, %v768_v1  ;;  %v798_v18 = vrot.slane %v797_v31, 2  ;;  %v2438_v10 = vpop.eup %1847 }
 0x27f   :  { %1861 = vrcp.f32 %v987_v3  ;;  %v1044_v11 = vrot.slane %v1043_v25, 2  ;;  %v783_v34 = vmax.f32 %v781_v5, %v782_v7  ;;  %v1030_v6 = vrot.slane %v2438_v10, 4 }
 0x280   :  { %v1850_v41 = vpop.eup %1849  ;;  %1863 = vrcp.f32 %v1041_v19  ;;  %v1027_v60 = vadd.f32 %v1026_v40, %v1025_v54  ;;  %v770_v53 = vrot.slane %v769_v4, 1  ;;  %v799_v51 = vmax.f32 %v797_v31, %v798_v18 }
 0x281   :  { %v2443_v56 = vmul.f32 %v1850_v41, %v2390_v58  ;;  %v1045_v38 = vadd.f32 %v1044_v11, %v1043_v25  ;;  %v835_v35 = vsub.f32 %v2286_v9, %v783_v34  ;;  %v1852_v45 = vpop.eup %1851  ;;  %v1031_v3 = vadd.f32 %v2438_v10, %v1030_v6  ;;  %v1907_v41 = vld [vmem:[#allocation2 + $0x80] sm:$0xff] }
 0x282   :  { %v1028_v50 = vrot.slane %v1027_v60, 1  ;;  %v771_v5 = vmax.f32 %v769_v4, %v770_v53  ;;  %v786_v1 = vrot.slane %v785_v36, 2  ;;  %v1144_v54 = vmul.f32 %v1852_v45, %v2396_v30 }
 0x283   :  { %v1854_v7 = vpop.eup %1853  ;;  %1178 = vst [vmem:[#allocation9 + $0x90] sm:$0xff] %v2443_v56  ;;  %v1046_v32 = vrot.slane %v1045_v38, 1  ;;  %v894_v19 = vmul.f32 1.442695, %v835_v35  ;;  %v800_v40 = vrot.slane %v799_v51, 1  ;;  %v1032_v31 = vrot.slane %v1031_v3, 2 }
 0x284   :  { %v1856_v58 = vpop.eup %1855  ;;  %v2450_v25 = vmul.f32 %v1854_v7, %v2399_v29  ;;  %v1029_v9 = vadd.f32 %v1028_v50, %v1027_v60  ;;  %v833_v18 = vsub.f32 %v2294_v21, %v771_v5  ;;  %v999_v4 = vadd.f32 %v998_v23, %v2392_v15  ;;  %1176 = vst [vmem:[#allocation9 + $0x80] sm:$0xff] %v1144_v54  ;;  %v1908_v7 = vld [vmem:[#allocation2 + $0x88] sm:$0xff] }
 0x285   :  { %v2453_v11 = vpop.eup %1857  ;;  %v1145_v30 = vmul.f32 %v1856_v58, %v2404_v0  ;;  %1865 = vpow2.f32 %v894_v19  ;;  %v802_v34 = vrot.slane %v2318_v43, 4  ;;  %v2460_v6 = vmul.f32 %v1907_v41, %v1144_v54 }
 0x286   :  { %1179 = vst [vmem:[#allocation9 + $0x98] sm:$0xff] %v2450_v25  ;;  %v1033_v29 = vadd.f32 %v1032_v31, %v1031_v3  ;;  %v1060_v21 = vrot.slane %v2453_v11, 4  ;;  %v890_v60 = vmul.f32 1.442695, %v833_v18  ;;  %1867 = vrcp.f32 %v1029_v9 }
 0x287   :  { %v2464_v53 = vpop.eup %1859  ;;  %1177 = vst [vmem:[#allocation9 + $0x88] sm:$0xff] %v1145_v30  ;;  %v1047_v15 = vadd.f32 %v1046_v32, %v1045_v38  ;;  %v801_v23 = vmax.f32 %v799_v51, %v800_v40  ;;  %v787_v35 = vmax.f32 %v785_v36, %v786_v1  ;;  %v2468_v54 = vmul.f32 %v1908_v7, %v1145_v30 }
 0x288   :  { %v1034_v0 = vrot.slane %v1033_v29, 1  ;;  %v1061_v45 = vadd.f32 %v2453_v11, %v1060_v21  ;;  %v1048_v50 = vrot.slane %v2464_v53, 4  ;;  %1869 = vpow2.f32 %v890_v60 }
 0x289   :  { %v1862_v5 = vpop.eup %1861  ;;  %v838_v3 = vsub.f32 %v2310_v42, %v801_v23  ;;  %v788_v19 = vrot.slane %v787_v35, 1  ;;  %v803_v58 = vmax.f32 %v2318_v43, %v802_v34  ;;  %v790_v51 = vrot.slane %v2323_v16, 4 }
 0x28a   :  { %v1864_v31 = vpop.eup %1863  ;;  %v1035_v9 = vadd.f32 %v1034_v0, %v1033_v29  ;;  %v1062_v38 = vrot.slane %v1061_v45, 2  ;;  %v1049_v36 = vadd.f32 %v2464_v53, %v1048_v50  ;;  %1871 = vrcp.f32 %v2291_v13 }
 0x28b   :  { %v900_v1 = vmul.f32 1.442695, %v838_v3  ;;  %v789_v32 = vmax.f32 %v787_v35, %v788_v19  ;;  %v804_v40 = vrot.slane %v803_v58, 2  ;;  %v791_v42 = vmax.f32 %v2323_v16, %v790_v51 }
 0x28c   :  { %1873 = vrcp.f32 %v1035_v9  ;;  %v1063_v18 = vadd.f32 %v1062_v38, %v1061_v45  ;;  %v1050_v30 = vrot.slane %v1049_v36, 2  ;;  %v2479_v29 = vmul.f32 %v2334_v20, %v2242_v59 }
 0x28d   :  { %1875 = vpow2.f32 %v900_v1  ;;  %v836_v34 = vsub.f32 %v2313_v28, %v789_v32  ;;  %v805_v41 = vmax.f32 %v803_v58, %v804_v40  ;;  %v792_v23 = vrot.slane %v791_v42, 2 }
 0x28e   :  { %v1064_v21 = vrot.slane %v1063_v18, 1  ;;  %v1051_v60 = vadd.f32 %v1050_v30, %v1049_v36  ;;  %1877 = vrcp.f32 %v999_v4  ;;  %v2485_v45 = vmul.f32 %v2376_v24, %v2248_v2  ;;  %1164 = vst [vmem:[#allocation9 + $0x20] sm:$0xff] %v2479_v29 }
 0x28f   :  { %v2481_v35 = vpop.eup %1865  ;;  %v896_v13 = vmul.f32 1.442695, %v836_v34  ;;  %v806_v0 = vrot.slane %v805_v41, 1  ;;  %1879 = vrcp.f32 %v1047_v15  ;;  %v793_v20 = vmax.f32 %v791_v42, %v792_v23 }
 0x290   :  { %v1065_v28 = vadd.f32 %v1064_v21, %v1063_v18  ;;  %v1052_v50 = vrot.slane %v1051_v60, 1  ;;  %v1066_v59 = vrot.slane %v2481_v35, 4  ;;  %v1868_v7 = vpop.eup %1867  ;;  %v1134_v4 = vmul.f32 %v2320_v61, %v2238_v55  ;;  %1165 = vst [vmem:[#allocation9 + $0x28] sm:$0xff] %v2485_v45 }
 0x291   :  { %1881 = vpow2.f32 %v896_v13  ;;  %v807_v3 = vmax.f32 %v805_v41, %v806_v0  ;;  %v2493_v15 = vmul.f32 %v2419_v46, %v2354_v47  ;;  %v794_v58 = vrot.slane %v793_v20, 1 }
 0x292   :  { %v2496_v2 = vpop.eup %1869  ;;  %1883 = vrcp.f32 %v1065_v28  ;;  %v1053_v24 = vadd.f32 %v1052_v50, %v1051_v60  ;;  %v1067_v19 = vadd.f32 %v2481_v35, %v1066_v59  ;;  %v2502_v36 = vmul.f32 %v1862_v5, %v2382_v14  ;;  %1166 = vst [vmem:[#allocation9 + $0x30] sm:$0xff] %v1134_v4  ;;  %v1911_v28 = vld [vmem:[#allocation2 + $0x20] sm:$0xff] }
 0x293   :  { %v1054_v9 = vrot.slane %v2496_v2, 4  ;;  %v839_v38 = vsub.f32 %v2318_v43, %v807_v3  ;;  %v2506_v55 = vmul.f32 %v2411_v22, %v2337_v52  ;;  %1172 = vst [vmem:[#allocation9 + $0x60] sm:$0xff] %v2493_v15  ;;  %v795_v47 = vmax.f32 %v793_v20, %v794_v58  ;;  %v1912_v3 = vld [vmem:[#allocation2 + $0x28] sm:$0xff] }
 0x294   :  { %1885 = vrcp.f32 %v1053_v24  ;;  %v1068_v61 = vrot.slane %v1067_v19, 2  ;;  %v2510_v46 = vmul.f32 %v1868_v7, %v2425_v37  ;;  %v1872_v51 = vpop.eup %1871  ;;  %v1278_v1 = vrot.slane %v2386_v8, 4  ;;  %1173 = vst [vmem:[#allocation9 + $0x68] sm:$0xff] %v2502_v36 }
 0x295   :  { %v1055_v43 = vadd.f32 %v2496_v2, %v1054_v9  ;;  %v902_v14 = vmul.f32 1.442695, %v839_v38  ;;  %v2515_v5 = vmul.f32 %v1864_v31, %v2415_v44  ;;  %1174 = vst [vmem:[#allocation9 + $0x70] sm:$0xff] %v2506_v55  ;;  %v1320_v22 = vrot.slane %v2460_v6, 4 }
 0x296   :  { %v1874_v52 = vpop.eup %1873  ;;  %v1069_v32 = vadd.f32 %v1068_v61, %v1067_v19  ;;  %v837_v37 = vsub.f32 %v2323_v16, %v795_v47  ;;  %v1135_v40 = vmul.f32 %v1872_v51, %v2245_v62  ;;  %1180 = vst [vmem:[#allocation9 + $0xa0] sm:$0xff] %v2510_v46  ;;  %v1326_v30 = vrot.slane %v2468_v54, 4  ;;  %v1909_v62 = vld [vmem:[#allocation2 + $0x10] sm:$0xff] }
 0x297   :  { %v2523_v18 = vpop.eup %1875  ;;  %v1056_v44 = vrot.slane %v1055_v43, 2  ;;  %1887 = vpow2.f32 %v902_v14  ;;  %v2527_v31 = vmul.f32 %v1874_v52, %v2438_v10  ;;  %1182 = vst [vmem:[#allocation9 + $0xb0] sm:$0xff] %v2515_v5  ;;  %v2532_v21 = vmul.f32 %v1909_v62, %v2289_v12  ;;  %v1910_v10 = vld [vmem:[#allocation2 + $0x18] sm:$0xff]  ;;  %v1915_v61 = vld [vmem:[#allocation2 + $0x50] sm:$0xff]  ;;  %v1917_v14 = vld [vmem:[#allocation2 + $0x60] sm:$0xff] }
 0x298   :  { %v1878_v42 = vpop.eup %1877  ;;  %v1070_v34 = vrot.slane %v1069_v32, 1  ;;  %v1084_v41 = vrot.slane %v2523_v18, 4  ;;  %v898_v16 = vmul.f32 1.442695, %v837_v37  ;;  %1167 = vst [vmem:[#allocation9 + $0x38] sm:$0xff] %v1135_v40  ;;  %v2537_v0 = vmul.f32 %v1910_v10, %v2299_v33  ;;  %v1913_v33 = vld [vmem:[#allocation2 + $0x30] sm:$0xff] }
 0x299   :  { %v1880_v60 = vpop.eup %1879  ;;  %v1057_v23 = vadd.f32 %v1056_v44, %v1055_v43  ;;  %v1143_v13 = vmul.f32 %v1878_v42, %v2368_v27  ;;  %1181 = vst [vmem:[#allocation9 + $0xa8] sm:$0xff] %v2527_v31  ;;  %v2540_v50 = vmul.f32 %v1911_v28, %v2479_v29  ;;  %v2549_v24 = vmul.f32 %v1912_v3, %v2485_v45  ;;  %v1914_v29 = vld [vmem:[#allocation2 + $0x38] sm:$0xff]  ;;  %v1918_v44 = vld [vmem:[#allocation2 + $0x68] sm:$0xff]  ;;  %v1919_v42 = vld [vmem:[#allocation2 + $0x70] sm:$0xff] }
 0x29a   :  { %v1071_v59 = vadd.f32 %v1070_v34, %v1069_v32  ;;  %v1085_v20 = vadd.f32 %v2523_v18, %v1084_v41  ;;  %1889 = vpow2.f32 %v898_v16  ;;  %v2544_v12 = vmul.f32 %v1880_v60, %v2429_v48  ;;  %v1920_v34 = vld [vmem:[#allocation2 + $0x78] sm:$0xff]  ;;  %v1921_v41 = vld [vmem:[#allocation2 + $0x90] sm:$0xff] }
 0x29b   :  { %v2546_v7 = vpop.eup %1881  ;;  %v1058_v27 = vrot.slane %v1057_v23, 1  ;;  %1175 = vst [vmem:[#allocation9 + $0x78] sm:$0xff] %v1143_v13  ;;  %v2551_v19 = vmul.f32 %v1913_v33, %v1134_v4  ;;  %v2553_v58 = vmul.f32 %v1914_v29, %v1135_v40  ;;  %v2558_v47 = vmul.f32 %v1915_v61, %v2344_v26  ;;  %v1916_v4 = vld [vmem:[#allocation2 + $0x58] sm:$0xff] }
 0x29c   :  { %v1884_v9 = vpop.eup %1883  ;;  %1891 = vrcp.f32 %v1071_v59  ;;  %v1086_v38 = vrot.slane %v1085_v20, 2  ;;  %v1072_v48 = vrot.slane %v2546_v7, 4  ;;  %1183 = vst [vmem:[#allocation9 + $0xb8] sm:$0xff] %v2544_v12  ;;  %v2564_v43 = vmul.f32 %v1916_v4, %v2350_v39  ;;  %v1925_v59 = vld [vmem:[#allocation2 + $0xb0] sm:$0xff] }
 0x29d   :  { %v2561_v45 = vmul.f32 %v1884_v9, %v2453_v11  ;;  %v1059_v51 = vadd.f32 %v1058_v27, %v1057_v23  ;;  %v2567_v52 = vmul.f32 %v1917_v14, %v2493_v15  ;;  %v2571_v26 = vmul.f32 %v1918_v44, %v2502_v36  ;;  %v1922_v36 = vld [vmem:[#allocation2 + $0x98] sm:$0xff] }
 0x29e   :  { %v1886_v32 = vpop.eup %1885  ;;  %v1087_v37 = vadd.f32 %v1086_v38, %v1085_v20  ;;  %v1073_v40 = vadd.f32 %v2546_v7, %v1072_v48  ;;  %v2574_v11 = vmul.f32 %v1919_v42, %v2506_v55  ;;  %v2578_v15 = vmul.f32 %v1920_v34, %v1143_v13  ;;  %v1923_v55 = vld [vmem:[#allocation2 + $0xa0] sm:$0xff] }
 0x29f   :  { %1186 = vst [vmem:[#allocation9 + $0xd0] sm:$0xff] %v2561_v45  ;;  %v1152_v39 = vmul.f32 %v1886_v32, %v2464_v53  ;;  %1893 = vrcp.f32 %v1059_v51  ;;  %v2581_v16 = vmul.f32 %v1921_v41, %v2443_v56  ;;  %v2584_v23 = vmul.f32 %v1922_v36, %v2450_v25  ;;  %v1924_v53 = vld [vmem:[#allocation2 + $0xa8] sm:$0xff] }
 0x2a0   :  { %v1088_v62 = vrot.slane %v1087_v37, 1  ;;  %v1074_v60 = vrot.slane %v1073_v40, 2  ;;  %v2587_v10 = vmul.f32 %v1923_v55, %v2510_v46  ;;  %v2592_v13 = vmul.f32 %v1924_v53, %v2527_v31  ;;  %v1926_v31 = vld [vmem:[#allocation2 + $0xc0] sm:$0xff] }
 0x2a1   :  { %v2589_v28 = vpop.eup %1887  ;;  %1184 = vst [vmem:[#allocation9 + $0xc0] sm:$0xff] %v1152_v39  ;;  %v2595_v56 = vmul.f32 %v1925_v59, %v2515_v5  ;;  %v1225_v25 = vadd.f32 %v1224_v57, %v2306_v49  ;;  %v2847_v20 = vrot.slane %v2315_v63, 4  ;;  %v1236_v29 = vrot.slane %v2532_v21, 4 }
 0x2a2   :  { %v1089_v27 = vadd.f32 %v1088_v62, %v1087_v37  ;;  %v1075_v3 = vadd.f32 %v1074_v60, %v1073_v40  ;;  %v1090_v33 = vrot.slane %v2589_v28, 4  ;;  %v2605_v9 = vmul.f32 %v1926_v31, %v1152_v39 }
 0x2a3   :  { %v1231_v46 = vadd.f32 %v2847_v20, %v2315_v63  ;;  %v1226_v38 = vrot.slane %v1225_v25, 2  ;;  %v1242_v48 = vrot.slane %v2537_v0, 4  ;;  %v1237_v63 = vadd.f32 %v1236_v29, %v2532_v21 }
 0x2a4   :  { %v2608_v61 = vpop.eup %1889  ;;  %1895 = vrcp.f32 %v1089_v27  ;;  %v1076_v49 = vrot.slane %v1075_v3, 1  ;;  %v1091_v57 = vadd.f32 %v2589_v28, %v1090_v33  ;;  %v1248_v39 = vrot.slane %v2540_v50, 4  ;;  %v1929_v33 = vld [vmem:[#allocation2 + $0xd8] sm:$0xff] }
 0x2a5   :  { %v1232_v5 = vrot.slane %v1231_v46, 2  ;;  %v1078_v51 = vrot.slane %v2608_v61, 4  ;;  %v1227_v4 = vadd.f32 %v1226_v38, %v1225_v25  ;;  %v1243_v32 = vadd.f32 %v1242_v48, %v2537_v0  ;;  %v1927_v25 = vld [vmem:[#allocation2 + $0xb8] sm:$0xff] }
 0x2a6   :  { %v1892_v37 = vpop.eup %1891  ;;  %v1077_v40 = vadd.f32 %v1076_v49, %v1075_v3  ;;  %v1092_v44 = vrot.slane %v1091_v57, 2  ;;  %v1238_v42 = vrot.slane %v1237_v63, 2  ;;  %v1368_v59 = vrot.slane %v2605_v9, 4 }
 0x2a7   :  { %v1233_v14 = vadd.f32 %v1232_v5, %v1231_v46  ;;  %v1155_v34 = vmul.f32 %v1892_v37, %v2481_v35  ;;  %v1079_v41 = vadd.f32 %v2608_v61, %v1078_v51  ;;  %v1228_v62 = vrot.slane %v1227_v4, 1  ;;  %v1928_v46 = vld [vmem:[#allocation2 + $0xd0] sm:$0xff] }
 0x2a8   :  { %1897 = vrcp.f32 %v1077_v40  ;;  %v1093_v21 = vadd.f32 %v1092_v44, %v1091_v57  ;;  %v1239_v36 = vadd.f32 %v1238_v42, %v1237_v63  ;;  %v1244_v55 = vrot.slane %v1243_v32, 2  ;;  %v1930_v42 = vld [vmem:[#allocation2 + $0xc8] sm:$0xff] }
 0x2a9   :  { %v1234_v60 = vrot.slane %v1233_v14, 1  ;;  %v1894_v53 = vpop.eup %1893  ;;  %1187 = vst [vmem:[#allocation9 + $0xd8] sm:$0xff] %v1155_v34  ;;  %v1080_v0 = vrot.slane %v1079_v41, 2  ;;  %v2619_v20 = vmul.f32 %v1927_v25, %v2544_v12  ;;  %v2622_v35 = vmul.f32 %v1928_v46, %v2561_v45 }
 0x2aa   :  { %v1153_v27 = vmul.f32 %v1894_v53, %v2496_v2  ;;  %v1094_v3 = vrot.slane %v1093_v21, 1  ;;  %v2625_v29 = vmul.f32 %v1929_v33, %v1155_v34  ;;  %v1240_v31 = vrot.slane %v1239_v36, 1 }
 0x2ab   :  { %v1081_v38 = vadd.f32 %v1080_v0, %v1079_v41  ;;  %v1249_v5 = vadd.f32 %v1248_v39, %v2540_v50  ;;  %v1254_v48 = vrot.slane %v2549_v24, 4  ;;  %v1260_v49 = vrot.slane %v2551_v19, 4 }
 0x2ac   :  { %1185 = vst [vmem:[#allocation9 + $0xc8] sm:$0xff] %v1153_v27  ;;  %v1095_v12 = vadd.f32 %v1094_v3, %v1093_v21  ;;  %v2630_v57 = vadd.f32 %v1228_v62, %v1227_v4  ;;  %v2632_v45 = vadd.f32 %v1234_v60, %v1233_v14  ;;  %v1245_v63 = vadd.f32 %v1244_v55, %v1243_v32 }
 0x2ad   :  { %v1082_v2 = vrot.slane %v1081_v38, 1  ;;  %v1250_v51 = vrot.slane %v1249_v5, 2  ;;  %v1255_v37 = vadd.f32 %v1254_v48, %v2549_v24  ;;  %v1261_v40 = vadd.f32 %v1260_v49, %v2551_v19 }
 0x2ae   :  { %v1896_v44 = vpop.eup %1895  ;;  %v2636_v50 = vmul.f32 %v1930_v42, %v1153_v27  ;;  %1899 = vrcp.f32 %v1095_v12  ;;  %v2638_v39 = vadd.f32 %v1240_v31, %v1239_v36  ;;  %v1266_v34 = vrot.slane %v2553_v58, 4 }
 0x2af   :  { %v1083_v4 = vadd.f32 %v1082_v2, %v1081_v38  ;;  %v1158_v14 = vmul.f32 %v1896_v44, %v2523_v18  ;;  %v1251_v41 = vadd.f32 %v1250_v51, %v1249_v5  ;;  %v1256_v32 = vrot.slane %v1255_v37, 2  ;;  %v1931_v5 = vld [vmem:[#allocation2 + $0xf0] sm:$0xff]  ;;  %v1932_v51 = vld [vmem:[#allocation2 + $0xe0] sm:$0xff] }
 0x2b0   :  { %v1262_v62 = vrot.slane %v1261_v40, 2  ;;  %v1267_v60 = vadd.f32 %v1266_v34, %v2553_v58  ;;  %v2848_v24 = vrot.slane %v2365_v17, 4  ;;  %v1279_v21 = vadd.f32 %v1278_v1, %v2386_v8 }
 0x2b1   :  { %1901 = vrcp.f32 %v1083_v4  ;;  %1190 = vst [vmem:[#allocation9 + $0xf0] sm:$0xff] %v1158_v14  ;;  %v1246_v36 = vrot.slane %v1245_v63, 1  ;;  %v1252_v55 = vrot.slane %v1251_v41, 1  ;;  %v1257_v53 = vadd.f32 %v1256_v32, %v1255_v37 }
 0x2b2   :  { %v1273_v19 = vadd.f32 %v2848_v24, %v2365_v17  ;;  %v1898_v0 = vpop.eup %1897  ;;  %v1263_v18 = vadd.f32 %v1262_v62, %v1261_v40  ;;  %v1268_v25 = vrot.slane %v1267_v60, 2  ;;  %v1280_v27 = vrot.slane %v1279_v21, 2 }
 0x2b3   :  { %v1374_v58 = vrot.slane %v2636_v50, 4  ;;  %v1156_v3 = vmul.f32 %v1898_v0, %v2546_v7  ;;  %v1258_v33 = vrot.slane %v1257_v53, 1  ;;  %v1284_v17 = vrot.slane %v2558_v47, 4 }
 0x2b4   :  { %v1274_v46 = vrot.slane %v1273_v19, 2  ;;  %v1264_v31 = vrot.slane %v1263_v18, 1  ;;  %v1269_v38 = vadd.f32 %v1268_v25, %v1267_v60  ;;  %v1281_v1 = vadd.f32 %v1280_v27, %v1279_v21 }
 0x2b5   :  { %1188 = vst [vmem:[#allocation9 + $0xe0] sm:$0xff] %v1156_v3  ;;  %v2652_v48 = vmul.f32 %v1931_v5, %v1158_v14  ;;  %v2654_v49 = vadd.f32 %v1246_v36, %v1245_v63  ;;  %v1285_v12 = vadd.f32 %v1284_v17, %v2558_v47  ;;  %v1290_v2 = vrot.slane %v2564_v43, 4  ;;  %v1933_v5 = vld [vmem:[#allocation2 + $0xf8] sm:$0xff] }
 0x2b6   :  { %v1275_v8 = vadd.f32 %v1274_v46, %v1273_v19  ;;  %v2658_v37 = vmul.f32 %v1932_v51, %v1156_v3  ;;  %v2660_v7 = vadd.f32 %v1252_v55, %v1251_v41  ;;  %v2662_v40 = vadd.f32 %v1258_v33, %v1257_v53 }
 0x2b7   :  { %v1270_v44 = vrot.slane %v1269_v38, 1  ;;  %v1286_v42 = vrot.slane %v1285_v12, 2  ;;  %v1291_v34 = vadd.f32 %v1290_v2, %v2564_v43  ;;  %v1296_v4 = vrot.slane %v2567_v52, 4 }
 0x2b8   :  { %v1302_v63 = vrot.slane %v2571_v26, 4  ;;  %v1900_v14 = vpop.eup %1899  ;;  %v2667_v32 = vadd.f32 %v1264_v31, %v1263_v18  ;;  %v1276_v47 = vrot.slane %v1275_v8, 1  ;;  %v1282_v62 = vrot.slane %v1281_v1, 1 }
 0x2b9   :  { %v1308_v60 = vrot.slane %v2574_v11, 4  ;;  %v1159_v41 = vmul.f32 %v1900_v14, %v2589_v28  ;;  %v1287_v24 = vadd.f32 %v1286_v42, %v1285_v12  ;;  %v1292_v19 = vrot.slane %v1291_v34, 2 }
 0x2ba   :  { %v1297_v21 = vadd.f32 %v1296_v4, %v2567_v52  ;;  %v1303_v43 = vadd.f32 %v1302_v63, %v2571_v26  ;;  %v1314_v55 = vrot.slane %v2578_v15, 4  ;;  %v1321_v53 = vadd.f32 %v1320_v22, %v2460_v6 }
 0x2bb   :  { %v1309_v36 = vadd.f32 %v1308_v60, %v2574_v11  ;;  %v1902_v0 = vpop.eup %1901  ;;  %1191 = vst [vmem:[#allocation9 + $0xf8] sm:$0xff] %v1159_v41  ;;  %v2678_v18 = vadd.f32 %v1270_v44, %v1269_v38  ;;  %v1288_v28 = vrot.slane %v1287_v24, 1  ;;  %v1293_v25 = vadd.f32 %v1292_v19, %v1291_v34 }
 0x2bc   :  { %v1298_v46 = vrot.slane %v1297_v21, 2  ;;  %v1157_v52 = vmul.f32 %v1902_v0, %v2608_v61  ;;  %v1304_v27 = vrot.slane %v1303_v43, 2  ;;  %v1315_v26 = vadd.f32 %v1314_v55, %v2578_v15 }
 0x2bd   :  { %v1310_v3 = vrot.slane %v1309_v36, 2  ;;  %v2684_v11 = vadd.f32 %v1276_v47, %v1275_v8  ;;  %v2686_v6 = vadd.f32 %v1282_v62, %v1281_v1  ;;  %v1322_v33 = vrot.slane %v1321_v53, 2 }
 0x2be   :  { %v1299_v22 = vadd.f32 %v1298_v46, %v1297_v21  ;;  %1189 = vst [vmem:[#allocation9 + $0xe8] sm:$0xff] %v1157_v52  ;;  %v1294_v17 = vrot.slane %v1293_v25, 1  ;;  %v1305_v31 = vadd.f32 %v1304_v27, %v1303_v43  ;;  %v1316_v61 = vrot.slane %v1315_v26, 2 }
 0x2bf   :  { %v1311_v38 = vadd.f32 %v1310_v3, %v1309_v36  ;;  %v2688_v12 = vmul.f32 %v1933_v5, %v1159_v41  ;;  %v1323_v2 = vadd.f32 %v1322_v33, %v1321_v53  ;;  %v1327_v8 = vadd.f32 %v1326_v30, %v2468_v54 }
 0x2c0   :  { %v1300_v15 = vrot.slane %v1299_v22, 1 }
 0x2c1   :  { %2012 = shalt.err (!%p2009_p0)
}
 0x2c2   :  { %s2013_s11 = scalar_lea.hbm %s2846_s5, 4096 }
 0x2c3   :  { %p2014_p1 = scmp.ne.s32.totalorder %s2846_s5, %s2013_s11  ;;  %p2017_p2 = scmp.lt.u32.totalorder %s2013_s11, %s2846_s5 }
 0x2c5   :  { %p2019_p3 = pnand %p2017_p2, %p2014_p1 }
 0x2c7   :  { %2022 = shalt.err (!%p2019_p3)
}
 0x2c8   :  { %1514 = dma.vmem_to_hbm [thread:$0]  %s2682_s29, 4096, %s2846_s5, [#allocation10], %s2057_s1, %s2057_s1, %s2058_s17   ;;  %v2713_v54 = vadd.f32 %v1288_v28, %v1287_v24  ;;  %v1306_v30 = vrot.slane %v1305_v31, 1  ;;  %v1312_v1 = vrot.slane %v1311_v38, 1  ;;  %v1332_v51 = vrot.slane %v2581_v16, 4  ;;  %v1934_v44 = vld [vmem:[#allocation2 + $0xe8] sm:$0xff] }
 0x2c9   :  { %v2716_v42 = vmul.f32 %v1934_v44, %v1157_v52  ;;  %v1317_v34 = vadd.f32 %v1316_v61, %v1315_v26  ;;  %v1328_v4 = vrot.slane %v1327_v8, 2  ;;  %v1338_v63 = vrot.slane %v2584_v23, 4  ;;  %s2061_s5 = smov [#allocation8]  }
 0x2ca   :  { %v2719_v14 = vadd.f32 %v1294_v17, %v1293_v25  ;;  %v2721_v47 = vadd.f32 %v1300_v15, %v1299_v22  ;;  %v1324_v62 = vrot.slane %v1323_v2, 1  ;;  %v1333_v60 = vadd.f32 %v1332_v51, %v2581_v16  ;;  %s1496_s19 = sshll.u32 %s2061_s5, 4  ;;  %s1497_s19 = int_to_ptr.vmem [resolvable:$true] %s1496_s19 }
 0x2cb   :  { %v2724_v41 = vadd.f32 %v1306_v30, %v1305_v31  ;;  %v1329_v24 = vadd.f32 %v1328_v4, %v1327_v8  ;;  %v1339_v19 = vadd.f32 %v1338_v63, %v2584_v23  ;;  %v1344_v21 = vrot.slane %v2587_v10, 4  ;;  %s2023_s20 = scalar_lea.vmem %s1497_s19, 512  ;;  %p2028_p5 = scmp.lt.s32.totalorder %s1497_s19, %s1497_s19 }
 0x2cc   :  { %v2728_v43 = vadd.f32 %v1312_v1, %v1311_v38  ;;  %v1334_v36 = vrot.slane %v1333_v60, 2  ;;  %v1350_v55 = vrot.slane %v2592_v13, 4  ;;  %v1356_v53 = vrot.slane %v2595_v56, 4  ;;  %p2024_p4 = scmp.ne.s32.totalorder %s1497_s19, %s2023_s20  ;;  %p2029_p6 = scmp.lt.s32.totalorder %s2023_s20, %s2023_s20 }
 0x2cd   :  { %v1318_v0 = vrot.slane %v1317_v34, 1  ;;  %v1340_v28 = vrot.slane %v1339_v19, 2  ;;  %v1345_v25 = vadd.f32 %v1344_v21, %v2587_v10  ;;  %v1362_v16 = vrot.slane %v2619_v20, 4 }
 0x2ce   :  { %v1335_v46 = vadd.f32 %v1334_v36, %v1333_v60  ;;  %v1351_v52 = vadd.f32 %v1350_v55, %v2592_v13  ;;  %v1357_v23 = vadd.f32 %v1356_v53, %v2595_v56  ;;  %v1369_v27 = vadd.f32 %v1368_v59, %v2605_v9  ;;  %p2030_p7 = por %p2029_p6, %p2028_p5 }
 0x2cf   :  { %v1330_v3 = vrot.slane %v1329_v24, 1  ;;  %v1341_v26 = vadd.f32 %v1340_v28, %v1339_v19  ;;  %v1346_v22 = vrot.slane %v1345_v25, 2  ;;  %v1363_v33 = vadd.f32 %v1362_v16, %v2619_v20 }
 0x2d0   :  { %v1336_v17 = vrot.slane %v1335_v46, 1  ;;  %v1352_v31 = vrot.slane %v1351_v52, 2  ;;  %v1358_v38 = vrot.slane %v1357_v23, 2  ;;  %v1370_v10 = vrot.slane %v1369_v27, 2  ;;  %p2031_p8 = pnand %p2030_p7, %p2024_p4 }
 0x2d1   :  { %v1342_v61 = vrot.slane %v1341_v26, 1  ;;  %v1347_v5 = vadd.f32 %v1346_v22, %v1345_v25  ;;  %v1364_v15 = vrot.slane %v1363_v33, 2  ;;  %v1375_v13 = vadd.f32 %v1374_v58, %v2636_v50 }
 0x2d2   :  { %v2743_v56 = vadd.f32 %v1324_v62, %v1323_v2  ;;  %v1353_v8 = vadd.f32 %v1352_v31, %v1351_v52  ;;  %v1359_v9 = vadd.f32 %v1358_v38, %v1357_v23  ;;  %v1371_v59 = vadd.f32 %v1370_v10, %v1369_v27 }
 0x2d3   :  { %v2745_v30 = vadd.f32 %v1318_v0, %v1317_v34  ;;  %v1348_v1 = vrot.slane %v1347_v5, 1  ;;  %v2747_v20 = vadd.f32 %v1364_v15, %v1363_v33  ;;  %v1376_v51 = vrot.slane %v1375_v13, 2 }
 0x2d4   :  { %v2749_v44 = vadd.f32 %v1330_v3, %v1329_v24  ;;  %v1354_v4 = vrot.slane %v1353_v8, 1  ;;  %v1360_v63 = vrot.slane %v1359_v9, 1  ;;  %v1380_v60 = vrot.slane %v2622_v35, 4 }
 0x2d5   :  { %v2752_v19 = vadd.f32 %v1336_v17, %v1335_v46  ;;  %v2754_v50 = vadd.f32 %v1342_v61, %v1341_v26  ;;  %v1377_v58 = vadd.f32 %v1376_v51, %v1375_v13  ;;  %v1386_v2 = vrot.slane %v2625_v29, 4 }
 0x2d6   :  { %v2757_v62 = vadd.f32 %v1348_v1, %v1347_v5  ;;  %v1366_v34 = vrot.slane %v2747_v20, 1  ;;  %v1372_v21 = vrot.slane %v1371_v59, 1  ;;  %v1381_v36 = vadd.f32 %v1380_v60, %v2622_v35 }
 0x2d7   :  { %v2761_v24 = vadd.f32 %v1354_v4, %v1353_v8  ;;  %v2763_v55 = vadd.f32 %v1360_v63, %v1359_v9  ;;  %v1387_v53 = vadd.f32 %v1386_v2, %v2625_v29  ;;  %v1392_v0 = vrot.slane %v2658_v37, 4 }
 0x2d8   :  { %v1382_v28 = vrot.slane %v1381_v36, 2  ;;  %v1398_v25 = vrot.slane %v2716_v42, 4  ;;  %v1404_v16 = vrot.slane %v2652_v48, 4  ;;  %v1410_v46 = vrot.slane %v2688_v12, 4 }
 0x2d9   :  { %v1378_v52 = vrot.slane %v1377_v58, 1  ;;  %v1388_v23 = vrot.slane %v1387_v53, 2  ;;  %v1393_v27 = vadd.f32 %v1392_v0, %v2658_v37  ;;  %vm1448_vm0 = vcmask 1041409  }
 0x2da   :  { %v1383_v35 = vadd.f32 %v1382_v28, %v1381_v36  ;;  %v1399_v3 = vadd.f32 %v1398_v25, %v2716_v42  ;;  %v1405_v26 = vadd.f32 %v1404_v16, %v2652_v48  ;;  %v1411_v29 = vadd.f32 %v1410_v46, %v2688_v12 }
 0x2db   :  { %v1389_v22 = vadd.f32 %v1388_v23, %v1387_v53  ;;  %v1394_v33 = vrot.slane %v1393_v27, 2  ;;  %v1449_v17 = vsel %vm1448_vm0, %v2632_v45, %v2630_v57  ;;  %vm1450_vm1 = vcmask 1042434  }
 0x2dc   :  { %v1384_v31 = vrot.slane %v1383_v35, 1  ;;  %v1400_v38 = vrot.slane %v1399_v3, 2  ;;  %v1406_v10 = vrot.slane %v1405_v26, 2  ;;  %v1412_v61 = vrot.slane %v1411_v29, 2 }
 0x2dd   :  { %v1390_v37 = vrot.slane %v1389_v22, 1  ;;  %v1395_v5 = vadd.f32 %v1394_v33, %v1393_v27  ;;  %v1451_v42 = vsel %vm1450_vm1, %v2638_v39, %v1449_v17  ;;  %vm1452_vm2 = vcmask 1043459  }
 0x2de   :  { %v1373_v48 = vadd.f32 %v1372_v21, %v1371_v59  ;;  %v1401_v15 = vadd.f32 %v1400_v38, %v1399_v3  ;;  %v1407_v12 = vadd.f32 %v1406_v10, %v1405_v26  ;;  %v1413_v13 = vadd.f32 %v1412_v61, %v1411_v29 }
 0x2df   :  { %v1379_v8 = vadd.f32 %v1378_v52, %v1377_v58  ;;  %v1396_v9 = vrot.slane %v1395_v5, 1  ;;  %v1453_v57 = vsel %vm1452_vm2, %v2654_v49, %v1451_v42  ;;  %vm1454_vm3 = vcmask 1044484  }
 0x2e0   :  { %v1385_v45 = vadd.f32 %v1384_v31, %v1383_v35  ;;  %v1391_v1 = vadd.f32 %v1390_v37, %v1389_v22  ;;  %v1402_v51 = vrot.slane %v1401_v15, 1  ;;  %v1455_v4 = vsel %vm1454_vm3, %v2660_v7, %v1453_v57 }
 0x2e1   :  { %v1408_v63 = vrot.slane %v1407_v12, 1  ;;  %vm1456_vm4 = vcmask 1045509   ;;  %vm1458_vm5 = vcmask 1046534   ;;  %vm1460_vm6 = vcmask 1047559  }
 0x2e2   :  { %v1397_v39 = vadd.f32 %v1396_v9, %v1395_v5  ;;  %v1403_v59 = vadd.f32 %v1402_v51, %v1401_v15  ;;  %v1414_v60 = vrot.slane %v1413_v13, 1  ;;  %v1457_v58 = vsel %vm1456_vm4, %v2662_v40, %v1455_v4 }
 0x2e3   :  { %v1459_v49 = vsel %vm1458_vm5, %v2667_v32, %v1457_v58  ;;  %v1462_v2 = vsel %vm1448_vm0, %v2686_v6, %v2684_v11  ;;  %v1469_v7 = vsel %vm1448_vm0, %v2749_v44, %v2743_v56  ;;  %v1476_v21 = vsel %vm1448_vm0, %v1379_v8, %v1373_v48 }
 0x2e4   :  { %v1461_v36 = vsel %vm1460_vm6, %v2678_v18, %v1459_v49  ;;  %v1463_v53 = vsel %vm1450_vm1, %v2713_v54, %v1462_v2  ;;  %v1470_v40 = vsel %vm1450_vm1, %v2752_v19, %v1469_v7  ;;  %v1477_v32 = vsel %vm1450_vm1, %v1385_v45, %v1476_v21 }
 0x2e5   :  { %v1367_v0 = vadd.f32 %v1366_v34, %v2747_v20  ;;  %v1464_v11 = vsel %vm1452_vm2, %v2719_v14, %v1463_v53  ;;  %v1471_v6 = vsel %vm1452_vm2, %v2754_v50, %v1470_v40  ;;  %v1478_v56 = vsel %vm1452_vm2, %v1391_v1, %v1477_v32  ;;  %1487 = vst [vmem:[#allocation8] sm:$0xff] %v1461_v36 }
 0x2e6   :  { %v1409_v18 = vadd.f32 %v1408_v63, %v1407_v12  ;;  %v1465_v54 = vsel %vm1454_vm3, %v2721_v47, %v1464_v11  ;;  %v1472_v44 = vsel %vm1454_vm3, %v2757_v62, %v1471_v6  ;;  %v1479_v20 = vsel %vm1454_vm3, %v1397_v39, %v1478_v56 }
 0x2e7   :  { %v1415_v19 = vadd.f32 %v1414_v60, %v1413_v13  ;;  %v1466_v14 = vsel %vm1456_vm4, %v2724_v41, %v1465_v54  ;;  %v1473_v50 = vsel %vm1456_vm4, %v2761_v24, %v1472_v44  ;;  %v1480_v34 = vsel %vm1456_vm4, %v1403_v59, %v1479_v20 }
 0x2e8   :  { %v1467_v28 = vsel %vm1458_vm5, %v2728_v43, %v1466_v14  ;;  %v1474_v47 = vsel %vm1458_vm5, %v2763_v55, %v1473_v50  ;;  %v1481_v25 = vsel %vm1458_vm5, %v1409_v18, %v1480_v34 }
 0x2e9   :  { %v1468_v62 = vsel %vm1460_vm6, %v2745_v30, %v1467_v28  ;;  %v1475_v16 = vsel %vm1460_vm6, %v1367_v0, %v1474_v47  ;;  %v1482_v41 = vsel %vm1460_vm6, %v1415_v19, %v1481_v25 }
 0x2ea   :  { %1488 = vst [vmem:[#allocation8 + $0x8] sm:$0xff] %v1468_v62  ;;  %1489 = vst [vmem:[#allocation8 + $0x10] sm:$0xff] %v1475_v16 }
 0x2eb   :  { %1490 = vst [vmem:[#allocation8 + $0x18] sm:$0xff] %v1482_v41 }
 0x2ec   :  { %2034 = shalt.err (!%p2031_p8)
}
 0x2ed   :  { %s2035_s23 = scalar_lea.hbm %s2845_s4, 512 }
 0x2ee   :  { %p2036_p9 = scmp.ne.s32.totalorder %s2845_s4, %s2035_s23  ;;  %p2039_p10 = scmp.lt.u32.totalorder %s2035_s23, %s2845_s4 }
 0x2f0   :  { %p2041_p11 = pnand %p2039_p10, %p2036_p9 }
 0x2f2   :  { %2044 = shalt.err (!%p2041_p11)
}
 0x2f3   :  { %1502 = dma.vmem_to_hbm [thread:$0]  %s1497_s19, 512, %s2845_s4, [#allocation4], %s2057_s1, %s2057_s1, %s2058_s17  }
 0x2f4   :  { %2049 = dma.done.wait [#allocation4], 512  }
 0x2f5   :  { %2050 = vsyncadd [#allocation4], 4294966784 }
 0x2f6   :  { %2051 = dma.done.wait [#allocation10], 4096  }
 0x2f7   :  { %2052 = vsyncadd [#allocation10], 4294963200 }
 0x2f8   :  { %1521 = vsyncpa [#allocation3], 1 }
 0x2f9   :  { %1522 = vsyncpa [#allocation6], 1 }
 0x2fa   :  { %1523 = vsyncpa [#allocation4], 1 }
 0x2fb   :  { %1524 = vsyncpa [#allocation10], 1 }

// kernel: tpu_custom_call.1
= control target key start
LH: loop header
LB: loop body
LE: loop exit
PB: predicated region body
PF: predicated region fallthrough
CT: control target
= control target key end

     0   :  { %11 = vsyncpa [#allocation3], 0  ;;  %s2841_s0 = inlined_call_operand.hbm [shape: f32[32,8,128], index: 0, kind: input, shape index: {}]   ;;  %s2842_s1 = inlined_call_operand.hbm [shape: bf16[128,128], index: 1, kind: input, shape index: {}]   ;;  %s2843_s2 = inlined_call_operand.vmem [shape: f32[1,128], index: 2, kind: input, shape index: {}]   ;;  %s2844_s3 = inlined_call_operand.hbm [shape: bf16[128,128], index: 3, kind: input, shape index: {}]   ;;  %s2845_s4 = inlined_call_operand.hbm [shape: f32[32,128], index: 4, kind: output, shape index: {0}]   ;;  %s2846_s5 = inlined_call_operand.hbm [shape: f32[32,8,128], index: 5, kind: output, shape index: {1}]  }
   0x1   :  { %12 = vsyncpa [#allocation6], 0 }
   0x2   :  { %13 = vsyncpa [#allocation4], 0 }
   0x3   :  { %14 = vsyncpa [#allocation10], 0  ;;  %s2053_s18 = smov [#allocation5]   ;;  %s1935_s22 = scalar_lea.hbm %s2842_s1, 1024 }
   0x4   :  { %s32_s19 = sshll.u32 %s2053_s18, 4  ;;  %p1936_p0 = scmp.ne.s32.totalorder %s2842_s1, %s1935_s22  ;;  %s33_s19 = int_to_ptr.vmem [resolvable:$true] %s32_s19 }
   0x5   :  { %p1939_p1 = scmp.lt.u32.totalorder %s1935_s22, %s2842_s1 }
   0x7   :  { %p1941_p2 = pnand %p1939_p1, %p1936_p0 }
   0x9   :  { %1944 = shalt.err (!%p1941_p2)
}
   0xa   :  { %s1945_s27 = scalar_lea.vmem %s33_s19, 1024  ;;  %p1950_p4 = scmp.lt.s32.totalorder %s33_s19, %s33_s19 }
   0xb   :  { %p1946_p3 = scmp.ne.s32.totalorder %s33_s19, %s1945_s27  ;;  %p1951_p5 = scmp.lt.s32.totalorder %s1945_s27, %s1945_s27 }
   0xd   :  { %p1952_p6 = por %p1951_p5, %p1950_p4 }
   0xf   :  { %p1953_p7 = pnand %p1952_p6, %p1946_p3 }
  0x11   :  { %1956 = shalt.err (!%p1953_p7)
}
  0x12   :  { %s2054_s28 = smov 64   ;;  %s2055_s29 = smov 4  }
  0x13   :  { %38 = dma.hbm_to_vmem [thread:$0]  %s2842_s1, 1024, %s33_s19, [#allocation6], %s2054_s28, %s2054_s28, %s2055_s29  }
  0x14   :  { %s2056_s7 = smov [#allocation2]   ;;  %s1957_s11 = scalar_lea.hbm %s2841_s0, 4096 }
  0x15   :  { %s20_s8 = sshll.u32 %s2056_s7, 4  ;;  %p1958_p8 = scmp.ne.s32.totalorder %s2841_s0, %s1957_s11  ;;  %s21_s8 = int_to_ptr.vmem [resolvable:$true] %s20_s8 }
  0x16   :  { %p1961_p9 = scmp.lt.u32.totalorder %s1957_s11, %s2841_s0 }
  0x18   :  { %p1963_p10 = pnand %p1961_p9, %p1958_p8 }
  0x1a   :  { %1966 = shalt.err (!%p1963_p10)
}
  0x1b   :  { %s1967_s16 = scalar_lea.vmem %s21_s8, 4096  ;;  %p1972_p12 = scmp.lt.s32.totalorder %s21_s8, %s21_s8 }
  0x1c   :  { %p1968_p11 = scmp.ne.s32.totalorder %s21_s8, %s1967_s16  ;;  %p1973_p13 = scmp.lt.s32.totalorder %s1967_s16, %s1967_s16 }
  0x1e   :  { %p1974_p0 = por %p1973_p13, %p1972_p12 }
  0x20   :  { %p1975_p1 = pnand %p1974_p0, %p1968_p11 }
  0x22   :  { %1978 = shalt.err (!%p1975_p1)
}
  0x23   :  { %s2057_s1 = smov 128   ;;  %s2058_s17 = smov 8  }
  0x24   :  { %26 = dma.hbm_to_vmem [thread:$0]  %s2841_s0, 4096, %s21_s8, [#allocation3], %s2057_s1, %s2057_s1, %s2058_s17  }
  0x25   :  { %s2059_s20 = smov [#allocation7]   ;;  %s1979_s24 = scalar_lea.hbm %s2844_s3, 1024 }
  0x26   :  { %s46_s21 = sshll.u32 %s2059_s20, 4  ;;  %p1980_p2 = scmp.ne.s32.totalorder %s2844_s3, %s1979_s24  ;;  %s47_s21 = int_to_ptr.vmem [resolvable:$true] %s46_s21 }
  0x27   :  { %p1983_p3 = scmp.lt.u32.totalorder %s1979_s24, %s2844_s3 }
  0x29   :  { %p1985_p4 = pnand %p1983_p3, %p1980_p2 }
  0x2b   :  { %1988 = shalt.err (!%p1985_p4)
}
  0x2c   :  { %s1989_s6 = scalar_lea.vmem %s47_s21, 1024  ;;  %p1994_p6 = scmp.lt.s32.totalorder %s47_s21, %s47_s21 }
  0x2d   :  { %p1990_p5 = scmp.ne.s32.totalorder %s47_s21, %s1989_s6  ;;  %p1995_p7 = scmp.lt.s32.totalorder %s1989_s6, %s1989_s6 }
  0x2f   :  { %p1996_p8 = por %p1995_p7, %p1994_p6 }
  0x31   :  { %p1997_p9 = pnand %p1996_p8, %p1990_p5 }
  0x33   :  { %2000 = shalt.err (!%p1997_p9)
}
  0x34   :  { %52 = dma.hbm_to_vmem [thread:$0]  %s2844_s3, 1024, %s47_s21, [#allocation6], %s2054_s28, %s2054_s28, %s2055_s29  }
  0x35   :  { %2045 = dma.done.wait [#allocation3], 4096  }
  0x36   :  { %2046 = vsyncadd [#allocation3], 4294963200 }
  0x37   :  { %2047 = dma.done.wait [#allocation6], 2048  }
  0x38   :  { %2048 = vsyncadd [#allocation6], 4294965248  ;;  %v1695_v0 = vld [vmem:[#allocation5] sm:$0xff]   ;;  %v1696_v1 = vld [vmem:[#allocation5 + $0x8] sm:$0xff]  }
  0x39   :  { %1590 = vmatprep.subr.bf16.mxu0 %v1695_v0  ;;  %v1697_v2 = vld [vmem:[#allocation5 + $0x10] sm:$0xff]   ;;  %v1698_v3 = vld [vmem:[#allocation5 + $0x18] sm:$0xff]   ;;  %v63_v4 = vld [vmem:[#allocation2] sm:$0xff] }
  0x3a   :  { %1591 = vmatpush3.bf16.msra.mxu0 %v1695_v0  ;;  %v64_v5 = vld [vmem:[#allocation2 + $0x8] sm:$0xff]  ;;  %v1699_v7 = vld [vmem:[#allocation5 + $0x20] sm:$0xff]   ;;  %v1701_v9 = vld [vmem:[#allocation5 + $0x30] sm:$0xff]  }
  0x3b   :  { %1592 = vmatprep.subr.bf16.mxu0 %v1696_v1  ;;  %v95_v6 = vpack.c.bf16 %v64_v5, %v63_v4  ;;  %v1700_v8 = vld [vmem:[#allocation5 + $0x28] sm:$0xff]   ;;  %v1703_v10 = vld [vmem:[#allocation7] sm:$0xff]   ;;  %v1705_v12 = vld [vmem:[#allocation7 + $0x10] sm:$0xff]  }
  0x3c   :  { %v1704_v11 = vld [vmem:[#allocation7 + $0x8] sm:$0xff]   ;;  %1638 = vmatprep.subr.bf16.mxu1 %v1703_v10  ;;  %v1702_v13 = vld [vmem:[#allocation5 + $0x38] sm:$0xff]   ;;  %v65_v14 = vld [vmem:[#allocation2 + $0x10] sm:$0xff] }
  0x3d   :  { %1606 = vmatprep.mubr.bf16.mxu0 %v95_v6  ;;  %1639 = vmatpush3.bf16.msra.mxu1 %v1703_v10  ;;  %v66_v15 = vld [vmem:[#allocation2 + $0x18] sm:$0xff]  ;;  %v67_v16 = vld [vmem:[#allocation2 + $0x20] sm:$0xff]  ;;  %v68_v17 = vld [vmem:[#allocation2 + $0x28] sm:$0xff] }
  0x3e   :  { %1593 = vmatpush3.bf16.msra.mxu0 %v1696_v1  ;;  %1640 = vmatprep.subr.bf16.mxu1 %v1704_v11  ;;  %v96_v18 = vpack.c.bf16 %v66_v15, %v65_v14  ;;  %v97_v19 = vpack.c.bf16 %v68_v17, %v67_v16  ;;  %v69_v20 = vld [vmem:[#allocation2 + $0x30] sm:$0xff]  ;;  %v70_v21 = vld [vmem:[#allocation2 + $0x38] sm:$0xff]  ;;  %v71_v22 = vld [vmem:[#allocation2 + $0x40] sm:$0xff] }
  0x3f   :  { %1594 = vmatprep.subr.bf16.mxu0 %v1697_v2  ;;  %v72_v23 = vld [vmem:[#allocation2 + $0x48] sm:$0xff]  ;;  %v98_v24 = vpack.c.bf16 %v70_v21, %v69_v20  ;;  %v73_v26 = vld [vmem:[#allocation2 + $0x50] sm:$0xff]  ;;  %v74_v27 = vld [vmem:[#allocation2 + $0x58] sm:$0xff] }
  0x40   :  { %v99_v25 = vpack.c.bf16 %v72_v23, %v71_v22  ;;  %v75_v28 = vld [vmem:[#allocation2 + $0x60] sm:$0xff]  ;;  %v76_v29 = vld [vmem:[#allocation2 + $0x68] sm:$0xff]  ;;  %v100_v30 = vpack.c.bf16 %v74_v27, %v73_v26  ;;  %v77_v32 = vld [vmem:[#allocation2 + $0x70] sm:$0xff] }
  0x41   :  { %1641 = vmatpush3.bf16.msra.mxu1 %v1704_v11  ;;  %v101_v31 = vpack.c.bf16 %v76_v29, %v75_v28  ;;  %v78_v33 = vld [vmem:[#allocation2 + $0x78] sm:$0xff]  ;;  %v79_v34 = vld [vmem:[#allocation2 + $0x80] sm:$0xff]  ;;  %v80_v35 = vld [vmem:[#allocation2 + $0x88] sm:$0xff] }
  0x42   :  { %1595 = vmatpush3.bf16.msra.mxu0 %v1697_v2  ;;  %1642 = vmatprep.subr.bf16.mxu1 %v1705_v12  ;;  %v102_v36 = vpack.c.bf16 %v78_v33, %v77_v32  ;;  %v103_v37 = vpack.c.bf16 %v80_v35, %v79_v34  ;;  %v81_v38 = vld [vmem:[#allocation2 + $0x90] sm:$0xff]  ;;  %v82_v39 = vld [vmem:[#allocation2 + $0x98] sm:$0xff]  ;;  %v83_v40 = vld [vmem:[#allocation2 + $0xa0] sm:$0xff] }
  0x43   :  { %1596 = vmatprep.subr.bf16.mxu0 %v1698_v3  ;;  %v84_v41 = vld [vmem:[#allocation2 + $0xa8] sm:$0xff]  ;;  %v104_v42 = vpack.c.bf16 %v82_v39, %v81_v38  ;;  %v85_v44 = vld [vmem:[#allocation2 + $0xb0] sm:$0xff]  ;;  %v86_v45 = vld [vmem:[#allocation2 + $0xb8] sm:$0xff] }
  0x44   :  { %v105_v43 = vpack.c.bf16 %v84_v41, %v83_v40  ;;  %v87_v46 = vld [vmem:[#allocation2 + $0xc0] sm:$0xff]  ;;  %v88_v47 = vld [vmem:[#allocation2 + $0xc8] sm:$0xff]  ;;  %v106_v48 = vpack.c.bf16 %v86_v45, %v85_v44  ;;  %v89_v50 = vld [vmem:[#allocation2 + $0xd0] sm:$0xff] }
  0x45   :  { %1643 = vmatpush3.bf16.msra.mxu1 %v1705_v12  ;;  %v107_v49 = vpack.c.bf16 %v88_v47, %v87_v46  ;;  %v90_v51 = vld [vmem:[#allocation2 + $0xd8] sm:$0xff]  ;;  %v91_v52 = vld [vmem:[#allocation2 + $0xe0] sm:$0xff]  ;;  %v92_v53 = vld [vmem:[#allocation2 + $0xe8] sm:$0xff] }
  0x46   :  { %1597 = vmatpush3.bf16.msra.mxu0 %v1698_v3  ;;  %v108_v54 = vpack.c.bf16 %v90_v51, %v89_v50  ;;  %v109_v55 = vpack.c.bf16 %v92_v53, %v91_v52  ;;  %v93_v56 = vld [vmem:[#allocation2 + $0xf0] sm:$0xff]  ;;  %v94_v57 = vld [vmem:[#allocation2 + $0xf8] sm:$0xff]  ;;  %v1707_v60 = vld [vmem:[#allocation7 + $0x20] sm:$0xff]  }
  0x47   :  { %1598 = vmatprep.subr.bf16.mxu0 %v1699_v7  ;;  %v110_v58 = vpack.c.bf16 %v94_v57, %v93_v56  ;;  %v1706_v59 = vld [vmem:[#allocation7 + $0x18] sm:$0xff]   ;;  %v1708_v61 = vld [vmem:[#allocation7 + $0x28] sm:$0xff]   ;;  %v1709_v62 = vld [vmem:[#allocation7 + $0x30] sm:$0xff]  }
  0x48   :  { %1644 = vmatprep.subr.bf16.mxu1 %v1706_v59  ;;  %v1710_v63 = vld [vmem:[#allocation7 + $0x38] sm:$0xff]   ;;  %v2140_v0 = vld [vmem:[%s2843_s2] ss:$0 sm:$0xff]  ;;  %s2060_s2 = smov [#allocation9]  }
  0x49   :  { %1645 = vmatpush3.bf16.msra.mxu1 %v1706_v59  ;;  %s1508_s29 = sshll.u32 %s2060_s2, 4  ;;  %s2682_s29 = int_to_ptr.vmem [resolvable:$true] %s1508_s29 }
  0x4a   :  { %1599 = vmatpush3.bf16.msra.mxu0 %v1699_v7  ;;  %1646 = vmatprep.subr.bf16.mxu1 %v1707_v60  ;;  %s2001_s8 = scalar_lea.vmem %s2682_s29, 4096  ;;  %p2006_p11 = scmp.lt.s32.totalorder %s2682_s29, %s2682_s29 }
  0x4b   :  { %1600 = vmatprep.subr.bf16.mxu0 %v1700_v8  ;;  %p2002_p10 = scmp.ne.s32.totalorder %s2682_s29, %s2001_s8  ;;  %p2007_p12 = scmp.lt.s32.totalorder %s2001_s8, %s2001_s8 }
  0x4d   :  { %1647 = vmatpush3.bf16.msra.mxu1 %v1707_v60  ;;  %p2008_p13 = por %p2007_p12, %p2006_p11 }
  0x4e   :  { %1601 = vmatpush3.bf16.msra.mxu0 %v1700_v8  ;;  %1648 = vmatprep.subr.bf16.mxu1 %v1708_v61 }
  0x4f   :  { %1602 = vmatprep.subr.bf16.mxu0 %v1701_v9  ;;  %p2009_p0 = pnand %p2008_p13, %p2002_p10 }
  0x51   :  { %1649 = vmatpush3.bf16.msra.mxu1 %v1708_v61 }
  0x52   :  { %1603 = vmatpush3.bf16.msra.mxu0 %v1701_v9  ;;  %1650 = vmatprep.subr.bf16.mxu1 %v1709_v62 }
  0x53   :  { %1604 = vmatprep.subr.bf16.mxu0 %v1702_v13 }
  0x55   :  { %1651 = vmatpush3.bf16.msra.mxu1 %v1709_v62 }
  0x56   :  { %1605 = vmatpush3.bf16.msra.mxu0 %v1702_v13  ;;  %1652 = vmatprep.subr.bf16.mxu1 %v1710_v63 }
  0x59   :  { %1607 = vmatmul.mubr.bf16.vlgmr.msra.gmra.mrb[0].mxu0 %v96_v18  ;;  %1653 = vmatpush3.bf16.msra.mxu1 %v1710_v63 }
  0x5a   :  { %1610 = vmatprep.mubr.bf16.mxu0 %v97_v19 }
  0x61   :  { %1611 = vmatmul.mubr.bf16.gmra.mrb[4].mxu0 %v98_v24 }
  0x62   :  { %1614 = vmatprep.mubr.bf16.mxu0 %v99_v25 }
  0x69   :  { %1615 = vmatmul.mubr.bf16.gmra.mrb[8].mxu0 %v100_v30 }
  0x6a   :  { %1618 = vmatprep.mubr.bf16.mxu0 %v101_v31 }
  0x71   :  { %1619 = vmatmul.mubr.bf16.gmra.mrb[12].mxu0 %v102_v36 }
  0x72   :  { %1622 = vmatprep.mubr.bf16.mxu0 %v103_v37 }
  0x79   :  { %1623 = vmatmul.mubr.bf16.gmra.mrb[16].mxu0 %v104_v42 }
  0x7a   :  { %1626 = vmatprep.mubr.bf16.mxu0 %v105_v43 }
  0x81   :  { %1627 = vmatmul.mubr.bf16.gmra.mrb[20].mxu0 %v106_v48 }
  0x82   :  { %1630 = vmatprep.mubr.bf16.mxu0 %v107_v49 }
  0x89   :  { %1631 = vmatmul.mubr.bf16.gmra.mrb[24].mxu0 %v108_v54 }
  0x8a   :  { %1634 = vmatprep.mubr.bf16.mxu0 %v109_v55 }
  0x91   :  { %1635 = vmatmul.mubr.bf16.gmra.mrb[28].mxu0 %v110_v58 }
 0x12c   :  { %v1608_v1 = vpop.f32.mrb[0].mxu0 }
 0x12d   :  { %v225_v2 = vadd.f32 %v1608_v1, %v2140_v0  ;;  %v216_v3 = vpop.f32.mrb[1].mxu0 }
 0x12e   :  { %v217_v4 = vadd.f32 %v2140_v0, %v216_v3  ;;  %v1609_v5 = vpop.f32.mrb[2].mxu0 }
 0x12f   :  { %1711 = vtanh.f32 %v225_v2  ;;  %v228_v6 = vadd.f32 %v1609_v5, %v2140_v0  ;;  %v219_v7 = vpop.f32.mrb[3].mxu0 }
 0x130   :  { %1713 = vtanh.f32 %v217_v4  ;;  %v220_v8 = vadd.f32 %v2140_v0, %v219_v7 }
 0x131   :  { %1715 = vtanh.f32 %v228_v6 }
 0x132   :  { %1717 = vtanh.f32 %v220_v8 }
 0x134   :  { %v1612_v9 = vpop.f32.mrb[4].mxu0 }
 0x135   :  { %v241_v10 = vadd.f32 %v1612_v9, %v2140_v0  ;;  %v232_v11 = vpop.f32.mrb[5].mxu0 }
 0x136   :  { %v233_v12 = vadd.f32 %v2140_v0, %v232_v11  ;;  %v1613_v13 = vpop.f32.mrb[6].mxu0 }
 0x137   :  { %1719 = vtanh.f32 %v241_v10  ;;  %v244_v14 = vadd.f32 %v1613_v13, %v2140_v0  ;;  %v235_v15 = vpop.f32.mrb[7].mxu0 }
 0x138   :  { %1721 = vtanh.f32 %v233_v12  ;;  %v236_v16 = vadd.f32 %v2140_v0, %v235_v15 }
 0x139   :  { %v1712_v17 = vpop.eup %1711  ;;  %1723 = vtanh.f32 %v244_v14 }
 0x13a   :  { %v1714_v18 = vpop.eup %1713  ;;  %1725 = vtanh.f32 %v236_v16 }
 0x13b   :  { %v1716_v19 = vpop.eup %1715 }
 0x13c   :  { %v1718_v20 = vpop.eup %1717  ;;  %v1616_v21 = vpop.f32.mrb[8].mxu0  ;;  %v376_v22 = vpack.c.bf16 %v1716_v19, %v1712_v17 }
 0x13d   :  { %v257_v23 = vadd.f32 %v1616_v21, %v2140_v0  ;;  %v248_v24 = vpop.f32.mrb[9].mxu0  ;;  %v375_v25 = vpack.c.bf16 %v1718_v20, %v1714_v18 }
 0x13e   :  { %v249_v26 = vadd.f32 %v2140_v0, %v248_v24  ;;  %v1617_v27 = vpop.f32.mrb[10].mxu0 }
 0x13f   :  { %1727 = vtanh.f32 %v257_v23  ;;  %v260_v28 = vadd.f32 %v1617_v27, %v2140_v0  ;;  %v251_v29 = vpop.f32.mrb[11].mxu0  ;;  %1654 = vmatprep.mubr.bf16.mxu1 %v375_v25 }
 0x140   :  { %1729 = vtanh.f32 %v249_v26  ;;  %v252_v30 = vadd.f32 %v2140_v0, %v251_v29  ;;  %1655 = vmatmul.mubr.bf16.vlgmr.msra.gmra.mrb[0].mxu1 %v376_v22 }
 0x141   :  { %v1720_v31 = vpop.eup %1719  ;;  %1731 = vtanh.f32 %v260_v28 }
 0x142   :  { %v1722_v32 = vpop.eup %1721  ;;  %1733 = vtanh.f32 %v252_v30 }
 0x143   :  { %v1724_v33 = vpop.eup %1723 }
 0x144   :  { %v1726_v34 = vpop.eup %1725  ;;  %v1620_v35 = vpop.f32.mrb[12].mxu0  ;;  %v378_v36 = vpack.c.bf16 %v1724_v33, %v1720_v31 }
 0x145   :  { %v273_v37 = vadd.f32 %v1620_v35, %v2140_v0  ;;  %v264_v38 = vpop.f32.mrb[13].mxu0  ;;  %v377_v39 = vpack.c.bf16 %v1726_v34, %v1722_v32 }
 0x146   :  { %v265_v40 = vadd.f32 %v2140_v0, %v264_v38  ;;  %v1621_v41 = vpop.f32.mrb[14].mxu0 }
 0x147   :  { %1735 = vtanh.f32 %v273_v37  ;;  %v276_v42 = vadd.f32 %v1621_v41, %v2140_v0  ;;  %v267_v43 = vpop.f32.mrb[15].mxu0  ;;  %1658 = vmatprep.mubr.bf16.mxu1 %v377_v39 }
 0x148   :  { %1737 = vtanh.f32 %v265_v40  ;;  %v268_v44 = vadd.f32 %v2140_v0, %v267_v43  ;;  %1659 = vmatmul.mubr.bf16.gmra.mrb[4].mxu1 %v378_v36 }
 0x149   :  { %v1728_v45 = vpop.eup %1727  ;;  %1739 = vtanh.f32 %v276_v42 }
 0x14a   :  { %v1730_v46 = vpop.eup %1729  ;;  %1741 = vtanh.f32 %v268_v44 }
 0x14b   :  { %v1732_v47 = vpop.eup %1731 }
 0x14c   :  { %v1734_v48 = vpop.eup %1733  ;;  %v1624_v49 = vpop.f32.mrb[16].mxu0  ;;  %v380_v50 = vpack.c.bf16 %v1732_v47, %v1728_v45 }
 0x14d   :  { %v289_v51 = vadd.f32 %v1624_v49, %v2140_v0  ;;  %v280_v52 = vpop.f32.mrb[17].mxu0  ;;  %v379_v53 = vpack.c.bf16 %v1734_v48, %v1730_v46 }
 0x14e   :  { %v281_v54 = vadd.f32 %v2140_v0, %v280_v52  ;;  %v1625_v55 = vpop.f32.mrb[18].mxu0 }
 0x14f   :  { %1743 = vtanh.f32 %v289_v51  ;;  %v292_v56 = vadd.f32 %v1625_v55, %v2140_v0  ;;  %v283_v57 = vpop.f32.mrb[19].mxu0  ;;  %1662 = vmatprep.mubr.bf16.mxu1 %v379_v53 }
 0x150   :  { %1745 = vtanh.f32 %v281_v54  ;;  %v284_v58 = vadd.f32 %v2140_v0, %v283_v57  ;;  %1663 = vmatmul.mubr.bf16.gmra.mrb[8].mxu1 %v380_v50 }
 0x151   :  { %v1736_v59 = vpop.eup %1735  ;;  %1747 = vtanh.f32 %v292_v56 }
 0x152   :  { %v1738_v60 = vpop.eup %1737  ;;  %1749 = vtanh.f32 %v284_v58 }
 0x153   :  { %v1740_v61 = vpop.eup %1739 }
 0x154   :  { %v1742_v62 = vpop.eup %1741  ;;  %v1628_v63 = vpop.f32.mrb[20].mxu0  ;;  %v382_v1 = vpack.c.bf16 %v1740_v61, %v1736_v59 }
 0x155   :  { %v305_v2 = vadd.f32 %v1628_v63, %v2140_v0  ;;  %v296_v3 = vpop.f32.mrb[21].mxu0  ;;  %v381_v4 = vpack.c.bf16 %v1742_v62, %v1738_v60 }
 0x156   :  { %v297_v5 = vadd.f32 %v2140_v0, %v296_v3  ;;  %v1629_v6 = vpop.f32.mrb[22].mxu0 }
 0x157   :  { %1751 = vtanh.f32 %v305_v2  ;;  %v308_v7 = vadd.f32 %v1629_v6, %v2140_v0  ;;  %v299_v8 = vpop.f32.mrb[23].mxu0  ;;  %1666 = vmatprep.mubr.bf16.mxu1 %v381_v4 }
 0x158   :  { %1753 = vtanh.f32 %v297_v5  ;;  %v300_v9 = vadd.f32 %v2140_v0, %v299_v8  ;;  %1667 = vmatmul.mubr.bf16.gmra.mrb[12].mxu1 %v382_v1 }
 0x159   :  { %v1744_v10 = vpop.eup %1743  ;;  %1755 = vtanh.f32 %v308_v7 }
 0x15a   :  { %v1746_v11 = vpop.eup %1745  ;;  %1757 = vtanh.f32 %v300_v9 }
 0x15b   :  { %v1748_v12 = vpop.eup %1747 }
 0x15c   :  { %v1750_v13 = vpop.eup %1749  ;;  %v1632_v14 = vpop.f32.mrb[24].mxu0  ;;  %v384_v15 = vpack.c.bf16 %v1748_v12, %v1744_v10 }
 0x15d   :  { %v321_v16 = vadd.f32 %v1632_v14, %v2140_v0  ;;  %v312_v17 = vpop.f32.mrb[25].mxu0  ;;  %v383_v18 = vpack.c.bf16 %v1750_v13, %v1746_v11 }
 0x15e   :  { %v313_v19 = vadd.f32 %v2140_v0, %v312_v17  ;;  %v1633_v20 = vpop.f32.mrb[26].mxu0 }
 0x15f   :  { %1759 = vtanh.f32 %v321_v16  ;;  %v324_v21 = vadd.f32 %v1633_v20, %v2140_v0  ;;  %v315_v22 = vpop.f32.mrb[27].mxu0  ;;  %1670 = vmatprep.mubr.bf16.mxu1 %v383_v18 }
 0x160   :  { %1761 = vtanh.f32 %v313_v19  ;;  %v316_v23 = vadd.f32 %v2140_v0, %v315_v22  ;;  %1671 = vmatmul.mubr.bf16.gmra.mrb[16].mxu1 %v384_v15 }
 0x161   :  { %v1752_v24 = vpop.eup %1751  ;;  %1763 = vtanh.f32 %v324_v21 }
 0x162   :  { %v1754_v25 = vpop.eup %1753  ;;  %1765 = vtanh.f32 %v316_v23 }
 0x163   :  { %v1756_v26 = vpop.eup %1755 }
 0x164   :  { %v1758_v27 = vpop.eup %1757  ;;  %v1636_v28 = vpop.f32.mrb[28].mxu0  ;;  %v386_v29 = vpack.c.bf16 %v1756_v26, %v1752_v24 }
 0x165   :  { %v337_v30 = vadd.f32 %v1636_v28, %v2140_v0  ;;  %v328_v31 = vpop.f32.mrb[29].mxu0  ;;  %v385_v32 = vpack.c.bf16 %v1758_v27, %v1754_v25 }
 0x166   :  { %v329_v33 = vadd.f32 %v2140_v0, %v328_v31  ;;  %v1637_v34 = vpop.f32.mrb[30].mxu0 }
 0x167   :  { %1767 = vtanh.f32 %v337_v30  ;;  %v340_v35 = vadd.f32 %v1637_v34, %v2140_v0  ;;  %v331_v36 = vpop.f32.mrb[31].mxu0  ;;  %1674 = vmatprep.mubr.bf16.mxu1 %v385_v32 }
 0x168   :  { %1769 = vtanh.f32 %v329_v33  ;;  %v332_v37 = vadd.f32 %v2140_v0, %v331_v36  ;;  %1675 = vmatmul.mubr.bf16.gmra.mrb[20].mxu1 %v386_v29 }
 0x169   :  { %v1760_v38 = vpop.eup %1759  ;;  %1771 = vtanh.f32 %v340_v35 }
 0x16a   :  { %v1762_v39 = vpop.eup %1761  ;;  %1773 = vtanh.f32 %v332_v37 }
 0x16b   :  { %v1764_v40 = vpop.eup %1763 }
 0x16c   :  { %v1766_v41 = vpop.eup %1765  ;;  %v388_v42 = vpack.c.bf16 %v1764_v40, %v1760_v38 }
 0x16d   :  { %v387_v43 = vpack.c.bf16 %v1766_v41, %v1762_v39 }
 0x16f   :  { %1678 = vmatprep.mubr.bf16.mxu1 %v387_v43 }
 0x170   :  { %1679 = vmatmul.mubr.bf16.gmra.mrb[24].mxu1 %v388_v42 }
 0x171   :  { %v1768_v44 = vpop.eup %1767 }
 0x172   :  { %v1770_v45 = vpop.eup %1769 }
 0x173   :  { %v1772_v46 = vpop.eup %1771 }
 0x174   :  { %v1774_v47 = vpop.eup %1773  ;;  %v390_v48 = vpack.c.bf16 %v1772_v46, %v1768_v44 }
 0x175   :  { %v389_v49 = vpack.c.bf16 %v1774_v47, %v1770_v45 }
 0x177   :  { %1682 = vmatprep.mubr.bf16.mxu1 %v389_v49 }
 0x178   :  { %1683 = vmatmul.mubr.bf16.gmra.mrb[28].mxu1 %v390_v48 }
 0x213   :  { %v1656_v0 = vpop.f32.mrb[0].mxu1 }
 0x214   :  { %v628_v50 = vrot.slane %v1656_v0, 4  ;;  %v489_v51 = vpop.f32.mrb[1].mxu1 }
 0x215   :  { %v616_v52 = vrot.slane %v489_v51, 4  ;;  %v1657_v53 = vpop.f32.mrb[2].mxu1 }
 0x216   :  { %v629_v54 = vmax.f32 %v1656_v0, %v628_v50  ;;  %v634_v55 = vrot.slane %v1657_v53, 4  ;;  %v492_v56 = vpop.f32.mrb[3].mxu1 }
 0x217   :  { %v617_v57 = vmax.f32 %v489_v51, %v616_v52  ;;  %v622_v58 = vrot.slane %v492_v56, 4 }
 0x218   :  { %v630_v59 = vrot.slane %v629_v54, 2  ;;  %v635_v60 = vmax.f32 %v1657_v53, %v634_v55 }
 0x219   :  { %v618_v61 = vrot.slane %v617_v57, 2  ;;  %v623_v62 = vmax.f32 %v492_v56, %v622_v58 }
 0x21a   :  { %v631_v63 = vmax.f32 %v629_v54, %v630_v59  ;;  %v636_v1 = vrot.slane %v635_v60, 2 }
 0x21b   :  { %v619_v2 = vmax.f32 %v617_v57, %v618_v61  ;;  %v624_v3 = vrot.slane %v623_v62, 2  ;;  %v1660_v4 = vpop.f32.mrb[4].mxu1 }
 0x21c   :  { %v632_v5 = vrot.slane %v631_v63, 1  ;;  %v637_v6 = vmax.f32 %v635_v60, %v636_v1  ;;  %v652_v7 = vrot.slane %v1660_v4, 4  ;;  %v505_v8 = vpop.f32.mrb[5].mxu1 }
 0x21d   :  { %v620_v9 = vrot.slane %v619_v2, 1  ;;  %v625_v10 = vmax.f32 %v623_v62, %v624_v3  ;;  %v640_v11 = vrot.slane %v505_v8, 4  ;;  %v2174_v12 = vpop.f32.mrb[6].mxu1 }
 0x21e   :  { %v633_v13 = vmax.f32 %v631_v63, %v632_v5  ;;  %v638_v14 = vrot.slane %v637_v6, 1  ;;  %v653_v15 = vmax.f32 %v1660_v4, %v652_v7  ;;  %v658_v16 = vrot.slane %v2174_v12, 4  ;;  %v2177_v17 = vpop.f32.mrb[7].mxu1 }
 0x21f   :  { %v621_v18 = vmax.f32 %v619_v2, %v620_v9  ;;  %v626_v19 = vrot.slane %v625_v10, 1  ;;  %v641_v20 = vmax.f32 %v505_v8, %v640_v11  ;;  %v646_v21 = vrot.slane %v2177_v17, 4 }
 0x220   :  { %v810_v22 = vsub.f32 %v1656_v0, %v633_v13  ;;  %v639_v23 = vmax.f32 %v637_v6, %v638_v14  ;;  %v654_v24 = vrot.slane %v653_v15, 2  ;;  %v659_v25 = vmax.f32 %v2174_v12, %v658_v16 }
 0x221   :  { %v808_v26 = vsub.f32 %v489_v51, %v621_v18  ;;  %v627_v27 = vmax.f32 %v625_v10, %v626_v19  ;;  %v642_v28 = vrot.slane %v641_v20, 2  ;;  %v647_v29 = vmax.f32 %v2177_v17, %v646_v21 }
 0x222   :  { %v844_v30 = vmul.f32 1.442695, %v810_v22  ;;  %v811_v31 = vsub.f32 %v1657_v53, %v639_v23  ;;  %v655_v32 = vmax.f32 %v653_v15, %v654_v24  ;;  %v660_v33 = vrot.slane %v659_v25, 2 }
 0x223   :  { %v840_v34 = vmul.f32 1.442695, %v808_v26  ;;  %v809_v35 = vsub.f32 %v492_v56, %v627_v27  ;;  %v643_v36 = vmax.f32 %v641_v20, %v642_v28  ;;  %v648_v37 = vrot.slane %v647_v29, 2  ;;  %v2182_v38 = vpop.f32.mrb[8].mxu1 }
 0x224   :  { %1775 = vpow2.f32 %v844_v30  ;;  %v846_v39 = vmul.f32 1.442695, %v811_v31  ;;  %v656_v40 = vrot.slane %v655_v32, 1  ;;  %v661_v41 = vmax.f32 %v659_v25, %v660_v33  ;;  %v2184_v42 = vpop.f32.mrb[9].mxu1 }
 0x225   :  { %1777 = vpow2.f32 %v840_v34  ;;  %v842_v43 = vmul.f32 1.442695, %v809_v35  ;;  %v644_v44 = vrot.slane %v643_v36, 1  ;;  %v649_v45 = vmax.f32 %v647_v29, %v648_v37  ;;  %v2186_v46 = vpop.f32.mrb[10].mxu1 }
 0x226   :  { %1779 = vpow2.f32 %v846_v39  ;;  %v657_v47 = vmax.f32 %v655_v32, %v656_v40  ;;  %v662_v48 = vrot.slane %v661_v41, 1  ;;  %v676_v49 = vrot.slane %v2182_v38, 4  ;;  %v2189_v0 = vpop.f32.mrb[11].mxu1 }
 0x227   :  { %1781 = vpow2.f32 %v842_v43  ;;  %v645_v50 = vmax.f32 %v643_v36, %v644_v44  ;;  %v650_v51 = vrot.slane %v649_v45, 1  ;;  %v664_v52 = vrot.slane %v2184_v42, 4 }
 0x228   :  { %v814_v53 = vsub.f32 %v1660_v4, %v657_v47  ;;  %v663_v54 = vmax.f32 %v661_v41, %v662_v48  ;;  %v677_v55 = vmax.f32 %v2182_v38, %v676_v49  ;;  %v682_v56 = vrot.slane %v2186_v46, 4 }
 0x229   :  { %v812_v57 = vsub.f32 %v505_v8, %v645_v50  ;;  %v651_v58 = vmax.f32 %v649_v45, %v650_v51  ;;  %v665_v59 = vmax.f32 %v2184_v42, %v664_v52  ;;  %v670_v60 = vrot.slane %v2189_v0, 4 }
 0x22a   :  { %v852_v61 = vmul.f32 1.442695, %v814_v53  ;;  %v815_v62 = vsub.f32 %v2174_v12, %v663_v54  ;;  %v678_v63 = vrot.slane %v677_v55, 2  ;;  %v683_v1 = vmax.f32 %v2186_v46, %v682_v56 }
 0x22b   :  { %v848_v2 = vmul.f32 1.442695, %v812_v57  ;;  %v813_v3 = vsub.f32 %v2177_v17, %v651_v58  ;;  %v666_v4 = vrot.slane %v665_v59, 2  ;;  %v671_v5 = vmax.f32 %v2189_v0, %v670_v60  ;;  %v2200_v6 = vpop.f32.mrb[12].mxu1 }
 0x22c   :  { %1783 = vpow2.f32 %v852_v61  ;;  %v854_v7 = vmul.f32 1.442695, %v815_v62  ;;  %v679_v8 = vmax.f32 %v677_v55, %v678_v63  ;;  %v684_v9 = vrot.slane %v683_v1, 2  ;;  %v2202_v10 = vpop.f32.mrb[13].mxu1 }
 0x22d   :  { %1785 = vpow2.f32 %v848_v2  ;;  %v850_v11 = vmul.f32 1.442695, %v813_v3  ;;  %v667_v12 = vmax.f32 %v665_v59, %v666_v4  ;;  %v672_v13 = vrot.slane %v671_v5, 2  ;;  %v2204_v14 = vpop.f32.mrb[14].mxu1 }
 0x22e   :  { %v2206_v15 = vpop.eup %1775  ;;  %1787 = vpow2.f32 %v854_v7  ;;  %v680_v16 = vrot.slane %v679_v8, 1  ;;  %v685_v17 = vmax.f32 %v683_v1, %v684_v9  ;;  %v700_v18 = vrot.slane %v2200_v6, 4  ;;  %v2209_v19 = vpop.f32.mrb[15].mxu1 }
 0x22f   :  { %v2211_v20 = vpop.eup %1777  ;;  %v916_v21 = vrot.slane %v2206_v15, 4  ;;  %1789 = vpow2.f32 %v850_v11  ;;  %v668_v22 = vrot.slane %v667_v12, 1  ;;  %v673_v23 = vmax.f32 %v671_v5, %v672_v13 }
 0x230   :  { %v2214_v24 = vpop.eup %1779  ;;  %v904_v25 = vrot.slane %v2211_v20, 4  ;;  %v681_v26 = vmax.f32 %v679_v8, %v680_v16  ;;  %v686_v27 = vrot.slane %v685_v17, 1  ;;  %v2218_v28 = vmax.f32 %v2200_v6, %v700_v18 }
 0x231   :  { %v2220_v29 = vpop.eup %1781  ;;  %v917_v30 = vadd.f32 %v2206_v15, %v916_v21  ;;  %v922_v31 = vrot.slane %v2214_v24, 4  ;;  %v669_v32 = vmax.f32 %v667_v12, %v668_v22  ;;  %v674_v33 = vrot.slane %v673_v23, 1 }
 0x232   :  { %v905_v34 = vadd.f32 %v2211_v20, %v904_v25  ;;  %v910_v35 = vrot.slane %v2220_v29, 4  ;;  %v818_v36 = vsub.f32 %v2182_v38, %v681_v26  ;;  %v687_v37 = vmax.f32 %v685_v17, %v686_v27 }
 0x233   :  { %v918_v39 = vrot.slane %v917_v30, 2  ;;  %v923_v40 = vadd.f32 %v2214_v24, %v922_v31  ;;  %v816_v41 = vsub.f32 %v2184_v42, %v669_v32  ;;  %v675_v43 = vmax.f32 %v673_v23, %v674_v33  ;;  %v2229_v44 = vpop.f32.mrb[16].mxu1 }
 0x234   :  { %v906_v45 = vrot.slane %v905_v34, 2  ;;  %v911_v47 = vadd.f32 %v2220_v29, %v910_v35  ;;  %v860_v48 = vmul.f32 1.442695, %v818_v36  ;;  %v819_v49 = vsub.f32 %v2186_v46, %v687_v37  ;;  %v2233_v50 = vpop.f32.mrb[17].mxu1 }
 0x235   :  { %v919_v51 = vadd.f32 %v918_v39, %v917_v30  ;;  %v924_v52 = vrot.slane %v923_v40, 2  ;;  %v856_v38 = vmul.f32 1.442695, %v816_v41  ;;  %v817_v53 = vsub.f32 %v2189_v0, %v675_v43  ;;  %v2236_v54 = vpop.f32.mrb[18].mxu1 }
 0x236   :  { %v2238_v55 = vpop.eup %1783  ;;  %v907_v42 = vadd.f32 %v906_v45, %v905_v34  ;;  %v912_v56 = vrot.slane %v911_v47, 2  ;;  %1791 = vpow2.f32 %v860_v48  ;;  %v862_v57 = vmul.f32 1.442695, %v819_v49  ;;  %v2240_v58 = vpop.f32.mrb[19].mxu1 }
 0x237   :  { %v2242_v59 = vpop.eup %1785  ;;  %v920_v46 = vrot.slane %v919_v51, 1  ;;  %v925_v60 = vadd.f32 %v924_v52, %v923_v40  ;;  %v940_v61 = vrot.slane %v2238_v55, 4  ;;  %1793 = vpow2.f32 %v856_v38 }
 0x238   :  { %v2245_v62 = vpop.eup %1787  ;;  %v908_v0 = vrot.slane %v907_v42, 1  ;;  %v913_v63 = vadd.f32 %v912_v56, %v911_v47  ;;  %v928_v1 = vrot.slane %v2242_v59, 4  ;;  %1795 = vpow2.f32 %v862_v57 }
 0x239   :  { %v2248_v2 = vpop.eup %1789  ;;  %v921_v3 = vadd.f32 %v920_v46, %v919_v51  ;;  %v926_v4 = vrot.slane %v925_v60, 1  ;;  %v941_v5 = vadd.f32 %v2238_v55, %v940_v61  ;;  %v946_v7 = vrot.slane %v2245_v62, 4 }
 0x23a   :  { %v909_v8 = vadd.f32 %v908_v0, %v907_v42  ;;  %v914_v9 = vrot.slane %v913_v63, 1  ;;  %v929_v11 = vadd.f32 %v2242_v59, %v928_v1  ;;  %v934_v12 = vrot.slane %v2248_v2, 4 }
 0x23b   :  { %1797 = vrcp.f32 %v921_v3  ;;  %v927_v13 = vadd.f32 %v926_v4, %v925_v60  ;;  %v942_v16 = vrot.slane %v941_v5, 2  ;;  %v947_v17 = vadd.f32 %v2245_v62, %v946_v7  ;;  %v2255_v18 = vpop.f32.mrb[20].mxu1 }
 0x23c   :  { %1799 = vrcp.f32 %v909_v8  ;;  %v915_v21 = vadd.f32 %v914_v9, %v913_v63  ;;  %v930_v22 = vrot.slane %v929_v11, 2  ;;  %v935_v23 = vadd.f32 %v2248_v2, %v934_v12  ;;  %v2258_v25 = vpop.f32.mrb[21].mxu1 }
 0x23d   :  { %1801 = vrcp.f32 %v927_v13  ;;  %v943_v26 = vadd.f32 %v942_v16, %v941_v5  ;;  %v948_v27 = vrot.slane %v947_v17, 2  ;;  %v858_v30 = vmul.f32 1.442695, %v817_v53  ;;  %v2260_v31 = vpop.f32.mrb[22].mxu1 }
 0x23e   :  { %1803 = vrcp.f32 %v915_v21  ;;  %v931_v32 = vadd.f32 %v930_v22, %v929_v11  ;;  %v936_v33 = vrot.slane %v935_v23, 2  ;;  %v702_v34 = vrot.slane %v2218_v28, 2  ;;  %v2263_v35 = vpop.f32.mrb[23].mxu1 }
 0x23f   :  { %v944_v36 = vrot.slane %v943_v26, 1  ;;  %v949_v37 = vadd.f32 %v948_v27, %v947_v17  ;;  %1805 = vpow2.f32 %v858_v30  ;;  %v688_v39 = vrot.slane %v2202_v10, 4 }
 0x240   :  { %v2266_v40 = vpop.eup %1791  ;;  %v932_v41 = vrot.slane %v931_v32, 1  ;;  %v937_v43 = vadd.f32 %v936_v33, %v935_v23  ;;  %v703_v45 = vmax.f32 %v2218_v28, %v702_v34  ;;  %v706_v52 = vrot.slane %v2204_v14, 4 }
 0x241   :  { %v2269_v47 = vpop.eup %1793  ;;  %v945_v48 = vadd.f32 %v944_v36, %v943_v26  ;;  %v964_v49 = vrot.slane %v2266_v40, 4  ;;  %v689_v51 = vmax.f32 %v2202_v10, %v688_v39  ;;  %v950_v53 = vrot.slane %v949_v37, 1 }
 0x242   :  { %v2274_v38 = vpop.eup %1795  ;;  %v952_v42 = vrot.slane %v2269_v47, 4  ;;  %v704_v56 = vrot.slane %v703_v45, 1  ;;  %v933_v57 = vadd.f32 %v932_v41, %v931_v32  ;;  %v938_v61 = vrot.slane %v937_v43, 1 }
 0x243   :  { %v965_v46 = vadd.f32 %v2266_v40, %v964_v49  ;;  %v970_v28 = vrot.slane %v2274_v38, 4  ;;  %v2279_v60 = vpop.f32.mrb[24].mxu1  ;;  %1807 = vrcp.f32 %v945_v48  ;;  %v690_v7 = vrot.slane %v689_v51, 2 }
 0x244   :  { %v953_v0 = vadd.f32 %v2269_v47, %v952_v42  ;;  %v705_v63 = vmax.f32 %v703_v45, %v704_v56  ;;  %v2282_v1 = vpop.f32.mrb[25].mxu1  ;;  %v707_v8 = vmax.f32 %v2204_v14, %v706_v52  ;;  %v2291_v13 = vadd.f32 %v950_v53, %v949_v37 }
 0x245   :  { %v1798_v3 = vpop.eup %1797  ;;  %v966_v4 = vrot.slane %v965_v46, 2  ;;  %v971_v5 = vadd.f32 %v2274_v38, %v970_v28  ;;  %v2286_v9 = vpop.f32.mrb[26].mxu1  ;;  %v691_v30 = vmax.f32 %v689_v51, %v690_v7  ;;  %1809 = vrcp.f32 %v933_v57 }
 0x246   :  { %v1800_v11 = vpop.eup %1799  ;;  %v2289_v12 = vmul.f32 %v1798_v3, %v2206_v15  ;;  %v954_v16 = vrot.slane %v953_v0, 2  ;;  %v822_v17 = vsub.f32 %v2200_v6, %v705_v63  ;;  %v2294_v21 = vpop.f32.mrb[27].mxu1  ;;  %v708_v36 = vrot.slane %v707_v8, 2 }
 0x247   :  { %v1802_v22 = vpop.eup %1801  ;;  %v1128_v23 = vmul.f32 %v1800_v11, %v2211_v20  ;;  %v967_v26 = vadd.f32 %v966_v4, %v965_v46  ;;  %v972_v27 = vrot.slane %v971_v5, 2  ;;  %v692_v48 = vrot.slane %v691_v30, 1 }
 0x248   :  { %v1804_v32 = vpop.eup %1803  ;;  %1162 = vst [vmem:[#allocation9 + $0x10] sm:$0xff] %v2289_v12  ;;  %v2299_v33 = vmul.f32 %v1802_v22, %v2214_v24  ;;  %v955_v15 = vadd.f32 %v954_v16, %v953_v0  ;;  %v868_v34 = vmul.f32 1.442695, %v822_v17  ;;  %v1903_v24 = vld [vmem:[#allocation2] sm:$0xff]  ;;  %v2308_v51 = vadd.f32 %v938_v61, %v937_v43  ;;  %v1904_v0 = vld [vmem:[#allocation2 + $0x8] sm:$0xff] }
 0x249   :  { %v2301_v37 = vpop.eup %1805  ;;  %1160 = vst [vmem:[#allocation9] sm:$0xff] %v1128_v23  ;;  %v1129_v6 = vmul.f32 %v1804_v32, %v2220_v29  ;;  %v968_v39 = vrot.slane %v967_v26, 1  ;;  %v973_v20 = vadd.f32 %v972_v27, %v971_v5  ;;  %v2306_v49 = vmul.f32 %v1903_v24, %v1128_v23 }
 0x24a   :  { %1163 = vst [vmem:[#allocation9 + $0x18] sm:$0xff] %v2299_v33  ;;  %v956_v41 = vrot.slane %v955_v15, 1  ;;  %v958_v45 = vrot.slane %v2301_v37, 4  ;;  %1811 = vpow2.f32 %v868_v34  ;;  %v693_v57 = vmax.f32 %v691_v30, %v692_v48 }
 0x24b   :  { %1161 = vst [vmem:[#allocation9 + $0x8] sm:$0xff] %v1129_v6  ;;  %v969_v52 = vadd.f32 %v968_v39, %v967_v26  ;;  %v974_v53 = vrot.slane %v973_v20, 1  ;;  %v2310_v42 = vpop.f32.mrb[28].mxu1  ;;  %v709_v46 = vmax.f32 %v707_v8, %v708_v36  ;;  %v2315_v63 = vmul.f32 %v1904_v0, %v1129_v6 }
 0x24c   :  { %v957_v29 = vadd.f32 %v956_v41, %v955_v15  ;;  %v959_v56 = vadd.f32 %v2301_v37, %v958_v45  ;;  %v2313_v28 = vpop.f32.mrb[29].mxu1  ;;  %v694_v4 = vrot.slane %v2209_v19, 4  ;;  %v820_v7 = vsub.f32 %v2202_v10, %v693_v57 }
 0x24d   :  { %1813 = vrcp.f32 %v969_v52  ;;  %v975_v3 = vadd.f32 %v974_v53, %v973_v20  ;;  %v2318_v43 = vpop.f32.mrb[30].mxu1  ;;  %v2320_v61 = vpop.eup %1807  ;;  %v710_v11 = vrot.slane %v709_v46, 1  ;;  %v724_v17 = vrot.slane %v2229_v44, 4 }
 0x24e   :  { %1815 = vrcp.f32 %v957_v29  ;;  %v960_v5 = vrot.slane %v959_v56, 2  ;;  %v2323_v16 = vpop.f32.mrb[31].mxu1  ;;  %v695_v8 = vmax.f32 %v2209_v19, %v694_v4  ;;  %v712_v22 = vrot.slane %v2233_v50, 4 }
 0x24f   :  { %1817 = vrcp.f32 %v975_v3  ;;  %v864_v26 = vmul.f32 1.442695, %v820_v7  ;;  %v711_v27 = vmax.f32 %v709_v46, %v710_v11  ;;  %v730_v30 = vrot.slane %v2236_v54, 4  ;;  %v2334_v20 = vpop.eup %1809 }
 0x250   :  { %v961_v23 = vadd.f32 %v960_v5, %v959_v56  ;;  %v696_v32 = vrot.slane %v695_v8, 2  ;;  %v725_v15 = vmax.f32 %v2229_v44, %v724_v17  ;;  %v713_v10 = vmax.f32 %v2233_v50, %v712_v22 }
 0x251   :  { %v718_v34 = vrot.slane %v2240_v58, 4  ;;  %1819 = vpow2.f32 %v864_v26  ;;  %v823_v6 = vsub.f32 %v2204_v14, %v711_v27  ;;  %v731_v39 = vmax.f32 %v2236_v54, %v730_v30 }
 0x252   :  { %v962_v36 = vrot.slane %v961_v23, 1  ;;  %v697_v41 = vmax.f32 %v695_v8, %v696_v32  ;;  %v726_v45 = vrot.slane %v725_v15, 2  ;;  %v714_v48 = vrot.slane %v713_v10, 2 }
 0x253   :  { %v719_v24 = vmax.f32 %v2240_v58, %v718_v34  ;;  %v870_v29 = vmul.f32 1.442695, %v823_v6  ;;  %v732_v56 = vrot.slane %v731_v39, 2  ;;  %v748_v57 = vrot.slane %v2255_v18, 4 }
 0x254   :  { %v2337_v52 = vpop.eup %1811  ;;  %v963_v53 = vadd.f32 %v962_v36, %v961_v23  ;;  %v698_v0 = vrot.slane %v697_v41, 1  ;;  %v727_v14 = vmax.f32 %v725_v15, %v726_v45  ;;  %v715_v3 = vmax.f32 %v713_v10, %v714_v48 }
 0x255   :  { %v988_v46 = vrot.slane %v2337_v52, 4  ;;  %v733_v4 = vmax.f32 %v731_v39, %v732_v56  ;;  %v720_v5 = vrot.slane %v719_v24, 2  ;;  %v749_v7 = vmax.f32 %v2255_v18, %v748_v57 }
 0x256   :  { %1821 = vrcp.f32 %v963_v53  ;;  %v699_v17 = vmax.f32 %v697_v41, %v698_v0  ;;  %v728_v22 = vrot.slane %v727_v14, 1  ;;  %v716_v27 = vrot.slane %v715_v3, 1 }
 0x257   :  { %v1814_v11 = vpop.eup %1813  ;;  %v989_v8 = vadd.f32 %v2337_v52, %v988_v46  ;;  %1823 = vpow2.f32 %v870_v29  ;;  %v734_v30 = vrot.slane %v733_v4, 1  ;;  %v721_v32 = vmax.f32 %v719_v24, %v720_v5 }
 0x258   :  { %v1816_v23 = vpop.eup %1815  ;;  %v2344_v26 = vmul.f32 %v1814_v11, %v2266_v40  ;;  %v821_v36 = vsub.f32 %v2209_v19, %v699_v17  ;;  %v729_v6 = vmax.f32 %v727_v14, %v728_v22  ;;  %v717_v41 = vmax.f32 %v715_v3, %v716_v27 }
 0x259   :  { %v1818_v15 = vpop.eup %1817  ;;  %v1136_v10 = vmul.f32 %v1816_v23, %v2269_v47  ;;  %v990_v34 = vrot.slane %v989_v8, 2  ;;  %v735_v45 = vmax.f32 %v733_v4, %v734_v30  ;;  %v722_v48 = vrot.slane %v721_v32, 1 }
 0x25a   :  { %1170 = vst [vmem:[#allocation9 + $0x50] sm:$0xff] %v2344_v26  ;;  %v2350_v39 = vmul.f32 %v1818_v15, %v2274_v38  ;;  %1825 = vrcp.f32 %v2308_v51  ;;  %v866_v24 = vmul.f32 1.442695, %v821_v36  ;;  %v826_v53 = vsub.f32 %v2229_v44, %v729_v6 }
 0x25b   :  { %1168 = vst [vmem:[#allocation9 + $0x40] sm:$0xff] %v1136_v10  ;;  %v991_v40 = vadd.f32 %v990_v34, %v989_v8  ;;  %v2354_v47 = vpop.eup %1819  ;;  %v824_v19 = vsub.f32 %v2233_v50, %v717_v41  ;;  %v827_v29 = vsub.f32 %v2236_v54, %v735_v45  ;;  %v723_v38 = vmax.f32 %v721_v32, %v722_v48  ;;  %v1905_v8 = vld [vmem:[#allocation2 + $0x40] sm:$0xff] }
 0x25c   :  { %1171 = vst [vmem:[#allocation9 + $0x58] sm:$0xff] %v2350_v39  ;;  %v750_v56 = vrot.slane %v749_v7, 2  ;;  %v1224_v57 = vrot.slane %v2306_v49, 4  ;;  %v976_v51 = vrot.slane %v2354_v47, 4  ;;  %1827 = vpow2.f32 %v866_v24 }
 0x25d   :  { %v992_v0 = vrot.slane %v991_v40, 1  ;;  %v876_v14 = vmul.f32 1.442695, %v826_v53  ;;  %v872_v44 = vmul.f32 1.442695, %v824_v19  ;;  %v825_v3 = vsub.f32 %v2240_v58, %v723_v38 }
 0x25e   :  { %v977_v4 = vadd.f32 %v2354_v47, %v976_v51  ;;  %v878_v5 = vmul.f32 1.442695, %v827_v29  ;;  %v751_v50 = vmax.f32 %v749_v7, %v750_v56  ;;  %v736_v54 = vrot.slane %v2258_v25, 4 }
 0x25f   :  { %v2365_v17 = vmul.f32 %v1905_v8, %v1136_v10  ;;  %1829 = vpow2.f32 %v876_v14  ;;  %v874_v22 = vmul.f32 1.442695, %v825_v3  ;;  %v754_v23 = vrot.slane %v2260_v31, 4 }
 0x260   :  { %v1822_v11 = vpop.eup %1821  ;;  %v978_v32 = vrot.slane %v977_v4, 2  ;;  %v752_v58 = vrot.slane %v751_v50, 1  ;;  %v742_v15 = vrot.slane %v2263_v35, 4  ;;  %1831 = vpow2.f32 %v872_v44 }
 0x261   :  { %v2368_v27 = vpop.eup %1823  ;;  %v1137_v30 = vmul.f32 %v1822_v11, %v2301_v37  ;;  %v737_v34 = vmax.f32 %v2258_v25, %v736_v54  ;;  %v755_v10 = vmax.f32 %v2260_v31, %v754_v23  ;;  %v993_v36 = vadd.f32 %v992_v0, %v991_v40 }
 0x262   :  { %v994_v7 = vrot.slane %v2368_v27, 4  ;;  %v979_v6 = vadd.f32 %v978_v32, %v977_v4  ;;  %1833 = vpow2.f32 %v878_v5  ;;  %v753_v41 = vmax.f32 %v751_v50, %v752_v58 }
 0x263   :  { %1169 = vst [vmem:[#allocation9 + $0x48] sm:$0xff] %v1137_v30  ;;  %1835 = vpow2.f32 %v874_v22  ;;  %v738_v37 = vrot.slane %v737_v34, 2  ;;  %v756_v48 = vrot.slane %v755_v10, 2  ;;  %v743_v38 = vmax.f32 %v2263_v35, %v742_v15 }
 0x264   :  { %v995_v45 = vadd.f32 %v2368_v27, %v994_v7  ;;  %v2376_v24 = vpop.eup %1825  ;;  %v980_v19 = vrot.slane %v979_v6, 1  ;;  %v830_v29 = vsub.f32 %v2255_v18, %v753_v41  ;;  %v772_v0 = vrot.slane %v2279_v60, 4  ;;  %v1906_v18 = vld [vmem:[#allocation2 + $0x48] sm:$0xff] }
 0x265   :  { %v739_v51 = vmax.f32 %v737_v34, %v738_v37  ;;  %v757_v40 = vmax.f32 %v755_v10, %v756_v48  ;;  %1837 = vrcp.f32 %v993_v36  ;;  %v744_v3 = vrot.slane %v743_v38, 2 }
 0x266   :  { %v996_v56 = vrot.slane %v995_v45, 2  ;;  %v2382_v14 = vpop.eup %1827  ;;  %v884_v44 = vmul.f32 1.442695, %v830_v29  ;;  %v760_v4 = vrot.slane %v2282_v1, 4  ;;  %v981_v5 = vadd.f32 %v980_v19, %v979_v6 }
 0x267   :  { %v982_v50 = vrot.slane %v2382_v14, 4  ;;  %v740_v54 = vrot.slane %v739_v51, 1  ;;  %v758_v11 = vrot.slane %v757_v40, 1  ;;  %v2386_v8 = vmul.f32 %v1906_v18, %v1137_v30 }
 0x268   :  { %v745_v22 = vmax.f32 %v743_v38, %v744_v3  ;;  %v773_v23 = vmax.f32 %v2279_v60, %v772_v0  ;;  %v761_v32 = vmax.f32 %v2282_v1, %v760_v4  ;;  %v2392_v15 = vadd.f32 %v996_v56, %v995_v45 }
 0x269   :  { %v2390_v58 = vpop.eup %1829  ;;  %v983_v7 = vadd.f32 %v2382_v14, %v982_v50  ;;  %1839 = vpow2.f32 %v884_v44  ;;  %v741_v34 = vmax.f32 %v739_v51, %v740_v54  ;;  %v759_v36 = vmax.f32 %v757_v40, %v758_v11 }
 0x26a   :  { %v1012_v10 = vrot.slane %v2390_v58, 4  ;;  %v746_v6 = vrot.slane %v745_v22, 1  ;;  %v774_v41 = vrot.slane %v773_v23, 2  ;;  %v2396_v30 = vpop.eup %1831  ;;  %1841 = vrcp.f32 %v981_v5 }
 0x26b   :  { %v984_v37 = vrot.slane %v983_v7, 2  ;;  %v828_v48 = vsub.f32 %v2258_v25, %v741_v34  ;;  %v762_v19 = vrot.slane %v761_v32, 2  ;;  %v1000_v38 = vrot.slane %v2396_v30, 4 }
 0x26c   :  { %v2399_v29 = vpop.eup %1833  ;;  %v1013_v45 = vadd.f32 %v2390_v58, %v1012_v10  ;;  %v831_v56 = vsub.f32 %v2260_v31, %v759_v36  ;;  %v747_v51 = vmax.f32 %v745_v22, %v746_v6  ;;  %v775_v4 = vmax.f32 %v773_v23, %v774_v41 }
 0x26d   :  { %v2404_v0 = vpop.eup %1835  ;;  %v985_v40 = vadd.f32 %v984_v37, %v983_v7  ;;  %v1018_v44 = vrot.slane %v2399_v29, 4  ;;  %v880_v3 = vmul.f32 1.442695, %v828_v48  ;;  %v1001_v25 = vadd.f32 %v2396_v30, %v1000_v38 }
 0x26e   :  { %v1014_v5 = vrot.slane %v1013_v45, 2  ;;  %v1006_v50 = vrot.slane %v2404_v0, 4  ;;  %v886_v54 = vmul.f32 1.442695, %v831_v56  ;;  %v829_v31 = vsub.f32 %v2263_v35, %v747_v51 }
 0x26f   :  { %v986_v11 = vrot.slane %v985_v40, 1  ;;  %v1019_v18 = vadd.f32 %v2399_v29, %v1018_v44  ;;  %1843 = vpow2.f32 %v880_v3  ;;  %v2411_v22 = vpop.eup %1837  ;;  %v1002_v7 = vrot.slane %v1001_v25, 2 }
 0x270   :  { %v1015_v34 = vadd.f32 %v1014_v5, %v1013_v45  ;;  %v1007_v10 = vadd.f32 %v2404_v0, %v1006_v50  ;;  %1845 = vpow2.f32 %v886_v54  ;;  %v998_v23 = vrot.slane %v2392_v15, 1 }
 0x271   :  { %v1020_v36 = vrot.slane %v1019_v18, 2  ;;  %v882_v6 = vmul.f32 1.442695, %v829_v31  ;;  %v776_v41 = vrot.slane %v775_v4, 1  ;;  %v1003_v48 = vadd.f32 %v1002_v7, %v1001_v25 }
 0x272   :  { %v1016_v37 = vrot.slane %v1015_v34, 1  ;;  %v1008_v38 = vrot.slane %v1007_v10, 2  ;;  %v763_v56 = vmax.f32 %v761_v32, %v762_v19  ;;  %v987_v3 = vadd.f32 %v986_v11, %v985_v40 }
 0x273   :  { %v2415_v44 = vpop.eup %1839  ;;  %v1021_v35 = vadd.f32 %v1020_v36, %v1019_v18  ;;  %v777_v51 = vmax.f32 %v775_v4, %v776_v41  ;;  %v778_v45 = vrot.slane %v2286_v9, 4  ;;  %v1004_v53 = vrot.slane %v1003_v48, 1 }
 0x274   :  { %v1017_v5 = vadd.f32 %v1016_v37, %v1015_v34  ;;  %v1009_v50 = vadd.f32 %v1008_v38, %v1007_v10  ;;  %v1036_v54 = vrot.slane %v2415_v44, 4  ;;  %v2419_v46 = vpop.eup %1841  ;;  %1847 = vpow2.f32 %v882_v6 }
 0x275   :  { %v1022_v31 = vrot.slane %v1021_v35, 1  ;;  %v834_v25 = vsub.f32 %v2279_v60, %v777_v51  ;;  %v764_v7 = vrot.slane %v763_v56, 1  ;;  %v1005_v32 = vadd.f32 %v1004_v53, %v1003_v48 }
 0x276   :  { %1849 = vrcp.f32 %v1017_v5  ;;  %v1010_v19 = vrot.slane %v1009_v50, 1  ;;  %v1037_v40 = vadd.f32 %v2415_v44, %v1036_v54  ;;  %v779_v34 = vmax.f32 %v2286_v9, %v778_v45 }
 0x277   :  { %v1023_v4 = vadd.f32 %v1022_v31, %v1021_v35  ;;  %v892_v11 = vmul.f32 1.442695, %v834_v25  ;;  %v765_v18 = vmax.f32 %v763_v56, %v764_v7  ;;  %1851 = vrcp.f32 %v1005_v32 }
 0x278   :  { %v1011_v10 = vadd.f32 %v1010_v19, %v1009_v50  ;;  %v1038_v36 = vrot.slane %v1037_v40, 2  ;;  %v766_v41 = vrot.slane %v2294_v21, 4  ;;  %v780_v6 = vrot.slane %v779_v34, 2 }
 0x279   :  { %v2425_v37 = vpop.eup %1843  ;;  %1853 = vrcp.f32 %v1023_v4  ;;  %v832_v60 = vsub.f32 %v2282_v1, %v765_v18  ;;  %v796_v53 = vrot.slane %v2310_v42, 4  ;;  %v784_v32 = vrot.slane %v2313_v28, 4 }
 0x27a   :  { %v2429_v48 = vpop.eup %1845  ;;  %1855 = vrcp.f32 %v1011_v10  ;;  %v1039_v38 = vadd.f32 %v1038_v36, %v1037_v40  ;;  %v1024_v56 = vrot.slane %v2425_v37, 4  ;;  %v767_v35 = vmax.f32 %v2294_v21, %v766_v41 }
 0x27b   :  { %v1042_v51 = vrot.slane %v2429_v48, 4  ;;  %1857 = vpow2.f32 %v892_v11  ;;  %v888_v45 = vmul.f32 1.442695, %v832_v60  ;;  %v781_v5 = vmax.f32 %v779_v34, %v780_v6 }
 0x27c   :  { %v1040_v50 = vrot.slane %v1039_v38, 1  ;;  %v1025_v54 = vadd.f32 %v2425_v37, %v1024_v56  ;;  %v768_v1 = vrot.slane %v767_v35, 2  ;;  %v797_v31 = vmax.f32 %v2310_v42, %v796_v53 }
 0x27d   :  { %v1043_v25 = vadd.f32 %v2429_v48, %v1042_v51  ;;  %1859 = vpow2.f32 %v888_v45  ;;  %v782_v7 = vrot.slane %v781_v5, 1  ;;  %v785_v36 = vmax.f32 %v2313_v28, %v784_v32 }
 0x27e   :  { %v1041_v19 = vadd.f32 %v1040_v50, %v1039_v38  ;;  %v1026_v40 = vrot.slane %v1025_v54, 2  ;;  %v769_v4 = vmax.f32 %v767_v35, %v768_v1  ;;  %v798_v18 = vrot.slane %v797_v31, 2  ;;  %v2438_v10 = vpop.eup %1847 }
 0x27f   :  { %1861 = vrcp.f32 %v987_v3  ;;  %v1044_v11 = vrot.slane %v1043_v25, 2  ;;  %v783_v34 = vmax.f32 %v781_v5, %v782_v7  ;;  %v1030_v6 = vrot.slane %v2438_v10, 4 }
 0x280   :  { %v1850_v41 = vpop.eup %1849  ;;  %1863 = vrcp.f32 %v1041_v19  ;;  %v1027_v60 = vadd.f32 %v1026_v40, %v1025_v54  ;;  %v770_v53 = vrot.slane %v769_v4, 1  ;;  %v799_v51 = vmax.f32 %v797_v31, %v798_v18 }
 0x281   :  { %v2443_v56 = vmul.f32 %v1850_v41, %v2390_v58  ;;  %v1045_v38 = vadd.f32 %v1044_v11, %v1043_v25  ;;  %v835_v35 = vsub.f32 %v2286_v9, %v783_v34  ;;  %v1852_v45 = vpop.eup %1851  ;;  %v1031_v3 = vadd.f32 %v2438_v10, %v1030_v6  ;;  %v1907_v41 = vld [vmem:[#allocation2 + $0x80] sm:$0xff] }
 0x282   :  { %v1028_v50 = vrot.slane %v1027_v60, 1  ;;  %v771_v5 = vmax.f32 %v769_v4, %v770_v53  ;;  %v786_v1 = vrot.slane %v785_v36, 2  ;;  %v1144_v54 = vmul.f32 %v1852_v45, %v2396_v30 }
 0x283   :  { %v1854_v7 = vpop.eup %1853  ;;  %1178 = vst [vmem:[#allocation9 + $0x90] sm:$0xff] %v2443_v56  ;;  %v1046_v32 = vrot.slane %v1045_v38, 1  ;;  %v894_v19 = vmul.f32 1.442695, %v835_v35  ;;  %v800_v40 = vrot.slane %v799_v51, 1  ;;  %v1032_v31 = vrot.slane %v1031_v3, 2 }
 0x284   :  { %v1856_v58 = vpop.eup %1855  ;;  %v2450_v25 = vmul.f32 %v1854_v7, %v2399_v29  ;;  %v1029_v9 = vadd.f32 %v1028_v50, %v1027_v60  ;;  %v833_v18 = vsub.f32 %v2294_v21, %v771_v5  ;;  %v999_v4 = vadd.f32 %v998_v23, %v2392_v15  ;;  %1176 = vst [vmem:[#allocation9 + $0x80] sm:$0xff] %v1144_v54  ;;  %v1908_v7 = vld [vmem:[#allocation2 + $0x88] sm:$0xff] }
 0x285   :  { %v2453_v11 = vpop.eup %1857  ;;  %v1145_v30 = vmul.f32 %v1856_v58, %v2404_v0  ;;  %1865 = vpow2.f32 %v894_v19  ;;  %v802_v34 = vrot.slane %v2318_v43, 4  ;;  %v2460_v6 = vmul.f32 %v1907_v41, %v1144_v54 }
 0x286   :  { %1179 = vst [vmem:[#allocation9 + $0x98] sm:$0xff] %v2450_v25  ;;  %v1033_v29 = vadd.f32 %v1032_v31, %v1031_v3  ;;  %v1060_v21 = vrot.slane %v2453_v11, 4  ;;  %v890_v60 = vmul.f32 1.442695, %v833_v18  ;;  %1867 = vrcp.f32 %v1029_v9 }
 0x287   :  { %v2464_v53 = vpop.eup %1859  ;;  %1177 = vst [vmem:[#allocation9 + $0x88] sm:$0xff] %v1145_v30  ;;  %v1047_v15 = vadd.f32 %v1046_v32, %v1045_v38  ;;  %v801_v23 = vmax.f32 %v799_v51, %v800_v40  ;;  %v787_v35 = vmax.f32 %v785_v36, %v786_v1  ;;  %v2468_v54 = vmul.f32 %v1908_v7, %v1145_v30 }
 0x288   :  { %v1034_v0 = vrot.slane %v1033_v29, 1  ;;  %v1061_v45 = vadd.f32 %v2453_v11, %v1060_v21  ;;  %v1048_v50 = vrot.slane %v2464_v53, 4  ;;  %1869 = vpow2.f32 %v890_v60 }
 0x289   :  { %v1862_v5 = vpop.eup %1861  ;;  %v838_v3 = vsub.f32 %v2310_v42, %v801_v23  ;;  %v788_v19 = vrot.slane %v787_v35, 1  ;;  %v803_v58 = vmax.f32 %v2318_v43, %v802_v34  ;;  %v790_v51 = vrot.slane %v2323_v16, 4 }
 0x28a   :  { %v1864_v31 = vpop.eup %1863  ;;  %v1035_v9 = vadd.f32 %v1034_v0, %v1033_v29  ;;  %v1062_v38 = vrot.slane %v1061_v45, 2  ;;  %v1049_v36 = vadd.f32 %v2464_v53, %v1048_v50  ;;  %1871 = vrcp.f32 %v2291_v13 }
 0x28b   :  { %v900_v1 = vmul.f32 1.442695, %v838_v3  ;;  %v789_v32 = vmax.f32 %v787_v35, %v788_v19  ;;  %v804_v40 = vrot.slane %v803_v58, 2  ;;  %v791_v42 = vmax.f32 %v2323_v16, %v790_v51 }
 0x28c   :  { %1873 = vrcp.f32 %v1035_v9  ;;  %v1063_v18 = vadd.f32 %v1062_v38, %v1061_v45  ;;  %v1050_v30 = vrot.slane %v1049_v36, 2  ;;  %v2479_v29 = vmul.f32 %v2334_v20, %v2242_v59 }
 0x28d   :  { %1875 = vpow2.f32 %v900_v1  ;;  %v836_v34 = vsub.f32 %v2313_v28, %v789_v32  ;;  %v805_v41 = vmax.f32 %v803_v58, %v804_v40  ;;  %v792_v23 = vrot.slane %v791_v42, 2 }
 0x28e   :  { %v1064_v21 = vrot.slane %v1063_v18, 1  ;;  %v1051_v60 = vadd.f32 %v1050_v30, %v1049_v36  ;;  %1877 = vrcp.f32 %v999_v4  ;;  %v2485_v45 = vmul.f32 %v2376_v24, %v2248_v2  ;;  %1164 = vst [vmem:[#allocation9 + $0x20] sm:$0xff] %v2479_v29 }
 0x28f   :  { %v2481_v35 = vpop.eup %1865  ;;  %v896_v13 = vmul.f32 1.442695, %v836_v34  ;;  %v806_v0 = vrot.slane %v805_v41, 1  ;;  %1879 = vrcp.f32 %v1047_v15  ;;  %v793_v20 = vmax.f32 %v791_v42, %v792_v23 }
 0x290   :  { %v1065_v28 = vadd.f32 %v1064_v21, %v1063_v18  ;;  %v1052_v50 = vrot.slane %v1051_v60, 1  ;;  %v1066_v59 = vrot.slane %v2481_v35, 4  ;;  %v1868_v7 = vpop.eup %1867  ;;  %v1134_v4 = vmul.f32 %v2320_v61, %v2238_v55  ;;  %1165 = vst [vmem:[#allocation9 + $0x28] sm:$0xff] %v2485_v45 }
 0x291   :  { %1881 = vpow2.f32 %v896_v13  ;;  %v807_v3 = vmax.f32 %v805_v41, %v806_v0  ;;  %v2493_v15 = vmul.f32 %v2419_v46, %v2354_v47  ;;  %v794_v58 = vrot.slane %v793_v20, 1 }
 0x292   :  { %v2496_v2 = vpop.eup %1869  ;;  %1883 = vrcp.f32 %v1065_v28  ;;  %v1053_v24 = vadd.f32 %v1052_v50, %v1051_v60  ;;  %v1067_v19 = vadd.f32 %v2481_v35, %v1066_v59  ;;  %v2502_v36 = vmul.f32 %v1862_v5, %v2382_v14  ;;  %1166 = vst [vmem:[#allocation9 + $0x30] sm:$0xff] %v1134_v4  ;;  %v1911_v28 = vld [vmem:[#allocation2 + $0x20] sm:$0xff] }
 0x293   :  { %v1054_v9 = vrot.slane %v2496_v2, 4  ;;  %v839_v38 = vsub.f32 %v2318_v43, %v807_v3  ;;  %v2506_v55 = vmul.f32 %v2411_v22, %v2337_v52  ;;  %1172 = vst [vmem:[#allocation9 + $0x60] sm:$0xff] %v2493_v15  ;;  %v795_v47 = vmax.f32 %v793_v20, %v794_v58  ;;  %v1912_v3 = vld [vmem:[#allocation2 + $0x28] sm:$0xff] }
 0x294   :  { %1885 = vrcp.f32 %v1053_v24  ;;  %v1068_v61 = vrot.slane %v1067_v19, 2  ;;  %v2510_v46 = vmul.f32 %v1868_v7, %v2425_v37  ;;  %v1872_v51 = vpop.eup %1871  ;;  %v1278_v1 = vrot.slane %v2386_v8, 4  ;;  %1173 = vst [vmem:[#allocation9 + $0x68] sm:$0xff] %v2502_v36 }
 0x295   :  { %v1055_v43 = vadd.f32 %v2496_v2, %v1054_v9  ;;  %v902_v14 = vmul.f32 1.442695, %v839_v38  ;;  %v2515_v5 = vmul.f32 %v1864_v31, %v2415_v44  ;;  %1174 = vst [vmem:[#allocation9 + $0x70] sm:$0xff] %v2506_v55  ;;  %v1320_v22 = vrot.slane %v2460_v6, 4 }
 0x296   :  { %v1874_v52 = vpop.eup %1873  ;;  %v1069_v32 = vadd.f32 %v1068_v61, %v1067_v19  ;;  %v837_v37 = vsub.f32 %v2323_v16, %v795_v47  ;;  %v1135_v40 = vmul.f32 %v1872_v51, %v2245_v62  ;;  %1180 = vst [vmem:[#allocation9 + $0xa0] sm:$0xff] %v2510_v46  ;;  %v1326_v30 = vrot.slane %v2468_v54, 4  ;;  %v1909_v62 = vld [vmem:[#allocation2 + $0x10] sm:$0xff] }
 0x297   :  { %v2523_v18 = vpop.eup %1875  ;;  %v1056_v44 = vrot.slane %v1055_v43, 2  ;;  %1887 = vpow2.f32 %v902_v14  ;;  %v2527_v31 = vmul.f32 %v1874_v52, %v2438_v10  ;;  %1182 = vst [vmem:[#allocation9 + $0xb0] sm:$0xff] %v2515_v5  ;;  %v2532_v21 = vmul.f32 %v1909_v62, %v2289_v12  ;;  %v1910_v10 = vld [vmem:[#allocation2 + $0x18] sm:$0xff]  ;;  %v1915_v61 = vld [vmem:[#allocation2 + $0x50] sm:$0xff]  ;;  %v1917_v14 = vld [vmem:[#allocation2 + $0x60] sm:$0xff] }
 0x298   :  { %v1878_v42 = vpop.eup %1877  ;;  %v1070_v34 = vrot.slane %v1069_v32, 1  ;;  %v1084_v41 = vrot.slane %v2523_v18, 4  ;;  %v898_v16 = vmul.f32 1.442695, %v837_v37  ;;  %1167 = vst [vmem:[#allocation9 + $0x38] sm:$0xff] %v1135_v40  ;;  %v2537_v0 = vmul.f32 %v1910_v10, %v2299_v33  ;;  %v1913_v33 = vld [vmem:[#allocation2 + $0x30] sm:$0xff] }
 0x299   :  { %v1880_v60 = vpop.eup %1879  ;;  %v1057_v23 = vadd.f32 %v1056_v44, %v1055_v43  ;;  %v1143_v13 = vmul.f32 %v1878_v42, %v2368_v27  ;;  %1181 = vst [vmem:[#allocation9 + $0xa8] sm:$0xff] %v2527_v31  ;;  %v2540_v50 = vmul.f32 %v1911_v28, %v2479_v29  ;;  %v2549_v24 = vmul.f32 %v1912_v3, %v2485_v45  ;;  %v1914_v29 = vld [vmem:[#allocation2 + $0x38] sm:$0xff]  ;;  %v1918_v44 = vld [vmem:[#allocation2 + $0x68] sm:$0xff]  ;;  %v1919_v42 = vld [vmem:[#allocation2 + $0x70] sm:$0xff] }
 0x29a   :  { %v1071_v59 = vadd.f32 %v1070_v34, %v1069_v32  ;;  %v1085_v20 = vadd.f32 %v2523_v18, %v1084_v41  ;;  %1889 = vpow2.f32 %v898_v16  ;;  %v2544_v12 = vmul.f32 %v1880_v60, %v2429_v48  ;;  %v1920_v34 = vld [vmem:[#allocation2 + $0x78] sm:$0xff]  ;;  %v1921_v41 = vld [vmem:[#allocation2 + $0x90] sm:$0xff] }
 0x29b   :  { %v2546_v7 = vpop.eup %1881  ;;  %v1058_v27 = vrot.slane %v1057_v23, 1  ;;  %1175 = vst [vmem:[#allocation9 + $0x78] sm:$0xff] %v1143_v13  ;;  %v2551_v19 = vmul.f32 %v1913_v33, %v1134_v4  ;;  %v2553_v58 = vmul.f32 %v1914_v29, %v1135_v40  ;;  %v2558_v47 = vmul.f32 %v1915_v61, %v2344_v26  ;;  %v1916_v4 = vld [vmem:[#allocation2 + $0x58] sm:$0xff] }
 0x29c   :  { %v1884_v9 = vpop.eup %1883  ;;  %1891 = vrcp.f32 %v1071_v59  ;;  %v1086_v38 = vrot.slane %v1085_v20, 2  ;;  %v1072_v48 = vrot.slane %v2546_v7, 4  ;;  %1183 = vst [vmem:[#allocation9 + $0xb8] sm:$0xff] %v2544_v12  ;;  %v2564_v43 = vmul.f32 %v1916_v4, %v2350_v39  ;;  %v1925_v59 = vld [vmem:[#allocation2 + $0xb0] sm:$0xff] }
 0x29d   :  { %v2561_v45 = vmul.f32 %v1884_v9, %v2453_v11  ;;  %v1059_v51 = vadd.f32 %v1058_v27, %v1057_v23  ;;  %v2567_v52 = vmul.f32 %v1917_v14, %v2493_v15  ;;  %v2571_v26 = vmul.f32 %v1918_v44, %v2502_v36  ;;  %v1922_v36 = vld [vmem:[#allocation2 + $0x98] sm:$0xff] }
 0x29e   :  { %v1886_v32 = vpop.eup %1885  ;;  %v1087_v37 = vadd.f32 %v1086_v38, %v1085_v20  ;;  %v1073_v40 = vadd.f32 %v2546_v7, %v1072_v48  ;;  %v2574_v11 = vmul.f32 %v1919_v42, %v2506_v55  ;;  %v2578_v15 = vmul.f32 %v1920_v34, %v1143_v13  ;;  %v1923_v55 = vld [vmem:[#allocation2 + $0xa0] sm:$0xff] }
 0x29f   :  { %1186 = vst [vmem:[#allocation9 + $0xd0] sm:$0xff] %v2561_v45  ;;  %v1152_v39 = vmul.f32 %v1886_v32, %v2464_v53  ;;  %1893 = vrcp.f32 %v1059_v51  ;;  %v2581_v16 = vmul.f32 %v1921_v41, %v2443_v56  ;;  %v2584_v23 = vmul.f32 %v1922_v36, %v2450_v25  ;;  %v1924_v53 = vld [vmem:[#allocation2 + $0xa8] sm:$0xff] }
 0x2a0   :  { %v1088_v62 = vrot.slane %v1087_v37, 1  ;;  %v1074_v60 = vrot.slane %v1073_v40, 2  ;;  %v2587_v10 = vmul.f32 %v1923_v55, %v2510_v46  ;;  %v2592_v13 = vmul.f32 %v1924_v53, %v2527_v31  ;;  %v1926_v31 = vld [vmem:[#allocation2 + $0xc0] sm:$0xff] }
 0x2a1   :  { %v2589_v28 = vpop.eup %1887  ;;  %1184 = vst [vmem:[#allocation9 + $0xc0] sm:$0xff] %v1152_v39  ;;  %v2595_v56 = vmul.f32 %v1925_v59, %v2515_v5  ;;  %v1225_v25 = vadd.f32 %v1224_v57, %v2306_v49  ;;  %v2847_v20 = vrot.slane %v2315_v63, 4  ;;  %v1236_v29 = vrot.slane %v2532_v21, 4 }
 0x2a2   :  { %v1089_v27 = vadd.f32 %v1088_v62, %v1087_v37  ;;  %v1075_v3 = vadd.f32 %v1074_v60, %v1073_v40  ;;  %v1090_v33 = vrot.slane %v2589_v28, 4  ;;  %v2605_v9 = vmul.f32 %v1926_v31, %v1152_v39 }
 0x2a3   :  { %v1231_v46 = vadd.f32 %v2847_v20, %v2315_v63  ;;  %v1226_v38 = vrot.slane %v1225_v25, 2  ;;  %v1242_v48 = vrot.slane %v2537_v0, 4  ;;  %v1237_v63 = vadd.f32 %v1236_v29, %v2532_v21 }
 0x2a4   :  { %v2608_v61 = vpop.eup %1889  ;;  %1895 = vrcp.f32 %v1089_v27  ;;  %v1076_v49 = vrot.slane %v1075_v3, 1  ;;  %v1091_v57 = vadd.f32 %v2589_v28, %v1090_v33  ;;  %v1248_v39 = vrot.slane %v2540_v50, 4  ;;  %v1929_v33 = vld [vmem:[#allocation2 + $0xd8] sm:$0xff] }
 0x2a5   :  { %v1232_v5 = vrot.slane %v1231_v46, 2  ;;  %v1078_v51 = vrot.slane %v2608_v61, 4  ;;  %v1227_v4 = vadd.f32 %v1226_v38, %v1225_v25  ;;  %v1243_v32 = vadd.f32 %v1242_v48, %v2537_v0  ;;  %v1927_v25 = vld [vmem:[#allocation2 + $0xb8] sm:$0xff] }
 0x2a6   :  { %v1892_v37 = vpop.eup %1891  ;;  %v1077_v40 = vadd.f32 %v1076_v49, %v1075_v3  ;;  %v1092_v44 = vrot.slane %v1091_v57, 2  ;;  %v1238_v42 = vrot.slane %v1237_v63, 2  ;;  %v1368_v59 = vrot.slane %v2605_v9, 4 }
 0x2a7   :  { %v1233_v14 = vadd.f32 %v1232_v5, %v1231_v46  ;;  %v1155_v34 = vmul.f32 %v1892_v37, %v2481_v35  ;;  %v1079_v41 = vadd.f32 %v2608_v61, %v1078_v51  ;;  %v1228_v62 = vrot.slane %v1227_v4, 1  ;;  %v1928_v46 = vld [vmem:[#allocation2 + $0xd0] sm:$0xff] }
 0x2a8   :  { %1897 = vrcp.f32 %v1077_v40  ;;  %v1093_v21 = vadd.f32 %v1092_v44, %v1091_v57  ;;  %v1239_v36 = vadd.f32 %v1238_v42, %v1237_v63  ;;  %v1244_v55 = vrot.slane %v1243_v32, 2  ;;  %v1930_v42 = vld [vmem:[#allocation2 + $0xc8] sm:$0xff] }
 0x2a9   :  { %v1234_v60 = vrot.slane %v1233_v14, 1  ;;  %v1894_v53 = vpop.eup %1893  ;;  %1187 = vst [vmem:[#allocation9 + $0xd8] sm:$0xff] %v1155_v34  ;;  %v1080_v0 = vrot.slane %v1079_v41, 2  ;;  %v2619_v20 = vmul.f32 %v1927_v25, %v2544_v12  ;;  %v2622_v35 = vmul.f32 %v1928_v46, %v2561_v45 }
 0x2aa   :  { %v1153_v27 = vmul.f32 %v1894_v53, %v2496_v2  ;;  %v1094_v3 = vrot.slane %v1093_v21, 1  ;;  %v2625_v29 = vmul.f32 %v1929_v33, %v1155_v34  ;;  %v1240_v31 = vrot.slane %v1239_v36, 1 }
 0x2ab   :  { %v1081_v38 = vadd.f32 %v1080_v0, %v1079_v41  ;;  %v1249_v5 = vadd.f32 %v1248_v39, %v2540_v50  ;;  %v1254_v48 = vrot.slane %v2549_v24, 4  ;;  %v1260_v49 = vrot.slane %v2551_v19, 4 }
 0x2ac   :  { %1185 = vst [vmem:[#allocation9 + $0xc8] sm:$0xff] %v1153_v27  ;;  %v1095_v12 = vadd.f32 %v1094_v3, %v1093_v21  ;;  %v2630_v57 = vadd.f32 %v1228_v62, %v1227_v4  ;;  %v2632_v45 = vadd.f32 %v1234_v60, %v1233_v14  ;;  %v1245_v63 = vadd.f32 %v1244_v55, %v1243_v32 }
 0x2ad   :  { %v1082_v2 = vrot.slane %v1081_v38, 1  ;;  %v1250_v51 = vrot.slane %v1249_v5, 2  ;;  %v1255_v37 = vadd.f32 %v1254_v48, %v2549_v24  ;;  %v1261_v40 = vadd.f32 %v1260_v49, %v2551_v19 }
 0x2ae   :  { %v1896_v44 = vpop.eup %1895  ;;  %v2636_v50 = vmul.f32 %v1930_v42, %v1153_v27  ;;  %1899 = vrcp.f32 %v1095_v12  ;;  %v2638_v39 = vadd.f32 %v1240_v31, %v1239_v36  ;;  %v1266_v34 = vrot.slane %v2553_v58, 4 }
 0x2af   :  { %v1083_v4 = vadd.f32 %v1082_v2, %v1081_v38  ;;  %v1158_v14 = vmul.f32 %v1896_v44, %v2523_v18  ;;  %v1251_v41 = vadd.f32 %v1250_v51, %v1249_v5  ;;  %v1256_v32 = vrot.slane %v1255_v37, 2  ;;  %v1931_v5 = vld [vmem:[#allocation2 + $0xf0] sm:$0xff]  ;;  %v1932_v51 = vld [vmem:[#allocation2 + $0xe0] sm:$0xff] }
 0x2b0   :  { %v1262_v62 = vrot.slane %v1261_v40, 2  ;;  %v1267_v60 = vadd.f32 %v1266_v34, %v2553_v58  ;;  %v2848_v24 = vrot.slane %v2365_v17, 4  ;;  %v1279_v21 = vadd.f32 %v1278_v1, %v2386_v8 }
 0x2b1   :  { %1901 = vrcp.f32 %v1083_v4  ;;  %1190 = vst [vmem:[#allocation9 + $0xf0] sm:$0xff] %v1158_v14  ;;  %v1246_v36 = vrot.slane %v1245_v63, 1  ;;  %v1252_v55 = vrot.slane %v1251_v41, 1  ;;  %v1257_v53 = vadd.f32 %v1256_v32, %v1255_v37 }
 0x2b2   :  { %v1273_v19 = vadd.f32 %v2848_v24, %v2365_v17  ;;  %v1898_v0 = vpop.eup %1897  ;;  %v1263_v18 = vadd.f32 %v1262_v62, %v1261_v40  ;;  %v1268_v25 = vrot.slane %v1267_v60, 2  ;;  %v1280_v27 = vrot.slane %v1279_v21, 2 }
 0x2b3   :  { %v1374_v58 = vrot.slane %v2636_v50, 4  ;;  %v1156_v3 = vmul.f32 %v1898_v0, %v2546_v7  ;;  %v1258_v33 = vrot.slane %v1257_v53, 1  ;;  %v1284_v17 = vrot.slane %v2558_v47, 4 }
 0x2b4   :  { %v1274_v46 = vrot.slane %v1273_v19, 2  ;;  %v1264_v31 = vrot.slane %v1263_v18, 1  ;;  %v1269_v38 = vadd.f32 %v1268_v25, %v1267_v60  ;;  %v1281_v1 = vadd.f32 %v1280_v27, %v1279_v21 }
 0x2b5   :  { %1188 = vst [vmem:[#allocation9 + $0xe0] sm:$0xff] %v1156_v3  ;;  %v2652_v48 = vmul.f32 %v1931_v5, %v1158_v14  ;;  %v2654_v49 = vadd.f32 %v1246_v36, %v1245_v63  ;;  %v1285_v12 = vadd.f32 %v1284_v17, %v2558_v47  ;;  %v1290_v2 = vrot.slane %v2564_v43, 4  ;;  %v1933_v5 = vld [vmem:[#allocation2 + $0xf8] sm:$0xff] }
 0x2b6   :  { %v1275_v8 = vadd.f32 %v1274_v46, %v1273_v19  ;;  %v2658_v37 = vmul.f32 %v1932_v51, %v1156_v3  ;;  %v2660_v7 = vadd.f32 %v1252_v55, %v1251_v41  ;;  %v2662_v40 = vadd.f32 %v1258_v33, %v1257_v53 }
 0x2b7   :  { %v1270_v44 = vrot.slane %v1269_v38, 1  ;;  %v1286_v42 = vrot.slane %v1285_v12, 2  ;;  %v1291_v34 = vadd.f32 %v1290_v2, %v2564_v43  ;;  %v1296_v4 = vrot.slane %v2567_v52, 4 }
 0x2b8   :  { %v1302_v63 = vrot.slane %v2571_v26, 4  ;;  %v1900_v14 = vpop.eup %1899  ;;  %v2667_v32 = vadd.f32 %v1264_v31, %v1263_v18  ;;  %v1276_v47 = vrot.slane %v1275_v8, 1  ;;  %v1282_v62 = vrot.slane %v1281_v1, 1 }
 0x2b9   :  { %v1308_v60 = vrot.slane %v2574_v11, 4  ;;  %v1159_v41 = vmul.f32 %v1900_v14, %v2589_v28  ;;  %v1287_v24 = vadd.f32 %v1286_v42, %v1285_v12  ;;  %v1292_v19 = vrot.slane %v1291_v34, 2 }
 0x2ba   :  { %v1297_v21 = vadd.f32 %v1296_v4, %v2567_v52  ;;  %v1303_v43 = vadd.f32 %v1302_v63, %v2571_v26  ;;  %v1314_v55 = vrot.slane %v2578_v15, 4  ;;  %v1321_v53 = vadd.f32 %v1320_v22, %v2460_v6 }
 0x2bb   :  { %v1309_v36 = vadd.f32 %v1308_v60, %v2574_v11  ;;  %v1902_v0 = vpop.eup %1901  ;;  %1191 = vst [vmem:[#allocation9 + $0xf8] sm:$0xff] %v1159_v41  ;;  %v2678_v18 = vadd.f32 %v1270_v44, %v1269_v38  ;;  %v1288_v28 = vrot.slane %v1287_v24, 1  ;;  %v1293_v25 = vadd.f32 %v1292_v19, %v1291_v34 }
 0x2bc   :  { %v1298_v46 = vrot.slane %v1297_v21, 2  ;;  %v1157_v52 = vmul.f32 %v1902_v0, %v2608_v61  ;;  %v1304_v27 = vrot.slane %v1303_v43, 2  ;;  %v1315_v26 = vadd.f32 %v1314_v55, %v2578_v15 }
 0x2bd   :  { %v1310_v3 = vrot.slane %v1309_v36, 2  ;;  %v2684_v11 = vadd.f32 %v1276_v47, %v1275_v8  ;;  %v2686_v6 = vadd.f32 %v1282_v62, %v1281_v1  ;;  %v1322_v33 = vrot.slane %v1321_v53, 2 }
 0x2be   :  { %v1299_v22 = vadd.f32 %v1298_v46, %v1297_v21  ;;  %1189 = vst [vmem:[#allocation9 + $0xe8] sm:$0xff] %v1157_v52  ;;  %v1294_v17 = vrot.slane %v1293_v25, 1  ;;  %v1305_v31 = vadd.f32 %v1304_v27, %v1303_v43  ;;  %v1316_v61 = vrot.slane %v1315_v26, 2 }
 0x2bf   :  { %v1311_v38 = vadd.f32 %v1310_v3, %v1309_v36  ;;  %v2688_v12 = vmul.f32 %v1933_v5, %v1159_v41  ;;  %v1323_v2 = vadd.f32 %v1322_v33, %v1321_v53  ;;  %v1327_v8 = vadd.f32 %v1326_v30, %v2468_v54 }
 0x2c0   :  { %v1300_v15 = vrot.slane %v1299_v22, 1 }
 0x2c1   :  { %2012 = shalt.err (!%p2009_p0)
}
 0x2c2   :  { %s2013_s11 = scalar_lea.hbm %s2846_s5, 4096 }
 0x2c3   :  { %p2014_p1 = scmp.ne.s32.totalorder %s2846_s5, %s2013_s11  ;;  %p2017_p2 = scmp.lt.u32.totalorder %s2013_s11, %s2846_s5 }
 0x2c5   :  { %p2019_p3 = pnand %p2017_p2, %p2014_p1 }
 0x2c7   :  { %2022 = shalt.err (!%p2019_p3)
}
 0x2c8   :  { %1514 = dma.vmem_to_hbm [thread:$0]  %s2682_s29, 4096, %s2846_s5, [#allocation10], %s2057_s1, %s2057_s1, %s2058_s17   ;;  %v2713_v54 = vadd.f32 %v1288_v28, %v1287_v24  ;;  %v1306_v30 = vrot.slane %v1305_v31, 1  ;;  %v1312_v1 = vrot.slane %v1311_v38, 1  ;;  %v1332_v51 = vrot.slane %v2581_v16, 4  ;;  %v1934_v44 = vld [vmem:[#allocation2 + $0xe8] sm:$0xff] }
 0x2c9   :  { %v2716_v42 = vmul.f32 %v1934_v44, %v1157_v52  ;;  %v1317_v34 = vadd.f32 %v1316_v61, %v1315_v26  ;;  %v1328_v4 = vrot.slane %v1327_v8, 2  ;;  %v1338_v63 = vrot.slane %v2584_v23, 4  ;;  %s2061_s5 = smov [#allocation8]  }
 0x2ca   :  { %v2719_v14 = vadd.f32 %v1294_v17, %v1293_v25  ;;  %v2721_v47 = vadd.f32 %v1300_v15, %v1299_v22  ;;  %v1324_v62 = vrot.slane %v1323_v2, 1  ;;  %v1333_v60 = vadd.f32 %v1332_v51, %v2581_v16  ;;  %s1496_s19 = sshll.u32 %s2061_s5, 4  ;;  %s1497_s19 = int_to_ptr.vmem [resolvable:$true] %s1496_s19 }
 0x2cb   :  { %v2724_v41 = vadd.f32 %v1306_v30, %v1305_v31  ;;  %v1329_v24 = vadd.f32 %v1328_v4, %v1327_v8  ;;  %v1339_v19 = vadd.f32 %v1338_v63, %v2584_v23  ;;  %v1344_v21 = vrot.slane %v2587_v10, 4  ;;  %s2023_s20 = scalar_lea.vmem %s1497_s19, 512  ;;  %p2028_p5 = scmp.lt.s32.totalorder %s1497_s19, %s1497_s19 }
 0x2cc   :  { %v2728_v43 = vadd.f32 %v1312_v1, %v1311_v38  ;;  %v1334_v36 = vrot.slane %v1333_v60, 2  ;;  %v1350_v55 = vrot.slane %v2592_v13, 4  ;;  %v1356_v53 = vrot.slane %v2595_v56, 4  ;;  %p2024_p4 = scmp.ne.s32.totalorder %s1497_s19, %s2023_s20  ;;  %p2029_p6 = scmp.lt.s32.totalorder %s2023_s20, %s2023_s20 }
 0x2cd   :  { %v1318_v0 = vrot.slane %v1317_v34, 1  ;;  %v1340_v28 = vrot.slane %v1339_v19, 2  ;;  %v1345_v25 = vadd.f32 %v1344_v21, %v2587_v10  ;;  %v1362_v16 = vrot.slane %v2619_v20, 4 }
 0x2ce   :  { %v1335_v46 = vadd.f32 %v1334_v36, %v1333_v60  ;;  %v1351_v52 = vadd.f32 %v1350_v55, %v2592_v13  ;;  %v1357_v23 = vadd.f32 %v1356_v53, %v2595_v56  ;;  %v1369_v27 = vadd.f32 %v1368_v59, %v2605_v9  ;;  %p2030_p7 = por %p2029_p6, %p2028_p5 }
 0x2cf   :  { %v1330_v3 = vrot.slane %v1329_v24, 1  ;;  %v1341_v26 = vadd.f32 %v1340_v28, %v1339_v19  ;;  %v1346_v22 = vrot.slane %v1345_v25, 2  ;;  %v1363_v33 = vadd.f32 %v1362_v16, %v2619_v20 }
 0x2d0   :  { %v1336_v17 = vrot.slane %v1335_v46, 1  ;;  %v1352_v31 = vrot.slane %v1351_v52, 2  ;;  %v1358_v38 = vrot.slane %v1357_v23, 2  ;;  %v1370_v10 = vrot.slane %v1369_v27, 2  ;;  %p2031_p8 = pnand %p2030_p7, %p2024_p4 }
 0x2d1   :  { %v1342_v61 = vrot.slane %v1341_v26, 1  ;;  %v1347_v5 = vadd.f32 %v1346_v22, %v1345_v25  ;;  %v1364_v15 = vrot.slane %v1363_v33, 2  ;;  %v1375_v13 = vadd.f32 %v1374_v58, %v2636_v50 }
 0x2d2   :  { %v2743_v56 = vadd.f32 %v1324_v62, %v1323_v2  ;;  %v1353_v8 = vadd.f32 %v1352_v31, %v1351_v52  ;;  %v1359_v9 = vadd.f32 %v1358_v38, %v1357_v23  ;;  %v1371_v59 = vadd.f32 %v1370_v10, %v1369_v27 }
 0x2d3   :  { %v2745_v30 = vadd.f32 %v1318_v0, %v1317_v34  ;;  %v1348_v1 = vrot.slane %v1347_v5, 1  ;;  %v2747_v20 = vadd.f32 %v1364_v15, %v1363_v33  ;;  %v1376_v51 = vrot.slane %v1375_v13, 2 }
 0x2d4   :  { %v2749_v44 = vadd.f32 %v1330_v3, %v1329_v24  ;;  %v1354_v4 = vrot.slane %v1353_v8, 1  ;;  %v1360_v63 = vrot.slane %v1359_v9, 1  ;;  %v1380_v60 = vrot.slane %v2622_v35, 4 }
 0x2d5   :  { %v2752_v19 = vadd.f32 %v1336_v17, %v1335_v46  ;;  %v2754_v50 = vadd.f32 %v1342_v61, %v1341_v26  ;;  %v1377_v58 = vadd.f32 %v1376_v51, %v1375_v13  ;;  %v1386_v2 = vrot.slane %v2625_v29, 4 }
 0x2d6   :  { %v2757_v62 = vadd.f32 %v1348_v1, %v1347_v5  ;;  %v1366_v34 = vrot.slane %v2747_v20, 1  ;;  %v1372_v21 = vrot.slane %v1371_v59, 1  ;;  %v1381_v36 = vadd.f32 %v1380_v60, %v2622_v35 }
 0x2d7   :  { %v2761_v24 = vadd.f32 %v1354_v4, %v1353_v8  ;;  %v2763_v55 = vadd.f32 %v1360_v63, %v1359_v9  ;;  %v1387_v53 = vadd.f32 %v1386_v2, %v2625_v29  ;;  %v1392_v0 = vrot.slane %v2658_v37, 4 }
 0x2d8   :  { %v1382_v28 = vrot.slane %v1381_v36, 2  ;;  %v1398_v25 = vrot.slane %v2716_v42, 4  ;;  %v1404_v16 = vrot.slane %v2652_v48, 4  ;;  %v1410_v46 = vrot.slane %v2688_v12, 4 }
 0x2d9   :  { %v1378_v52 = vrot.slane %v1377_v58, 1  ;;  %v1388_v23 = vrot.slane %v1387_v53, 2  ;;  %v1393_v27 = vadd.f32 %v1392_v0, %v2658_v37  ;;  %vm1448_vm0 = vcmask 1041409  }
 0x2da   :  { %v1383_v35 = vadd.f32 %v1382_v28, %v1381_v36  ;;  %v1399_v3 = vadd.f32 %v1398_v25, %v2716_v42  ;;  %v1405_v26 = vadd.f32 %v1404_v16, %v2652_v48  ;;  %v1411_v29 = vadd.f32 %v1410_v46, %v2688_v12 }
 0x2db   :  { %v1389_v22 = vadd.f32 %v1388_v23, %v1387_v53  ;;  %v1394_v33 = vrot.slane %v1393_v27, 2  ;;  %v1449_v17 = vsel %vm1448_vm0, %v2632_v45, %v2630_v57  ;;  %vm1450_vm1 = vcmask 1042434  }
 0x2dc   :  { %v1384_v31 = vrot.slane %v1383_v35, 1  ;;  %v1400_v38 = vrot.slane %v1399_v3, 2  ;;  %v1406_v10 = vrot.slane %v1405_v26, 2  ;;  %v1412_v61 = vrot.slane %v1411_v29, 2 }
 0x2dd   :  { %v1390_v37 = vrot.slane %v1389_v22, 1  ;;  %v1395_v5 = vadd.f32 %v1394_v33, %v1393_v27  ;;  %v1451_v42 = vsel %vm1450_vm1, %v2638_v39, %v1449_v17  ;;  %vm1452_vm2 = vcmask 1043459  }
 0x2de   :  { %v1373_v48 = vadd.f32 %v1372_v21, %v1371_v59  ;;  %v1401_v15 = vadd.f32 %v1400_v38, %v1399_v3  ;;  %v1407_v12 = vadd.f32 %v1406_v10, %v1405_v26  ;;  %v1413_v13 = vadd.f32 %v1412_v61, %v1411_v29 }
 0x2df   :  { %v1379_v8 = vadd.f32 %v1378_v52, %v1377_v58  ;;  %v1396_v9 = vrot.slane %v1395_v5, 1  ;;  %v1453_v57 = vsel %vm1452_vm2, %v2654_v49, %v1451_v42  ;;  %vm1454_vm3 = vcmask 1044484  }
 0x2e0   :  { %v1385_v45 = vadd.f32 %v1384_v31, %v1383_v35  ;;  %v1391_v1 = vadd.f32 %v1390_v37, %v1389_v22  ;;  %v1402_v51 = vrot.slane %v1401_v15, 1  ;;  %v1455_v4 = vsel %vm1454_vm3, %v2660_v7, %v1453_v57 }
 0x2e1   :  { %v1408_v63 = vrot.slane %v1407_v12, 1  ;;  %vm1456_vm4 = vcmask 1045509   ;;  %vm1458_vm5 = vcmask 1046534   ;;  %vm1460_vm6 = vcmask 1047559  }
 0x2e2   :  { %v1397_v39 = vadd.f32 %v1396_v9, %v1395_v5  ;;  %v1403_v59 = vadd.f32 %v1402_v51, %v1401_v15  ;;  %v1414_v60 = vrot.slane %v1413_v13, 1  ;;  %v1457_v58 = vsel %vm1456_vm4, %v2662_v40, %v1455_v4 }
 0x2e3   :  { %v1459_v49 = vsel %vm1458_vm5, %v2667_v32, %v1457_v58  ;;  %v1462_v2 = vsel %vm1448_vm0, %v2686_v6, %v2684_v11  ;;  %v1469_v7 = vsel %vm1448_vm0, %v2749_v44, %v2743_v56  ;;  %v1476_v21 = vsel %vm1448_vm0, %v1379_v8, %v1373_v48 }
 0x2e4   :  { %v1461_v36 = vsel %vm1460_vm6, %v2678_v18, %v1459_v49  ;;  %v1463_v53 = vsel %vm1450_vm1, %v2713_v54, %v1462_v2  ;;  %v1470_v40 = vsel %vm1450_vm1, %v2752_v19, %v1469_v7  ;;  %v1477_v32 = vsel %vm1450_vm1, %v1385_v45, %v1476_v21 }
 0x2e5   :  { %v1367_v0 = vadd.f32 %v1366_v34, %v2747_v20  ;;  %v1464_v11 = vsel %vm1452_vm2, %v2719_v14, %v1463_v53  ;;  %v1471_v6 = vsel %vm1452_vm2, %v2754_v50, %v1470_v40  ;;  %v1478_v56 = vsel %vm1452_vm2, %v1391_v1, %v1477_v32  ;;  %1487 = vst [vmem:[#allocation8] sm:$0xff] %v1461_v36 }
 0x2e6   :  { %v1409_v18 = vadd.f32 %v1408_v63, %v1407_v12  ;;  %v1465_v54 = vsel %vm1454_vm3, %v2721_v47, %v1464_v11  ;;  %v1472_v44 = vsel %vm1454_vm3, %v2757_v62, %v1471_v6  ;;  %v1479_v20 = vsel %vm1454_vm3, %v1397_v39, %v1478_v56 }
 0x2e7   :  { %v1415_v19 = vadd.f32 %v1414_v60, %v1413_v13  ;;  %v1466_v14 = vsel %vm1456_vm4, %v2724_v41, %v1465_v54  ;;  %v1473_v50 = vsel %vm1456_vm4, %v2761_v24, %v1472_v44  ;;  %v1480_v34 = vsel %vm1456_vm4, %v1403_v59, %v1479_v20 }
 0x2e8   :  { %v1467_v28 = vsel %vm1458_vm5, %v2728_v43, %v1466_v14  ;;  %v1474_v47 = vsel %vm1458_vm5, %v2763_v55, %v1473_v50  ;;  %v1481_v25 = vsel %vm1458_vm5, %v1409_v18, %v1480_v34 }
 0x2e9   :  { %v1468_v62 = vsel %vm1460_vm6, %v2745_v30, %v1467_v28  ;;  %v1475_v16 = vsel %vm1460_vm6, %v1367_v0, %v1474_v47  ;;  %v1482_v41 = vsel %vm1460_vm6, %v1415_v19, %v1481_v25 }
 0x2ea   :  { %1488 = vst [vmem:[#allocation8 + $0x8] sm:$0xff] %v1468_v62  ;;  %1489 = vst [vmem:[#allocation8 + $0x10] sm:$0xff] %v1475_v16 }
 0x2eb   :  { %1490 = vst [vmem:[#allocation8 + $0x18] sm:$0xff] %v1482_v41 }
 0x2ec   :  { %2034 = shalt.err (!%p2031_p8)
}
 0x2ed   :  { %s2035_s23 = scalar_lea.hbm %s2845_s4, 512 }
 0x2ee   :  { %p2036_p9 = scmp.ne.s32.totalorder %s2845_s4, %s2035_s23  ;;  %p2039_p10 = scmp.lt.u32.totalorder %s2035_s23, %s2845_s4 }
 0x2f0   :  { %p2041_p11 = pnand %p2039_p10, %p2036_p9 }
 0x2f2   :  { %2044 = shalt.err (!%p2041_p11)
}
 0x2f3   :  { %1502 = dma.vmem_to_hbm [thread:$0]  %s1497_s19, 512, %s2845_s4, [#allocation4], %s2057_s1, %s2057_s1, %s2058_s17  }
 0x2f4   :  { %2049 = dma.done.wait [#allocation4], 512  }
 0x2f5   :  { %2050 = vsyncadd [#allocation4], 4294966784 }
 0x2f6   :  { %2051 = dma.done.wait [#allocation10], 4096  }
 0x2f7   :  { %2052 = vsyncadd [#allocation10], 4294963200 }
 0x2f8   :  { %1521 = vsyncpa [#allocation3], 1 }
 0x2f9   :  { %1522 = vsyncpa [#allocation6], 1 }
 0x2fa   :  { %1523 = vsyncpa [#allocation4], 1 }
 0x2fb   :  { %1524 = vsyncpa [#allocation10], 1 }

</bundles_post_ra>
